<compile_context>
chip_gen: v7x
topology: tpu7x:2x2x1
jax: 0.10.0
libtpu: 0.0.40
codegen_flags: <defaults>
</compile_context>

<pallas_src>
import functools

import jax
import jax.numpy as jnp
from jax import lax
from jax.experimental import pallas as pl
from jax.experimental.pallas import tpu as pltpu


def _attention_kernel(x_ref, wqkv_ref, wproj_ref, bproj_ref, o_ref, *,
                      num_heads, block_t, seq_n, use_block_diag, mm_dtype):
    # x_ref block: (1, TB*N, C) -- the tokens of TB image blocks, flattened.
    c = x_ref.shape[-1]
    hd = c // num_heads
    tbn = block_t * seq_n

    x = x_ref[0]                                            # (TBN, C)

    # Fused QKV projection over all TBN rows.  The softmax scale was folded
    # into the Q columns of wqkv on the host, so no extra multiply here.
    qkv = jnp.dot(x, wqkv_ref[...],
                  preferred_element_type=jnp.float32)       # (TBN, 3C) f32

    # Column layout of the 3C axis is [3][num_heads][head_dim], matching
    # torch's .reshape(b, t, n, 3, num_heads, head_dim).  Cast the attention
    # matmul operands to bf16 (MXU-native); accumulation stays f32.
    q_all = qkv[:, 0 * c:1 * c].astype(mm_dtype)
    k_all = qkv[:, 1 * c:2 * c].astype(mm_dtype)
    v_all = qkv[:, 2 * c:3 * c].astype(mm_dtype)

    # One-time head-major relayout (done once per operand per grid step,
    # not once per image block): (TBN, C) -> (H, TBN, hd).
    def to_heads(a):
        return a.reshape(tbn, num_heads, hd).transpose(1, 0, 2)

    q = to_heads(q_all)
    k = to_heads(k_all)
    v = to_heads(v_all)

    if use_block_diag:
        # Lane-dense block-diagonal attention: one batched (leading batch dim)
        # matmul over the whole tile, off-block scores masked before softmax.
        s = lax.dot_general(q, k, (((2,), (2,)), ((0,), (0,))),
                            preferred_element_type=jnp.float32)  # (H, TBN, TBN)
        blk_q = lax.broadcasted_iota(jnp.int32, (tbn, tbn), 0) // seq_n
        blk_k = lax.broadcasted_iota(jnp.int32, (tbn, tbn), 1) // seq_n
        s = jnp.where((blk_q == blk_k)[None, :, :], s, -jnp.inf)
    else:
        # Per-(block, head) batched attention: split the token axis into the
        # batch dimension (pure leading-dim reshape of the head-major layout,
        # no further relayout) so one batched dot_general covers all blocks.
        q = q.reshape(num_heads * block_t, seq_n, hd)
        k = k.reshape(num_heads * block_t, seq_n, hd)
        v = v.reshape(num_heads * block_t, seq_n, hd)
        s = lax.dot_general(q, k, (((2,), (2,)), ((0,), (0,))),
                            preferred_element_type=jnp.float32)  # (H*TB, N, N)

    # Softmax (f32 statistics); attn_drop has p=0.0 -> identity.
    s = s - jnp.max(s, axis=-1, keepdims=True)
    p = jnp.exp(s)
    # EUP approximate reciprocal instead of a full-precision divide.
    p = p * pl.reciprocal(jnp.sum(p, axis=-1, keepdims=True), approx=True)

    o = lax.dot_general(p.astype(mm_dtype), v, (((2,), (1,)), ((0,), (0,))),
                        preferred_element_type=jnp.float32)

    if not use_block_diag:
        o = o.reshape(num_heads, tbn, hd)                   # (H, TBN, hd)

    # Head-major recombination; wproj rows were pre-permuted on the host so no
    # in-kernel (d, h) shuffle is needed.
    out = o.transpose(1, 0, 2).reshape(tbn, c)              # (TBN, C)

    y = jnp.dot(out.astype(wproj_ref.dtype), wproj_ref[...],
                preferred_element_type=jnp.float32) + bproj_ref[...]
    # proj_drop has p=0.0 -> identity.
    o_ref[0] = y.astype(o_ref.dtype)


def _choose_block_t(t, n, max_rows=512, max_block_t=None):
    """Largest divisor of T (<= max_block_t) such that block_t * N <= max_rows."""
    limit = t if max_block_t is None else max(1, min(t, max_block_t))
    best = 1
    for cand in range(1, limit + 1):
        if t % cand == 0 and cand * n <= max_rows:
            best = cand
    return best


def nest_attention(x, wqkv, wproj, bproj, num_heads, *,
                   block_t=None, compute_dtype=None,
                   attn_matmul_dtype=jnp.bfloat16,
                   use_block_diag=None, out_dtype=None,
                   max_rows=512, single_buffer_weights=True,
                   vmem_limit_bytes=48 * 1024 * 1024):
    """Localised (block-wise) multi-head self attention.

    x: (B, T, N, C); wqkv: (C, 3C); wproj: (C, C); bproj: (C,).

    Tuning notes:
      * compute_dtype=jnp.bfloat16 halves HBM/DMA bytes and is recommended on
        all generations; attention matmuls default to bf16 operands with f32
        accumulation (set attn_matmul_dtype=jnp.float32 for a bit-closer path).
      * v7x: keep vmem_limit_bytes <= ~48 MiB (physical VMEM is 64 MiB, not
        128) and max_rows=512; weights are single-buffered to save VMEM.
      * v6e: raise vmem_limit_bytes to ~96 MiB and max_rows to 1024 when T*N
        is large (128 MiB physical VMEM, bigger tiles amortize per-step cost).
      * v5e: bf16 recommended; max_rows=256 already fills the 128-wide MXU.
      * out_dtype=jnp.bfloat16 halves output store/DMA bytes when the
        surrounding network consumes bf16.
    """
    B, T, N, C = x.shape
    H = num_heads
    assert C % H == 0, "dim must be divisible by num_heads"
    hd = C // H
    scale = float(hd ** -0.5)

    if block_t is None:
        # v7x has 2 TensorCores: when B == 1 keep >= 2 steps on the T axis so
        # both cores get work.
        max_bt = T if B >= 2 else max(1, T // 2)
        block_t = _choose_block_t(T, N, max_rows=max_rows, max_block_t=max_bt)
    assert T % block_t == 0, "block_t must divide T"
    tbn = block_t * N

    if use_block_diag is None:
        # Block-diagonal masked attention gives lane-dense (>=128 wide) score
        # matmuls when N < 128; gate the TBx extra FLOPs / memory on the f32
        # score tensor (+ low-precision probability copy) fitting a VMEM budget.
        score_bytes = H * tbn * tbn * (4 + 2)
        use_block_diag = (N < 128) and (block_t > 1) and (
            score_bytes <= 12 * 1024 * 1024)

    if attn_matmul_dtype is None:
        attn_matmul_dtype = jnp.float32

    # Fold the softmax scale into the Q columns of the QKV weight.
    # NOTE: exact only because the module uses qkv_bias=False.
    wqkv_s = wqkv.at[:, :C].multiply(scale)

    # Permute wproj rows once so the kernel can use standard head-major
    # recombination: wproj_perm[h*hd + d, :] = wproj[d*H + h, :]  (this folds
    # the module's .permute(0,2,3,4,1) channel ordering into the weight).
    wproj_p = wproj.reshape(hd, H, C).transpose(1, 0, 2).reshape(C, C)

    x_in = x
    if compute_dtype is not None:
        x_in = x.astype(compute_dtype)
        wqkv_s = wqkv_s.astype(compute_dtype)
        wproj_p = wproj_p.astype(compute_dtype)
    bproj2 = bproj.reshape(1, C).astype(jnp.float32)

    # Flatten (T, N) -> T*N in HBM (metadata-only) so the kernel reads/writes
    # contiguous (TB*N, C) slabs.  Stores are lane-dense whenever C % 128 == 0
    # (the production UNesT embed dims); the toy C=32 case is inherently
    # lane-sparse.
    x_flat = x_in.reshape(B, T * N, C)
    out_dtype = x.dtype if out_dtype is None else out_dtype

    kernel = functools.partial(
        _attention_kernel, num_heads=H, block_t=block_t, seq_n=N,
        use_block_diag=use_block_diag, mm_dtype=attn_matmul_dtype)

    def run(buffered_weights):
        # Constant-index weights: single-buffer them when supported (their
        # index_map never changes, so double buffering only wastes VMEM).
        wkw = dict(pipeline_mode=pl.Buffered(1)) if buffered_weights else {}
        return pl.pallas_call(
            kernel,
            out_shape=jax.ShapeDtypeStruct((B, T * N, C), out_dtype),
            grid_spec=pltpu.PrefetchScalarGridSpec(
                num_scalar_prefetch=0,
                grid=(B, T // block_t),
                in_specs=[
                    pl.BlockSpec((1, tbn, C), lambda b, tc: (b, tc, 0)),
                    pl.BlockSpec((C, 3 * C), lambda b, tc: (0, 0), **wkw),
                    pl.BlockSpec((C, C), lambda b, tc: (0, 0), **wkw),
                    pl.BlockSpec((1, C), lambda b, tc: (0, 0), **wkw),
                ],
                out_specs=pl.BlockSpec((1, tbn, C), lambda b, tc: (b, tc, 0)),
            ),
            compiler_params=pltpu.CompilerParams(
                dimension_semantics=("parallel", "parallel"),
                vmem_limit_bytes=vmem_limit_bytes),
        )(x_flat, wqkv_s, wproj_p, bproj2)

    if single_buffer_weights:
        try:
            out = run(True)
        except Exception:
            out = run(False)   # graceful fallback if pipeline_mode is rejected
    else:
        out = run(False)

    return out.reshape(B, T, N, C)


def nest_attention_ref(x, wqkv, wproj, bproj, num_heads):
    """Pure-JAX reference matching the PyTorch forward exactly."""
    b, t, n, c = x.shape
    hd = c // num_heads
    scale = hd ** -0.5
    qkv = x @ wqkv                                          # (b,t,n,3c)
    qkv = qkv.reshape(b, t, n, 3, num_heads, hd).transpose(3, 0, 4, 1, 2, 5)
    q, k, v = qkv[0], qkv[1], qkv[2]                        # (b,h,t,n,hd)
    attn = jnp.einsum('bhtnd,bhtmd->bhtnm', q, k) * scale
    attn = jax.nn.softmax(attn, axis=-1)
    out = jnp.einsum('bhtnm,bhtmd->bhtnd', attn, v)         # (b,h,t,n,hd)
    out = out.transpose(0, 2, 3, 4, 1).reshape(b, t, n, c)  # (hd, h)-major!
    return out @ wproj + bproj


if __name__ == "__main__":
    # Small shapes consistent with the module: B=2 batch, T=4 image blocks,
    # N=8 tokens per block, C=32 embed dim, 4 heads.
    B, T, N, C, H = 2, 4, 8, 32, 4

    key = jax.random.PRNGKey(0)
    kx, kq, kp, kb = jax.random.split(key, 4)
    x = jax.random.normal(kx, (B, T, N, C), dtype=jnp.float32)

    # Deterministic synthetic parameters.  Torch nn.Linear stores weight as
    # (out, in) and computes x @ W.T; here we define the already-transposed
    # (in, out) matrices directly.
    wqkv = 0.02 * jax.random.normal(kq, (C, 3 * C), dtype=jnp.float32)
    wproj = 0.02 * jax.random.normal(kp, (C, C), dtype=jnp.float32)
    bproj = 0.02 * jax.random.normal(kb, (C,), dtype=jnp.float32)

    ref = nest_attention_ref(x, wqkv, wproj, bproj, H)

    # 1) Exact-ish f32 path (per-(block,head) batched attention, f32 MXU ops).
    out_f32 = jax.block_until_ready(
        nest_attention(x, wqkv, wproj, bproj, H,
                       attn_matmul_dtype=jnp.float32, use_block_diag=False))
    assert out_f32.shape == (B, T, N, C)
    assert jnp.allclose(out_f32, ref, atol=2e-3, rtol=2e-3), (
        f"f32 max abs err = {jnp.max(jnp.abs(out_f32 - ref))}")

    # 2) Default path: block-diagonal masked attention, bf16 MXU operands,
    #    f32 accumulation / softmax.
    out_def = jax.block_until_ready(nest_attention(x, wqkv, wproj, bproj, H))
    assert jnp.allclose(out_def, ref, atol=5e-3, rtol=5e-3), (
        f"default-path max abs err = {jnp.max(jnp.abs(out_def - ref))}")

    # 3) bf16 activations/weights (recommended on v5e/v6e/v7x); accumulators
    #    stay f32.
    out_bf16 = jax.block_until_ready(
        nest_attention(x, wqkv, wproj, bproj, H, compute_dtype=jnp.bfloat16))
    assert jnp.allclose(out_bf16, ref, atol=2e-2, rtol=2e-2), (
        f"bf16 max abs err = {jnp.max(jnp.abs(out_bf16 - ref))}")

    print("KERNEL_OK")
</pallas_src>

<mosaic_0001>
module attributes {stable_mosaic.version = 11 : i64} {
  func.func @_attention_kernel(%arg0: i32, %arg1: i32, %arg2: memref<1x32x32xf32, #tpu.memory_space<vmem>>, %arg3: memref<32x96xf32, #tpu.memory_space<vmem>>, %arg4: memref<32x32xf32, #tpu.memory_space<vmem>>, %arg5: memref<1x32xf32, #tpu.memory_space<vmem>>, %arg6: memref<1x32x32xf32, #tpu.memory_space<vmem>>) attributes {dimension_semantics = [#tpu.dimension_semantics<parallel>, #tpu.dimension_semantics<parallel>], iteration_bounds = array<i64: 2, 1>, scalar_prefetch = 0 : i64, scratch_operands = 0 : i64, tpu.core_type = #tpu.core_type<tc>, window_params = [{transform_indices = @transform_0, window_bounds = array<i64: 1, 32, 32>}, {pipeline_mode = #tpu.pipeline_mode<synchronous>, transform_indices = @transform_1, window_bounds = array<i64: 32, 96>}, {pipeline_mode = #tpu.pipeline_mode<synchronous>, transform_indices = @transform_2, window_bounds = array<i64: 32, 32>}, {pipeline_mode = #tpu.pipeline_mode<synchronous>, transform_indices = @transform_3, window_bounds = array<i64: 1, 32>}, {transform_indices = @transform_4, window_bounds = array<i64: 1, 32, 32>}]} {
    %c0 = arith.constant 0 : index
    %c0_0 = arith.constant 0 : index
    %c0_1 = arith.constant 0 : index
    %0 = vector.load %arg2[%c0, %c0_0, %c0_1] : memref<1x32x32xf32, #tpu.memory_space<vmem>>, vector<1x32x32xf32>
    %1 = vector.shape_cast %0 : vector<1x32x32xf32> to vector<32x32xf32>
    %c0_2 = arith.constant 0 : index
    %c0_3 = arith.constant 0 : index
    %2 = vector.load %arg3[%c0_2, %c0_3] : memref<32x96xf32, #tpu.memory_space<vmem>>, vector<32x96xf32>
    %cst = arith.constant dense<0.000000e+00> : vector<32x96xf32>
    %3 = tpu.matmul %1, %2, %cst {dimension_numbers = #tpu.dot_dimension_numbers<[1], [0], [0], [1], [0, 0, 1, 1], [], []>} : vector<32x32xf32>, vector<32x96xf32>, vector<32x96xf32> -> vector<32x96xf32>
    %4 = vector.extract_strided_slice %3 {offsets = [0, 0], sizes = [32, 32], strides = [1, 1]} : vector<32x96xf32> to vector<32x32xf32>
    %5 = vector.extract_strided_slice %3 {offsets = [0, 32], sizes = [32, 32], strides = [1, 1]} : vector<32x96xf32> to vector<32x32xf32>
    %6 = vector.extract_strided_slice %3 {offsets = [0, 64], sizes = [32, 32], strides = [1, 1]} : vector<32x96xf32> to vector<32x32xf32>
    %7 = vector.shape_cast %4 : vector<32x32xf32> to vector<32x4x8xf32>
    %8 = tpu.transpose %7, [1, 0, 2] : vector<32x4x8xf32> -> vector<4x32x8xf32>
    %9 = vector.shape_cast %5 : vector<32x32xf32> to vector<32x4x8xf32>
    %10 = tpu.transpose %9, [1, 0, 2] : vector<32x4x8xf32> -> vector<4x32x8xf32>
    %11 = vector.shape_cast %6 : vector<32x32xf32> to vector<32x4x8xf32>
    %12 = tpu.transpose %11, [1, 0, 2] : vector<32x4x8xf32> -> vector<4x32x8xf32>
    %13 = vector.shape_cast %8 : vector<4x32x8xf32> to vector<16x8x8xf32>
    %14 = vector.shape_cast %10 : vector<4x32x8xf32> to vector<16x8x8xf32>
    %15 = vector.shape_cast %12 : vector<4x32x8xf32> to vector<16x8x8xf32>
    %cst_4 = arith.constant dense<0.000000e+00> : vector<16x8x8xf32>
    %16 = tpu.matmul %13, %14, %cst_4 {dimension_numbers = #tpu.dot_dimension_numbers<[2], [2], [1], [1], [0, 0, 0, 1, 1, 1], [0], [0]>} : vector<16x8x8xf32>, vector<16x8x8xf32>, vector<16x8x8xf32> -> vector<16x8x8xf32>
    %cst_5 = arith.constant dense<0xFF800000> : vector<16x8xf32>
    %17 = vector.multi_reduction <maximumf>, %16, %cst_5 [2] : vector<16x8x8xf32> to vector<16x8xf32>
    %18 = vector.shape_cast %17 : vector<16x8xf32> to vector<16x8x1xf32>
    %19 = vector.broadcast %18 : vector<16x8x1xf32> to vector<16x8x8xf32>
    %20 = arith.subf %16, %19 : vector<16x8x8xf32>
    %21 = math.exp %20 : vector<16x8x8xf32>
    %cst_6 = arith.constant dense<0.000000e+00> : vector<16x8xf32>
    %22 = vector.multi_reduction <add>, %21, %cst_6 [2] : vector<16x8x8xf32> to vector<16x8xf32>
    %23 = vector.shape_cast %22 : vector<16x8xf32> to vector<16x8x1xf32>
    %24 = tpu.reciprocal %23 {approx = true} : vector<16x8x1xf32> -> vector<16x8x1xf32>
    %25 = vector.broadcast %24 : vector<16x8x1xf32> to vector<16x8x8xf32>
    %26 = arith.mulf %21, %25 : vector<16x8x8xf32>
    %cst_7 = arith.constant dense<0.000000e+00> : vector<16x8x8xf32>
    %27 = tpu.matmul %26, %15, %cst_7 {dimension_numbers = #tpu.dot_dimension_numbers<[2], [1], [1], [2], [0, 0, 0, 1, 1, 2], [0], [0]>} : vector<16x8x8xf32>, vector<16x8x8xf32>, vector<16x8x8xf32> -> vector<16x8x8xf32>
    %28 = vector.shape_cast %27 : vector<16x8x8xf32> to vector<4x32x8xf32>
    %29 = tpu.transpose %28, [1, 0, 2] : vector<4x32x8xf32> -> vector<32x4x8xf32>
    %30 = vector.shape_cast %29 : vector<32x4x8xf32> to vector<32x32xf32>
    %c0_8 = arith.constant 0 : index
    %c0_9 = arith.constant 0 : index
    %31 = vector.load %arg4[%c0_8, %c0_9] : memref<32x32xf32, #tpu.memory_space<vmem>>, vector<32x32xf32>
    %cst_10 = arith.constant dense<0.000000e+00> : vector<32x32xf32>
    %32 = tpu.matmul %30, %31, %cst_10 {dimension_numbers = #tpu.dot_dimension_numbers<[1], [0], [0], [1], [0, 0, 1, 1], [], []>} : vector<32x32xf32>, vector<32x32xf32>, vector<32x32xf32> -> vector<32x32xf32>
    %c0_11 = arith.constant 0 : index
    %c0_12 = arith.constant 0 : index
    %33 = vector.load %arg5[%c0_11, %c0_12] : memref<1x32xf32, #tpu.memory_space<vmem>>, vector<1x32xf32>
    %34 = vector.broadcast %33 : vector<1x32xf32> to vector<32x32xf32>
    %35 = arith.addf %32, %34 : vector<32x32xf32>
    %c0_13 = arith.constant 0 : index
    %c0_14 = arith.constant 0 : index
    %c0_15 = arith.constant 0 : index
    %36 = vector.load %arg6[%c0_13, %c0_14, %c0_15] : memref<1x32x32xf32, #tpu.memory_space<vmem>>, vector<1x32x32xf32>
    %37 = vector.shape_cast %36 : vector<1x32x32xf32> to vector<32x32xf32>
    %38 = vector.shape_cast %35 : vector<32x32xf32> to vector<1x32x32xf32>
    tpu.vector_store %arg6[%c0_13, %c0_14, %c0_15], %38 {strides = array<i32>} : memref<1x32x32xf32, #tpu.memory_space<vmem>>, vector<1x32x32xf32>,
    return
  }
  func.func @transform_0(%arg0: i32, %arg1: i32) -> (i32, i32, i32) {
    %c0_i32 = arith.constant 0 : i32
    %c0_i32_0 = arith.constant 0 : i32
    return %arg0, %arg1, %c0_i32 : i32, i32, i32
  }
  func.func @transform_1(%arg0: i32, %arg1: i32) -> (i32, i32) {
    %c0_i32 = arith.constant 0 : i32
    %c0_i32_0 = arith.constant 0 : i32
    %c0_i32_1 = arith.constant 0 : i32
    return %c0_i32, %c0_i32_0 : i32, i32
  }
  func.func @transform_2(%arg0: i32, %arg1: i32) -> (i32, i32) {
    %c0_i32 = arith.constant 0 : i32
    %c0_i32_0 = arith.constant 0 : i32
    %c0_i32_1 = arith.constant 0 : i32
    return %c0_i32, %c0_i32_0 : i32, i32
  }
  func.func @transform_3(%arg0: i32, %arg1: i32) -> (i32, i32) {
    %c0_i32 = arith.constant 0 : i32
    %c0_i32_0 = arith.constant 0 : i32
    %c0_i32_1 = arith.constant 0 : i32
    return %c0_i32, %c0_i32_0 : i32, i32
  }
  func.func @transform_4(%arg0: i32, %arg1: i32) -> (i32, i32, i32) {
    %c0_i32 = arith.constant 0 : i32
    %c0_i32_0 = arith.constant 0 : i32
    return %arg0, %arg1, %c0_i32 : i32, i32, i32
  }
}

module attributes {stable_mosaic.version = 11 : i64} {
  func.func @_attention_kernel(%arg0: i32, %arg1: i32, %arg2: memref<1x32x32xf32, #tpu.memory_space<vmem>>, %arg3: memref<32x96xf32, #tpu.memory_space<vmem>>, %arg4: memref<32x32xf32, #tpu.memory_space<vmem>>, %arg5: memref<1x32xf32, #tpu.memory_space<vmem>>, %arg6: memref<1x32x32xf32, #tpu.memory_space<vmem>>) attributes {dimension_semantics = [#tpu.dimension_semantics<parallel>, #tpu.dimension_semantics<parallel>], iteration_bounds = array<i64: 2, 1>, scalar_prefetch = 0 : i64, scratch_operands = 0 : i64, tpu.core_type = #tpu.core_type<tc>, window_params = [{transform_indices = @transform_0, window_bounds = array<i64: 1, 32, 32>}, {pipeline_mode = #tpu.pipeline_mode<synchronous>, transform_indices = @transform_1, window_bounds = array<i64: 32, 96>}, {pipeline_mode = #tpu.pipeline_mode<synchronous>, transform_indices = @transform_2, window_bounds = array<i64: 32, 32>}, {pipeline_mode = #tpu.pipeline_mode<synchronous>, transform_indices = @transform_3, window_bounds = array<i64: 1, 32>}, {transform_indices = @transform_4, window_bounds = array<i64: 1, 32, 32>}]} {
    %c0 = arith.constant 0 : index
    %c0_0 = arith.constant 0 : index
    %c0_1 = arith.constant 0 : index
    %0 = vector.load %arg2[%c0, %c0_0, %c0_1] : memref<1x32x32xf32, #tpu.memory_space<vmem>>, vector<1x32x32xf32>
    %1 = vector.shape_cast %0 : vector<1x32x32xf32> to vector<32x32xf32>
    %c0_2 = arith.constant 0 : index
    %c0_3 = arith.constant 0 : index
    %2 = vector.load %arg3[%c0_2, %c0_3] : memref<32x96xf32, #tpu.memory_space<vmem>>, vector<32x96xf32>
    %cst = arith.constant dense<0.000000e+00> : vector<32x96xf32>
    %3 = tpu.matmul %1, %2, %cst {dimension_numbers = #tpu.dot_dimension_numbers<[1], [0], [0], [1], [0, 0, 1, 1], [], []>} : vector<32x32xf32>, vector<32x96xf32>, vector<32x96xf32> -> vector<32x96xf32>
    %4 = vector.extract_strided_slice %3 {offsets = [0, 0], sizes = [32, 32], strides = [1, 1]} : vector<32x96xf32> to vector<32x32xf32>
    %5 = vector.extract_strided_slice %3 {offsets = [0, 32], sizes = [32, 32], strides = [1, 1]} : vector<32x96xf32> to vector<32x32xf32>
    %6 = vector.extract_strided_slice %3 {offsets = [0, 64], sizes = [32, 32], strides = [1, 1]} : vector<32x96xf32> to vector<32x32xf32>
    %7 = vector.shape_cast %4 : vector<32x32xf32> to vector<32x4x8xf32>
    %8 = tpu.transpose %7, [1, 0, 2] : vector<32x4x8xf32> -> vector<4x32x8xf32>
    %9 = vector.shape_cast %5 : vector<32x32xf32> to vector<32x4x8xf32>
    %10 = tpu.transpose %9, [1, 0, 2] : vector<32x4x8xf32> -> vector<4x32x8xf32>
    %11 = vector.shape_cast %6 : vector<32x32xf32> to vector<32x4x8xf32>
    %12 = tpu.transpose %11, [1, 0, 2] : vector<32x4x8xf32> -> vector<4x32x8xf32>
    %13 = vector.shape_cast %8 : vector<4x32x8xf32> to vector<16x8x8xf32>
    %14 = vector.shape_cast %10 : vector<4x32x8xf32> to vector<16x8x8xf32>
    %15 = vector.shape_cast %12 : vector<4x32x8xf32> to vector<16x8x8xf32>
    %cst_4 = arith.constant dense<0.000000e+00> : vector<16x8x8xf32>
    %16 = tpu.matmul %13, %14, %cst_4 {dimension_numbers = #tpu.dot_dimension_numbers<[2], [2], [1], [1], [0, 0, 0, 1, 1, 1], [0], [0]>} : vector<16x8x8xf32>, vector<16x8x8xf32>, vector<16x8x8xf32> -> vector<16x8x8xf32>
    %cst_5 = arith.constant dense<0xFF800000> : vector<16x8xf32>
    %17 = vector.multi_reduction <maximumf>, %16, %cst_5 [2] : vector<16x8x8xf32> to vector<16x8xf32>
    %18 = vector.shape_cast %17 : vector<16x8xf32> to vector<16x8x1xf32>
    %19 = vector.broadcast %18 : vector<16x8x1xf32> to vector<16x8x8xf32>
    %20 = arith.subf %16, %19 : vector<16x8x8xf32>
    %21 = math.exp %20 : vector<16x8x8xf32>
    %cst_6 = arith.constant dense<0.000000e+00> : vector<16x8xf32>
    %22 = vector.multi_reduction <add>, %21, %cst_6 [2] : vector<16x8x8xf32> to vector<16x8xf32>
    %23 = vector.shape_cast %22 : vector<16x8xf32> to vector<16x8x1xf32>
    %24 = tpu.reciprocal %23 {approx = true} : vector<16x8x1xf32> -> vector<16x8x1xf32>
    %25 = vector.broadcast %24 : vector<16x8x1xf32> to vector<16x8x8xf32>
    %26 = arith.mulf %21, %25 : vector<16x8x8xf32>
    %cst_7 = arith.constant dense<0.000000e+00> : vector<16x8x8xf32>
    %27 = tpu.matmul %26, %15, %cst_7 {dimension_numbers = #tpu.dot_dimension_numbers<[2], [1], [1], [2], [0, 0, 0, 1, 1, 2], [0], [0]>} : vector<16x8x8xf32>, vector<16x8x8xf32>, vector<16x8x8xf32> -> vector<16x8x8xf32>
    %28 = vector.shape_cast %27 : vector<16x8x8xf32> to vector<4x32x8xf32>
    %29 = tpu.transpose %28, [1, 0, 2] : vector<4x32x8xf32> -> vector<32x4x8xf32>
    %30 = vector.shape_cast %29 : vector<32x4x8xf32> to vector<32x32xf32>
    %c0_8 = arith.constant 0 : index
    %c0_9 = arith.constant 0 : index
    %31 = vector.load %arg4[%c0_8, %c0_9] : memref<32x32xf32, #tpu.memory_space<vmem>>, vector<32x32xf32>
    %cst_10 = arith.constant dense<0.000000e+00> : vector<32x32xf32>
    %32 = tpu.matmul %30, %31, %cst_10 {dimension_numbers = #tpu.dot_dimension_numbers<[1], [0], [0], [1], [0, 0, 1, 1], [], []>} : vector<32x32xf32>, vector<32x32xf32>, vector<32x32xf32> -> vector<32x32xf32>
    %c0_11 = arith.constant 0 : index
    %c0_12 = arith.constant 0 : index
    %33 = vector.load %arg5[%c0_11, %c0_12] : memref<1x32xf32, #tpu.memory_space<vmem>>, vector<1x32xf32>
    %34 = vector.broadcast %33 : vector<1x32xf32> to vector<32x32xf32>
    %35 = arith.addf %32, %34 : vector<32x32xf32>
    %c0_13 = arith.constant 0 : index
    %c0_14 = arith.constant 0 : index
    %c0_15 = arith.constant 0 : index
    %36 = vector.load %arg6[%c0_13, %c0_14, %c0_15] : memref<1x32x32xf32, #tpu.memory_space<vmem>>, vector<1x32x32xf32>
    %37 = vector.shape_cast %36 : vector<1x32x32xf32> to vector<32x32xf32>
    %38 = vector.shape_cast %35 : vector<32x32xf32> to vector<1x32x32xf32>
    tpu.vector_store %arg6[%c0_13, %c0_14, %c0_15], %38 {strides = array<i32>} : memref<1x32x32xf32, #tpu.memory_space<vmem>>, vector<1x32x32xf32>,
    return
  }
  func.func @transform_0(%arg0: i32, %arg1: i32) -> (i32, i32, i32) {
    %c0_i32 = arith.constant 0 : i32
    %c0_i32_0 = arith.constant 0 : i32
    return %arg0, %arg1, %c0_i32 : i32, i32, i32
  }
  func.func @transform_1(%arg0: i32, %arg1: i32) -> (i32, i32) {
    %c0_i32 = arith.constant 0 : i32
    %c0_i32_0 = arith.constant 0 : i32
    %c0_i32_1 = arith.constant 0 : i32
    return %c0_i32, %c0_i32_0 : i32, i32
  }
  func.func @transform_2(%arg0: i32, %arg1: i32) -> (i32, i32) {
    %c0_i32 = arith.constant 0 : i32
    %c0_i32_0 = arith.constant 0 : i32
    %c0_i32_1 = arith.constant 0 : i32
    return %c0_i32, %c0_i32_0 : i32, i32
  }
  func.func @transform_3(%arg0: i32, %arg1: i32) -> (i32, i32) {
    %c0_i32 = arith.constant 0 : i32
    %c0_i32_0 = arith.constant 0 : i32
    %c0_i32_1 = arith.constant 0 : i32
    return %c0_i32, %c0_i32_0 : i32, i32
  }
  func.func @transform_4(%arg0: i32, %arg1: i32) -> (i32, i32, i32) {
    %c0_i32 = arith.constant 0 : i32
    %c0_i32_0 = arith.constant 0 : i32
    return %arg0, %arg1, %c0_i32 : i32, i32, i32
  }
}

</mosaic_0001>

<bundles_post_ra>
// kernel: tpu_custom_call.1
= control target key start
LH: loop header
LB: loop body
LE: loop exit
PB: predicated region body
PF: predicated region fallthrough
CT: control target
= control target key end

     0   :  { %9 = vsyncpa [#allocation3], 0  ;;  %s7796_s0 = inlined_call_operand.hbm [shape: f32[2,32,32], index: 0, kind: input, shape index: {}]   ;;  %s7797_s1 = inlined_call_operand.hbm [shape: f32[32,96], index: 1, kind: input, shape index: {}]   ;;  %s7798_s2 = inlined_call_operand.hbm [shape: f32[32,32], index: 2, kind: input, shape index: {}]   ;;  %s7799_s3 = inlined_call_operand.vmem [shape: f32[1,32], index: 3, kind: input, shape index: {}]   ;;  %s7800_s4 = inlined_call_operand.hbm [shape: f32[2,32,32], index: 4, kind: output, shape index: {}]  }
   0x1   :  { %11 = vsyncpa [#allocation3 + $0x1], 0 }
   0x2   :  { %12 = vsyncpa [#allocation6], 0 }
   0x3   :  { %13 = vsyncpa [#allocation4], 0 }
   0x4   :  { %15 = vsyncpa [#allocation4 + $0x1], 0  ;;  %s6314_s15 = smov 0   ;;  %s6316_s16 = smov 0  }
   0x5   :  { %s6318_s17 = smov 0   ;;  %s6320_s18 = smov 0  }
   0x6   :  { %s6322_s19 = smov 0   ;;  %s6324_s20 = smov 0  }
   0x7 LB: > { %s5540_s21 = sadd.s32 4294967295, %s6268_s20   ;;  %s5541_s22 = sadd.s32 4294967294, %s6268_s20   ;;  %s6268_s20 = sphi %s6324_s20, %s21_s20   ;;  %s6264_s19 = sphi %s6322_s19, %s7836_s19   ;;  %s6260_s18 = sphi %s6320_s18, %s7835_s18   ;;  %s6256_s17 = sphi %s6318_s17, %s7834_s17   ;;  %s6252_s16 = sphi %s6316_s16, %s7833_s16   ;;  %s6248_s15 = sphi %s6314_s15, %s7832_s15  }
   0x8   : > { %p55_p0 = scmp.ne.s32.totalorder %s6252_s16, %s6248_s15  ;;  %p6348_p1 = scmp.eq.s32.totalorder %s5540_s21, 0 }
   0x9   : > { %p6352_p2 = scmp.eq.s32.totalorder %s5540_s21, 1  ;;  %p150_p3 = scmp.eq.s32.totalorder %s5541_s22, 1 }
   0xa   : > { %s7805_s23 = scalar_select %p6348_p1, 1, 0 }
   0xb   : > { %p6358_p4 = por %p6348_p1, %p55_p0  ;;  %p5542_p5 = scmp.ge.s32.totalorder %s6268_s20, 1 }
   0xc   : > { %p6363_p6 = por %p150_p3, %p55_p0  ;;  %p157_p7 = scmp.lt.s32.totalorder %s6268_s20, 3 }
   0xd   : > { %s7807_s25 = scalar_select %p6358_p4, 1, 0 }
   0xe   : > { %s7808_s26 = scalar_select %p6363_p6, 1, 0 }
   0xf   : > { %p6368_p8 = pnand %p5542_p5, %p157_p7  ;;  %s6270_s28 = smov [#allocation5]  }
  0x10   : > { %s169_s29 = sshll.u32 %s6270_s28, 4  ;;  %s6271_s5 = smov [#allocation7]   ;;  %s6372_s29 = int_to_ptr.vmem [resolvable:$true] %s169_s29 }
  0x11   : > { %p5946_p9 = pneg %p6368_p8  ;;  %s182_s6 = sshll.u32 %s6271_s5, 4  ;;  %s6383_s6 = int_to_ptr.vmem [resolvable:$true] %s182_s6 }
  0x12   : > { %s6096_s9 = scalar_lea.hbm %s7797_s1, 512 }
  0x13   : > { %p6379_p11 = pnand %p5946_p9, %p6348_p1  ;;  %p6097_p12 = scmp.ne.s32.totalorder %s7797_s1, %s6096_s9 }
  0x14   : > { %p6103_p5 = scmp.lt.u32.totalorder %s6096_s9, %s7797_s1 }
  0x15   : > { %p6098_p13 = pneg %p6379_p11 }
  0x17   : > { %p6099_p0 = pnand %p6098_p13, %p6097_p12 }
  0x19   : > { %p6100_p3 = pneg %p6099_p0 }
  0x1b   : > { %p6105_p7 = pnand %p6103_p5, %p6100_p3 }
  0x1d   : > { %6108 = shalt.err (!%p6105_p7)
}
  0x1e   : > { %s6109_s14 = scalar_lea.vmem %s6372_s29, 512  ;;  %p6117_p1 = scmp.lt.s32.totalorder %s6372_s29, %s6372_s29 }
  0x1f   : > { %p6110_p9 = scmp.ne.s32.totalorder %s6372_s29, %s6109_s14  ;;  %p6118_p12 = scmp.lt.s32.totalorder %s6109_s14, %s6109_s14 }
  0x21   : > { %p6112_p10 = pnand %p6110_p9, %p6098_p13  ;;  %p6119_p0 = por %p6118_p12, %p6117_p1 }
  0x23   : > { %p6113_p6 = pneg %p6112_p10 }
  0x25   : > { %p6120_p4 = pnand %p6119_p0, %p6113_p6 }
  0x27   : > { %6123 = shalt.err (!%p6120_p4)
}
  0x28   : > { %s6272_s21 = smov 128   ;;  %s6273_s22 = smov 8  }
  0x29   : > { %5949 = dma.hbm_to_vmem [thread:$0]  (!%p6379_p11), %s7797_s1, 512, %s6372_s29, [#allocation6], %s6272_s21, %s6272_s21, %s6273_s22  }
  0x2a   : > { %s6124_s9 = scalar_lea.hbm %s7798_s2, 512 }
  0x2b   : > { %p6125_p1 = scmp.ne.s32.totalorder %s7798_s2, %s6124_s9  ;;  %p6131_p10 = scmp.lt.u32.totalorder %s6124_s9, %s7798_s2 }
  0x2d   : > { %p6127_p4 = pnand %p6125_p1, %p6098_p13 }
  0x2f   : > { %p6128_p6 = pneg %p6127_p4 }
  0x31   : > { %p6133_p3 = pnand %p6131_p10, %p6128_p6 }
  0x33   : > { %6136 = shalt.err (!%p6133_p3)
}
  0x34   : > { %s6137_s29 = scalar_lea.vmem %s6383_s6, 512  ;;  %p6145_p12 = scmp.lt.s32.totalorder %s6383_s6, %s6383_s6 }
  0x35   : > { %p6138_p5 = scmp.ne.s32.totalorder %s6383_s6, %s6137_s29  ;;  %p6146_p0 = scmp.lt.s32.totalorder %s6137_s29, %s6137_s29 }
  0x37   : > { %p6140_p7 = pnand %p6138_p5, %p6098_p13  ;;  %p6147_p1 = por %p6146_p0, %p6145_p12 }
  0x39   : > { %p6141_p9 = pneg %p6140_p7 }
  0x3b   : > { %p6148_p4 = pnand %p6147_p1, %p6141_p9 }
  0x3d   : > { %6151 = shalt.err (!%p6148_p4)
}
  0x3e   : > { %5952 = dma.hbm_to_vmem [thread:$0]  (!%p6379_p11), %s7798_s2, 512, %s6383_s6, [#allocation6], %s6272_s21, %s6272_s21, %s6273_s22  }
  0x3f   : > { %s33_s30 = sadd.s32 1, %s6264_s19  ;;  %s42_s5 = sadd.s32 1, %s6256_s17 }
  0x40   : > { %p35_p13 = scmp.ge.s32.totalorder %s33_s30, 2  ;;  %p49_p6 = scmp.ne.s32.totalorder %s6256_s17, %s6252_s16 }
  0x41   : > { %p50_p10 = scmp.eq.s32.totalorder %s6268_s20, 0  ;;  %p5963_p3 = scmp.lt.s32.totalorder %s6268_s20, 2 }
  0x42   : > { %s7838_s30 = smov (%p35_p13, %s33_s30), 0  ;;  %p6453_p7 = por %p6352_p2, %p49_p6 }
  0x43   : > { %p51_p5 = por %p50_p10, %p49_p6  ;;  %s37_s8 = ssub.s32 %s6264_s19, %s7838_s30 }
  0x44   : > { %s7811_s7 = scalar_select %p6453_p7, 1, 0 }
  0x45   : > { %s199_s9 = sand.u32 1, %s6256_s17   ;;  %p40_p9 = scmp.eq.s32.totalorder %s37_s8, 0 }
  0x46   : > { %s5546_s6 = sshll.u32 %s199_s9, 5  ;;  %s5648_s10 = sshll.u32 %s6264_s19, 9 }
  0x47   : > { %s6462_s11 = scalar_select %p40_p9, %s6256_s17, %s42_s5  }
  0x48   : > { %s6467_s29 = scalar_lea.hbm %s7796_s0, %s5648_s10  ;;  %s203_s24 = scalar_lea.vmem [#allocation2], %s5546_s6 }
  0x49   : > { %s212_s14 = sshll.u32 %s203_s24, 4  ;;  %p6471_p2 = pnand %p5963_p3, %p51_p5  ;;  %s6475_s14 = int_to_ptr.vmem [resolvable:$true] %s212_s14 }
  0x4a   : > { %s6477_s5 = scalar_lea.sflag [#allocation3], %s199_s9  ;;  %s6152_s8 = scalar_lea.hbm %s6467_s29, 512 }
  0x4b   : > { %p6153_p11 = scmp.ne.s32.totalorder %s6467_s29, %s6152_s8  ;;  %p6154_p12 = pneg %p6471_p2 }
  0x4c   : > { %s6157_s12 = scalar_lea.hbm %s7796_s0, 1024  ;;  %p6158_p4 = scmp.lt.u32.totalorder %s6467_s29, %s7796_s0 }
  0x4d   : > { %p6155_p0 = pnand %p6154_p12, %p6153_p11  ;;  %p6159_p13 = scmp.lt.u32.totalorder %s6157_s12, %s6152_s8 }
  0x4e   : > { %p6161_p10 = scmp.lt.u32.totalorder %s6152_s8, %s6467_s29 }
  0x4f   : > { %p6156_p1 = pneg %p6155_p0  ;;  %p6160_p6 = por %p6159_p13, %p6158_p4 }
  0x51   : > { %p6162_p3 = por %p6161_p10, %p6160_p6 }
  0x53   : > { %p6163_p5 = pnand %p6162_p3, %p6156_p1 }
  0x55   : > { %6166 = shalt.err (!%p6163_p5)
}
  0x56   : > { %s6167_s9 = scalar_lea.vmem %s6475_s14, 512  ;;  %s6274_s6 = smov [#allocation2]  }
  0x57   : > { %p6168_p9 = scmp.ne.s32.totalorder %s6475_s14, %s6167_s9  ;;  %s6172_s10 = sshll.u32 %s6274_s6, 4  ;;  %s6173_s10 = int_to_ptr.vmem [resolvable:$false] %s6172_s10 }
  0x58   : > { %s6174_s13 = scalar_lea.vmem %s6173_s10, 1024  ;;  %p6175_p7 = scmp.lt.s32.totalorder %s6475_s14, %s6173_s10 }
  0x59   : > { %p6170_p11 = pnand %p6168_p9, %p6154_p12  ;;  %p6176_p4 = scmp.lt.s32.totalorder %s6174_s13, %s6167_s9 }
  0x5b   : > { %p6171_p0 = pneg %p6170_p11  ;;  %p6177_p13 = por %p6176_p4, %p6175_p7 }
  0x5d   : > { %p6178_p6 = pnand %p6177_p13, %p6171_p0 }
  0x5f   : > { %6181 = shalt.err (!%p6178_p6)
}
  0x60   : > { %5956 = dma.hbm_to_vmem [thread:$0]  (!%p6471_p2), %s6467_s29, 512, %s6475_s14, %s6477_s5, %s6272_s21, %s6272_s21, %s6273_s22  }
  0x61   : > { %224 = sbr.rel (%p6368_p8) target bundleno = 1797 (0x705), region = 36  ;;  %s6511_s8 = sand.u32 (!%p6368_p8), 1, %s6252_s16  }
  0x62   : > { %s5550_s12 = sshll.u32 (!%p6368_p8), %s6511_s8, 5  ;;  %s227_s24 = scalar_lea.sflag (!%p6368_p8), [#allocation3], %s6511_s8 }
  0x63   : > { %s230_s28 = scalar_lea.vmem (!%p6368_p8), [#allocation2], %s5550_s12  ;;  %p7813_p7 = scmp.ne.s32.totalorder (!%p6368_p8), %s7807_s25, 0 }
  0x68   : > { %6235 = dma.done.wait (%p7813_p7), %s227_s24, 512  }
  0x69   : > { %6237 = vsyncadd (%p7813_p7), %s227_s24, 4294966784  ;;  %p7814_p2 = scmp.ne.s32.totalorder %s7805_s23, 0 }
  0x6b   : > { %6239 = dma.done.wait (%p7814_p2), [#allocation6], 1024  }
  0x6c   : > { %6241 = vsyncadd (%p7814_p2), [#allocation6], 4294966272  ;;  %vm273_vm0 = vcmask 261120   ;;  %v269_v0 = vld [vmem:[#allocation5] sm:$0xff]  ;;  %v270_v1 = vld [vmem:[#allocation5 + $0x8] sm:$0xff]  ;;  %s6275_s23 = smov 112   ;;  %v416_v16 = vlaneseq }
  0x6d   : > { %v271_v2 = vld [vmem:[#allocation5 + $0x10] sm:$0xff]  ;;  %v5918_v3 = vpack.c.bf16 %v270_v1, %v269_v0  ;;  %v272_v4 = vld [vmem:[#allocation5 + $0x18] sm:$0xff]  ;;  %v265_v5 = vld [vmem:[%s230_s28] sm:$0xff]  ;;  %s6276_s25 = smov 120   ;;  %s6277_s27 = smov 104   ;;  %vm6283_vm1 = vmmov 0  }
  0x6e   : > { %v5922_v6 = vpack.c.bf16 %v272_v4, %v271_v2  ;;  %5738 = vmatprep.mubr.msk.f32.mxu0 %vm273_vm0, %v265_v5  ;;  %v266_v7 = vld [vmem:[%s230_s28 + $0x8] sm:$0xff]  ;;  %v267_v8 = vld [vmem:[%s230_s28 + $0x10] sm:$0xff]  ;;  %v268_v9 = vld [vmem:[%s230_s28 + $0x18] sm:$0xff]  ;;  %s6278_s21 = smov 96   ;;  %v6279_v14 = vmov 1983009808  }
  0x6f   : > { %5919 = vmatprep.subr.bf16.mxu0 %v5918_v3  ;;  %v414_v15 = vunpack.c.l.s4 %v6279_v14  ;;  %v6280_v17 = vmov 1934713408   ;;  %v417_v20 = vshrl.u32 %v416_v16, 7  ;;  %s6281_s22 = smov 64   ;;  %vm2139_vm2 = vcmask 64512   ;;  %s6284_s29 = smov 8  }
  0x70   : > { %5921 = vmatpush3.bf16.msra.mxu0 %v5918_v3  ;;  %v446_v18 = vunpack.c.l.s4 %v6280_v17  ;;  %s6285_s14 = smov 16   ;;  %s6286_s5 = smov 24   ;;  %vm5296_vm3 = vcmask 130048   ;;  %vm5301_vm4 = vcmask 195584  }
  0x71   : > { %5923 = vmatprep.subr.bf16.mxu0 %v5922_v6  ;;  %v415_v19 = vunpack.c.0.s8 %v414_v15  ;;  %s262_s10 = scalar_lea.vmem [#allocation8], %s5550_s12  ;;  %s5649_s24 = sshll.u32 %s6260_s18, 9 }
  0x72   : > { %v447_v25 = vunpack.c.0.s8 %v446_v18  ;;  %s5434_s13 = sshll.u32 %s262_s10, 4  ;;  %s7744_s12 = scalar_lea.hbm %s7800_s4, %s5649_s24  ;;  %s7739_s13 = int_to_ptr.vmem [resolvable:$true] %s5434_s13 }
  0x73   : > { %v6567_v26 = vsub.s32 %v415_v19, %v417_v20  ;;  %s6182_s18 = scalar_lea.vmem %s7739_s13, 512  ;;  %p7829_p12 = scmp.ne.s32.totalorder %s7811_s7, 0 }
  0x74   : > { %5925 = vmatpush3.bf16.msra.mxu0 %v5922_v6  ;;  %v6581_v31 = vsub.s32 %v447_v25, %v417_v20  ;;  %p6183_p8 = scmp.ne.s32.totalorder %s7739_s13, %s6182_s18 }
  0x76   : > { %p6184_p1 = pnand %p6183_p8, %p7829_p12 }
  0x77   : > { %5739 = vmatmul.mubr.msk.f32.vlgmr.msra.gmra.mrb[0].mxu0 %vm273_vm0, %v266_v7 }
  0x78   : > { %5741 = vmatprep.mubr.msk.f32.mxu0 %vm273_vm0, %v267_v8  ;;  %p6185_p10 = pneg %p6184_p1 }
  0x7b   : > { %5742 = vmatmul.mubr.msk.f32.gmra.mrb[2].mxu0 %vm273_vm0, %v268_v9 }
 0x14a   : > { %v6529_v10 = vpop.f32.mrb[0].mxu0 }
 0x14b   : > { %389 = vrot.lane.b32.xlu1 %v6529_v10, %s6275_s23  ;;  %377 = vrot.lane.b32.xlu0 %v6529_v10, %s6276_s25  ;;  %v6533_v11 = vpop.f32.mrb[1].mxu0 }
 0x14e   : > { %v6535_v12 = vpop.f32.mrb[2].mxu0 }
 0x14f   : > { %401 = vrot.lane.b32.xlu1 %v6529_v10, %s6277_s27  ;;  %375 = vrot.lane.b32.xlu0 %v6533_v11, %s6276_s25  ;;  %v6539_v13 = vpop.f32.mrb[3].mxu0 }
 0x153   : > { %387 = vrot.lane.b32.xlu1 %v6533_v11, %s6275_s23  ;;  %399 = vrot.lane.b32.xlu0 %v6533_v11, %s6277_s27 }
 0x157   : > { %381 = vrot.lane.b32.xlu1 %v6535_v12, %s6276_s25  ;;  %379 = vrot.lane.b32.xlu0 %v6539_v13, %s6276_s25  ;;  %s5419_s25 = scalar_lea.sflag [#allocation4], %s6511_s8 }
 0x15b   : > { %391 = vrot.lane.b32.xlu1 %v6539_v13, %s6275_s23  ;;  %403 = vrot.lane.b32.xlu0 %v6539_v13, %s6277_s27 }
 0x15f   : > { %405 = vrot.lane.b32.xlu1 %v6535_v12, %s6277_s27  ;;  %393 = vrot.lane.b32.xlu0 %v6535_v12, %s6275_s23  ;;  %s6287_s27 = smov [#allocation8]  }
 0x163   : > { %957 = vrot.lane.b32.xlu1 %v6529_v10, %s6278_s21  ;;  %955 = vrot.lane.b32.xlu0 %v6533_v11, %s6278_s21 }
 0x167   : > { %961 = vrot.lane.b32.xlu0 %v6535_v12, %s6278_s21 }
 0x16b   : > { %959 = vrot.lane.b32.xlu0 %v6539_v13, %s6278_s21 }
 0x1bd   : > { %v6557_v21 = vpop.permute.xlu1 %389  ;;  %v6559_v22 = vpop.permute.xlu0 %377 }
 0x1be   : > { %v479_v23 = vcombine.low %v6529_v10, %v6557_v21  ;;  %v480_v24 = vcombine.high %v6529_v10, %v6557_v21  ;;  %965 = vrot.lane.b32.xlu1 %v6559_v22, %s6278_s21 }
 0x1c0   : > { %v487_v32 = vrot.slane %v479_v23, %v6567_v26  ;;  %v494_v33 = vrot.slane %v480_v24, %v6567_v26 }
 0x1c1   : > { %v6569_v27 = vpop.permute.xlu1 %401  ;;  %v6571_v28 = vpop.permute.xlu0 %375 }
 0x1c2   : > { %v495_v29 = vcombine.low %v6559_v22, %v6569_v27  ;;  %v496_v30 = vcombine.high %v6559_v22, %v6569_v27  ;;  %973 = vrot.lane.b32.xlu1 %v6557_v21, %s6278_s21  ;;  %963 = vrot.lane.b32.xlu0 %v6571_v28, %s6278_s21 }
 0x1c4   : > { %v503_v34 = vrot.slane %v495_v29, %v6567_v26  ;;  %v510_v35 = vrot.slane %v496_v30, %v6567_v26 }
 0x1c5   : > { %v6587_v36 = vpop.permute.xlu1 %387  ;;  %v6589_v37 = vpop.permute.xlu0 %399 }
 0x1c6   : > { %v511_v38 = vcombine.low %v487_v32, %v503_v34  ;;  %v512_v39 = vcombine.high %v487_v32, %v503_v34  ;;  %v527_v40 = vcombine.low %v494_v33, %v510_v35  ;;  %v528_v41 = vcombine.high %v494_v33, %v510_v35  ;;  %981 = vrot.lane.b32.xlu1 %v6569_v27, %s6278_s21 }
 0x1c7   : > { %v411_v42 = vcombine.low %v6533_v11, %v6587_v36  ;;  %v412_v43 = vcombine.high %v6533_v11, %v6587_v36  ;;  %v427_v44 = vcombine.low %v6571_v28, %v6589_v37  ;;  %v428_v45 = vcombine.high %v6571_v28, %v6589_v37  ;;  %971 = vrot.lane.b32.xlu0 %v6587_v36, %s6278_s21 }
 0x1c8   : > { %v519_v46 = vrot.slane %v511_v38, %v6581_v31  ;;  %v526_v47 = vrot.slane %v512_v39, %v6581_v31  ;;  %v6606_v48 = vrot.slane %v527_v40, %v6581_v31  ;;  %v6609_v49 = vrot.slane %v528_v41, %v6581_v31 }
 0x1c9   : > { %v419_v50 = vrot.slane %v411_v42, %v6567_v26  ;;  %v426_v51 = vrot.slane %v412_v43, %v6567_v26  ;;  %v435_v52 = vrot.slane %v427_v44, %v6567_v26  ;;  %v442_v53 = vrot.slane %v428_v45, %v6567_v26  ;;  %v6615_v54 = vpop.permute.xlu1 %381  ;;  %v6617_v55 = vpop.permute.xlu0 %379 }
 0x1ca   : > { %v751_v56 = vcombine.low %v519_v46, %v526_v47  ;;  %v5560_v57 = vcombine.high %v519_v46, %v526_v47  ;;  %v767_v58 = vcombine.low %v6606_v48, %v6609_v49  ;;  %v5561_v59 = vcombine.high %v6606_v48, %v6609_v49  ;;  %969 = vrot.lane.b32.xlu1 %v6615_v54, %s6278_s21 }
 0x1cb   : > { %v443_v60 = vcombine.low %v419_v50, %v435_v52  ;;  %v444_v61 = vcombine.high %v419_v50, %v435_v52  ;;  %v459_v62 = vcombine.low %v426_v51, %v442_v53  ;;  %v460_v63 = vcombine.high %v426_v51, %v442_v53  ;;  %979 = vrot.lane.b32.xlu0 %v6589_v37, %s6278_s21 }
 0x1cc   : > { %v758_v41 = vrot.slane %v751_v56, %v6567_v26  ;;  %v766_v42 = vrot.slane %v5560_v57, %v6567_v26  ;;  %v6282_v53 = vmov 0.0   ;;  %v774_v56 = vrot.slane %v767_v58, %v6567_v26 }
 0x1cd   : > { %v451_v0 = vrot.slane %v443_v60, %v6581_v31  ;;  %v458_v1 = vrot.slane %v444_v61, %v6581_v31  ;;  %v467_v2 = vrot.slane %v459_v62, %v6581_v31  ;;  %v474_v3 = vrot.slane %v460_v63, %v6581_v31  ;;  %v6631_v4 = vpop.permute.xlu1 %391  ;;  %v6633_v5 = vpop.permute.xlu0 %403  ;;  %5749 = vmatprep.subr.mxu1 %v6282_v53 }
 0x1ce   : > { %v547_v6 = vcombine.low %v6539_v13, %v6631_v4  ;;  %v548_v7 = vcombine.high %v6539_v13, %v6631_v4  ;;  %v563_v8 = vcombine.low %v6617_v55, %v6633_v5  ;;  %v564_v9 = vcombine.high %v6617_v55, %v6633_v5  ;;  %967 = vrot.lane.b32.xlu1 %v6617_v55, %s6278_s21 }
 0x1cf   : > { %v683_v14 = vcombine.low %v451_v0, %v458_v1  ;;  %v5558_v15 = vcombine.high %v451_v0, %v458_v1  ;;  %v699_v16 = vcombine.low %v467_v2, %v474_v3  ;;  %v5559_v17 = vcombine.high %v467_v2, %v474_v3  ;;  %975 = vrot.lane.b32.xlu0 %v6631_v4, %s6278_s21 }
 0x1d0   : > { %v555_v18 = vrot.slane %v547_v6, %v6567_v26  ;;  %v562_v19 = vrot.slane %v548_v7, %v6567_v26  ;;  %v571_v20 = vrot.slane %v563_v8, %v6567_v26  ;;  %v578_v23 = vrot.slane %v564_v9, %v6567_v26  ;;  %5744 = vmatprep.subr.mxu0 %v6282_v53 }
 0x1d1   : > { %v6652_v24 = vrot.slane %v683_v14, %v6567_v26  ;;  %v6655_v25 = vrot.slane %v5558_v15, %v6567_v26  ;;  %v6658_v29 = vrot.slane %v699_v16, %v6567_v26  ;;  %v6661_v30 = vrot.slane %v5559_v17, %v6567_v26  ;;  %v6663_v32 = vpop.permute.xlu0 %393  ;;  %v6679_v47 = vpop.permute.xlu1 %405  ;;  %5751 = vmatprep.mubr.msk.f32.mxu1 %vm6283_vm1, %v6282_v53 }
 0x1d2   : > { %v579_v33 = vcombine.low %v555_v18, %v571_v20  ;;  %v580_v34 = vcombine.high %v555_v18, %v571_v20  ;;  %v595_v35 = vcombine.low %v562_v19, %v578_v23  ;;  %v596_v38 = vcombine.high %v562_v19, %v578_v23  ;;  %983 = vrot.lane.b32.xlu1 %v6633_v5, %s6278_s21 }
 0x1d3   : > { %v715_v39 = vcombine.low %v6652_v24, %v6655_v25  ;;  %v731_v40 = vcombine.low %v6658_v29, %v6661_v30  ;;  %977 = vrot.lane.b32.xlu0 %v6663_v32, %s6278_s21  ;;  %v783_v52 = vcombine.low %v758_v41, %v766_v42  ;;  %v782_v57 = vrot.slane %v5561_v59, %v6567_v26 }
 0x1d4   : > { %v587_v43 = vrot.slane %v579_v33, %v6581_v31  ;;  %v594_v44 = vrot.slane %v580_v34, %v6581_v31  ;;  %v603_v45 = vrot.slane %v595_v35, %v6581_v31  ;;  %v610_v46 = vrot.slane %v596_v38, %v6581_v31  ;;  %5746 = vmatprep.mubr.msk.f32.mxu0 %vm6283_vm1, %v6282_v53 }
 0x1d5   : > { %v6698_v58 = vrot.slane %v783_v52, %v6581_v31  ;;  %v799_v59 = vcombine.low %v774_v56, %v782_v57  ;;  %v800_v0 = vcombine.high %v774_v56, %v782_v57  ;;  %v6705_v1 = vrot.slane %v715_v39, %v6581_v31  ;;  %v958_v57 = vpop.permute.xlu1 %957 }
 0x1d6   : > { %v819_v48 = vcombine.low %v587_v43, %v594_v44  ;;  %v5562_v49 = vcombine.high %v587_v43, %v594_v44  ;;  %v835_v50 = vcombine.low %v603_v45, %v610_v46  ;;  %v5563_v51 = vcombine.high %v603_v45, %v610_v46  ;;  %985 = vrot.lane.b32.xlu1 %v6679_v47, %s6278_s21  ;;  %v956_v43 = vpop.permute.xlu0 %955  ;;  %s6186_s21 = sshll.u32 %s6287_s27, 4  ;;  %s6187_s21 = int_to_ptr.vmem [resolvable:$false] %s6186_s21 }
 0x1d7   : > { %1555 = vrot.lane.b32.xlu0 %v6571_v28, %s6281_s22  ;;  %v784_v28 = vcombine.high %v758_v41, %v766_v42  ;;  %v732_v15 = vcombine.high %v6658_v29, %v6661_v30  ;;  %v6741_v17 = vrot.slane %v800_v0, %v6581_v31  ;;  %v631_v39 = vcombine.low %v6615_v54, %v6679_v47  ;;  %p6189_p3 = scmp.lt.s32.totalorder %s7739_s13, %s6187_s21 }
 0x1d8   : > { %v826_v60 = vrot.slane %v819_v48, %v6567_v26  ;;  %v834_v61 = vrot.slane %v5562_v49, %v6567_v26  ;;  %v842_v62 = vrot.slane %v835_v50, %v6567_v26  ;;  %v850_v63 = vrot.slane %v5563_v51, %v6567_v26 }
 0x1d9   : > { %v6738_v16 = vrot.slane %v784_v28, %v6581_v31  ;;  %v6751_v20 = vrot.slane %v732_v15, %v6581_v31  ;;  %v615_v41 = vcombine.low %v6535_v12, %v6663_v32 }
 0x1da   : > { %1547 = vrot.lane.b32.xlu1 %v6533_v11, %s6281_s22  ;;  %v6710_v11 = vrot.slane %v799_v59, %v6581_v31  ;;  %v851_v2 = vcombine.low %v826_v60, %v834_v61  ;;  %v867_v3 = vcombine.low %v842_v62, %v850_v63  ;;  %v6797_v56 = vpop.permute.xlu0 %961 }
 0x1db   : > { %1551 = vrot.lane.b32.xlu0 %v6539_v13, %s6281_s22  ;;  %v6713_v13 = vrot.slane %v731_v40, %v6581_v31  ;;  %v632_v40 = vcombine.high %v6615_v54, %v6679_v47 }
 0x1dc   : > { %v815_v6 = vcombine.low %v6698_v58, %v6710_v11  ;;  %v6724_v8 = vrot.slane %v851_v2, %v6581_v31  ;;  %v6727_v9 = vrot.slane %v867_v3, %v6581_v31 }
 0x1dd   : > { %v646_v42 = vrot.slane %v632_v40, %v6567_v26 }
 0x1de   : > { %1563 = vrot.lane.b32.xlu1 %v6587_v36, %s6281_s22  ;;  %v747_v36 = vcombine.low %v6705_v1, %v6713_v13  ;;  %v883_v18 = vcombine.low %v6724_v8, %v6727_v9  ;;  %v6799_v28 = vpop.permute.xlu0 %959 }
 0x1df   : > { %1567 = vrot.lane.b32.xlu0 %v6631_v4, %s6281_s22  ;;  %v716_v4 = vcombine.high %v6652_v24, %v6655_v25  ;;  %v852_v24 = vcombine.high %v826_v60, %v834_v61  ;;  %v868_v25 = vcombine.high %v842_v62, %v850_v63 }
 0x1e1   : > { %v6760_v30 = vrot.slane %v852_v24, %v6581_v31  ;;  %v6765_v34 = vrot.slane %v868_v25, %v6581_v31 }
 0x1e2   : > { %1571 = vrot.lane.b32.xlu1 %v6589_v37, %s6281_s22  ;;  %v6748_v37 = vrot.slane %v716_v4, %v6581_v31 }
 0x1e6   : > { %1549 = vrot.lane.b32.xlu1 %v6529_v10, %s6281_s22 }
 0x1ea   : > { %1557 = vrot.lane.b32.xlu1 %v6559_v22, %s6281_s22  ;;  %v616_v22 = vcombine.high %v6535_v12, %v6663_v32 }
 0x1ee   : > { %1565 = vrot.lane.b32.xlu1 %v6557_v21, %s6281_s22  ;;  %v639_v21 = vrot.slane %v631_v39, %v6567_v26 }
 0x1f2   : > { %1573 = vrot.lane.b32.xlu1 %v6569_v27, %s6281_s22  ;;  %v623_v27 = vrot.slane %v615_v41, %v6567_v26 }
 0x1f4   : > { %v647_v44 = vcombine.low %v623_v27, %v639_v21  ;;  %v648_v45 = vcombine.high %v623_v27, %v639_v21 }
 0x1f6   : > { %1559 = vrot.lane.b32.xlu1 %v6617_v55, %s6281_s22  ;;  %v630_v55 = vrot.slane %v616_v22, %v6567_v26  ;;  %v655_v49 = vrot.slane %v647_v44, %v6581_v31  ;;  %v662_v50 = vrot.slane %v648_v45, %v6581_v31 }
 0x1f8   : > { %v663_v46 = vcombine.low %v630_v55, %v646_v42  ;;  %v664_v48 = vcombine.high %v630_v55, %v646_v42  ;;  %v887_v60 = vcombine.low %v655_v49, %v662_v50  ;;  %v5564_v61 = vcombine.high %v655_v49, %v662_v50 }
 0x1fa   : > { %v671_v51 = vrot.slane %v663_v46, %v6581_v31  ;;  %v678_v52 = vrot.slane %v664_v48, %v6581_v31  ;;  %v894_v0 = vrot.slane %v887_v60, %v6567_v26  ;;  %v902_v2 = vrot.slane %v5564_v61, %v6567_v26 }
 0x1fc   : > { %v903_v62 = vcombine.low %v671_v51, %v678_v52  ;;  %v5565_v63 = vcombine.high %v671_v51, %v678_v52  ;;  %v919_v25 = vcombine.low %v894_v0, %v902_v2 }
 0x1fe   : > { %v910_v3 = vrot.slane %v903_v62, %v6567_v26  ;;  %v918_v4 = vrot.slane %v5565_v63, %v6567_v26  ;;  %v6806_v55 = vrot.slane %v919_v25, %v6581_v31 }
 0x200   : > { %v935_v39 = vcombine.low %v910_v3, %v918_v4 }
 0x202   : > { %v6809_v44 = vrot.slane %v935_v39, %v6581_v31 }
 0x230   : > { %v966_v59 = vpop.permute.xlu1 %965 }
 0x234   : > { %v974_v15 = vpop.permute.xlu1 %973  ;;  %v964_v24 = vpop.permute.xlu0 %963 }
 0x235   : > { %v1071_v40 = vcombine.low %v958_v57, %v974_v15  ;;  %v1072_v41 = vcombine.high %v958_v57, %v974_v15 }
 0x237   : > { %v1079_v45 = vrot.slane %v1071_v40, %v6567_v26  ;;  %v1086_v46 = vrot.slane %v1072_v41, %v6567_v26  ;;  %v920_v41 = vcombine.high %v894_v0, %v902_v2  ;;  %v936_v0 = vcombine.high %v910_v3, %v918_v4 }
 0x238   : > { %v982_v22 = vpop.permute.xlu1 %981 }
 0x239   : > { %v1087_v21 = vcombine.low %v966_v59, %v982_v22  ;;  %v1088_v42 = vcombine.high %v966_v59, %v982_v22  ;;  %v972_v27 = vpop.permute.xlu0 %971  ;;  %v6843_v10 = vrot.slane %v936_v0, %v6581_v31 }
 0x23a   : > { %v1003_v50 = vcombine.low %v956_v43, %v972_v27  ;;  %v1004_v51 = vcombine.high %v956_v43, %v972_v27 }
 0x23b   : > { %v1095_v48 = vrot.slane %v1087_v21, %v6567_v26  ;;  %v1102_v49 = vrot.slane %v1088_v42, %v6567_v26 }
 0x23c   : > { %v6815_v52 = vpop.permute.xlu1 %969  ;;  %v1011_v22 = vrot.slane %v1003_v50, %v6567_v26  ;;  %v1018_v43 = vrot.slane %v1004_v51, %v6567_v26 }
 0x23d   : > { %v1103_v57 = vcombine.low %v1079_v45, %v1095_v48  ;;  %v1104_v60 = vcombine.high %v1079_v45, %v1095_v48  ;;  %v1119_v61 = vcombine.low %v1086_v46, %v1102_v49  ;;  %v1120_v62 = vcombine.high %v1086_v46, %v1102_v49  ;;  %v980_v63 = vpop.permute.xlu0 %979 }
 0x23e   : > { %v1019_v59 = vcombine.low %v964_v24, %v980_v63  ;;  %v1020_v15 = vcombine.high %v964_v24, %v980_v63 }
 0x23f   : > { %v1111_v25 = vrot.slane %v1103_v57, %v6581_v31  ;;  %v1118_v39 = vrot.slane %v1104_v60, %v6581_v31  ;;  %v6826_v45 = vrot.slane %v1119_v61, %v6581_v31  ;;  %v6829_v24 = vrot.slane %v1120_v62, %v6581_v31 }
 0x240   : > { %v1027_v21 = vrot.slane %v1019_v59, %v6567_v26  ;;  %v1034_v42 = vrot.slane %v1020_v15, %v6567_v26  ;;  %v968_v27 = vpop.permute.xlu1 %967  ;;  %v6836_v61 = vrot.slane %v920_v41, %v6581_v31 }
 0x241   : > { %v976_v46 = vpop.permute.xlu0 %975  ;;  %v1343_v57 = vcombine.low %v1111_v25, %v1118_v39  ;;  %v5569_v41 = vcombine.high %v6826_v45, %v6829_v24 }
 0x242   : > { %v1035_v2 = vcombine.low %v1011_v22, %v1027_v21  ;;  %v1036_v49 = vcombine.high %v1011_v22, %v1027_v21  ;;  %v1051_v50 = vcombine.low %v1018_v43, %v1034_v42  ;;  %v1052_v51 = vcombine.high %v1018_v43, %v1034_v42 }
 0x243   : > { %v1139_v60 = vcombine.low %v6799_v28, %v976_v46  ;;  %v1140_v63 = vcombine.high %v6799_v28, %v976_v46  ;;  %v5568_v22 = vcombine.high %v1111_v25, %v1118_v39  ;;  %v1359_v28 = vcombine.low %v6826_v45, %v6829_v24 }
 0x244   : > { %v1043_v62 = vrot.slane %v1035_v2, %v6581_v31  ;;  %v1050_v59 = vrot.slane %v1036_v49, %v6581_v31  ;;  %v1059_v15 = vrot.slane %v1051_v50, %v6581_v31  ;;  %v1066_v3 = vrot.slane %v1052_v51, %v6581_v31  ;;  %v984_v4 = vpop.permute.xlu1 %983 }
 0x245   : > { %v1155_v21 = vcombine.low %v968_v27, %v984_v4  ;;  %v1156_v43 = vcombine.high %v968_v27, %v984_v4  ;;  %v978_v42 = vpop.permute.xlu0 %977  ;;  %v1147_v49 = vrot.slane %v1139_v60, %v6567_v26  ;;  %v1154_v50 = vrot.slane %v1140_v63, %v6567_v26 }
 0x246   : > { %v1275_v46 = vcombine.low %v1043_v62, %v1050_v59  ;;  %v5566_v2 = vcombine.high %v1043_v62, %v1050_v59  ;;  %v1291_v27 = vcombine.low %v1059_v15, %v1066_v3  ;;  %v5567_v51 = vcombine.high %v1059_v15, %v1066_v3 }
 0x247   : > { %v1163_v25 = vrot.slane %v1155_v21, %v6567_v26  ;;  %v1170_v39 = vrot.slane %v1156_v43, %v6567_v26  ;;  %v1207_v0 = vcombine.low %v6797_v56, %v978_v42  ;;  %v6855_v35 = vrot.slane %v1343_v57, %v6567_v26 }
 0x248   : > { %v986_v4 = vpop.permute.xlu1 %985  ;;  %v6858_v60 = vrot.slane %v1275_v46, %v6567_v26  ;;  %v6861_v63 = vrot.slane %v5566_v2, %v6567_v26  ;;  %v1208_v59 = vcombine.high %v6797_v56, %v978_v42  ;;  %v6865_v15 = vrot.slane %v5568_v22, %v6567_v26 }
 0x249   : > { %v1171_v33 = vcombine.low %v1147_v49, %v1163_v25  ;;  %v1172_v45 = vcombine.high %v1147_v49, %v1163_v25  ;;  %v1187_v24 = vcombine.low %v1154_v50, %v1170_v39  ;;  %v1188_v62 = vcombine.high %v1154_v50, %v1170_v39  ;;  %v1556_v14 = vpop.permute.xlu0 %1555 }
 0x24a   : > { %v6872_v49 = vrot.slane %v1291_v27, %v6567_v26  ;;  %v6875_v46 = vrot.slane %v5567_v51, %v6567_v26  ;;  %v1223_v2 = vcombine.low %v6815_v52, %v986_v4  ;;  %v1224_v56 = vcombine.high %v6815_v52, %v986_v4 }
 0x24b   : > { %v1179_v3 = vrot.slane %v1171_v33, %v6581_v31  ;;  %v1186_v57 = vrot.slane %v1172_v45, %v6581_v31  ;;  %v1195_v21 = vrot.slane %v1187_v24, %v6581_v31  ;;  %v1202_v43 = vrot.slane %v1188_v62, %v6581_v31 }
 0x24c   : > { %v6879_v22 = vpop.permute.xlu1 %1547  ;;  %v1215_v25 = vrot.slane %v1207_v0, %v6567_v26  ;;  %v1222_v45 = vrot.slane %v1208_v59, %v6567_v26  ;;  %v1231_v27 = vrot.slane %v1223_v2, %v6567_v26  ;;  %v1238_v24 = vrot.slane %v1224_v56, %v6567_v26 }
 0x24d   : > { %v1411_v42 = vcombine.low %v1179_v3, %v1186_v57  ;;  %v5570_v33 = vcombine.high %v1179_v3, %v1186_v57  ;;  %v1427_v50 = vcombine.low %v1195_v21, %v1202_v43  ;;  %v5571_v39 = vcombine.high %v1195_v21, %v1202_v43 }
 0x24e   : > { %v6892_v4 = vrot.slane %v1359_v28, %v6567_v26  ;;  %v6895_v62 = vrot.slane %v5569_v41, %v6567_v26  ;;  %v1239_v0 = vcombine.low %v1215_v25, %v1231_v27  ;;  %v1240_v3 = vcombine.high %v1215_v25, %v1231_v27 }
 0x24f   : > { %v6886_v51 = vrot.slane %v1411_v42, %v6567_v26  ;;  %v6889_v52 = vrot.slane %v5570_v33, %v6567_v26  ;;  %v1255_v59 = vcombine.low %v1222_v45, %v1238_v24  ;;  %v1256_v57 = vcombine.high %v1222_v45, %v1238_v24 }
 0x250   : > { %v1564_v21 = vpop.permute.xlu1 %1563  ;;  %v1307_v43 = vcombine.low %v6858_v60, %v6861_v63  ;;  %v1323_v2 = vcombine.low %v6872_v49, %v6875_v46  ;;  %v6902_v56 = vrot.slane %v1427_v50, %v6567_v26  ;;  %v1247_v41 = vrot.slane %v1239_v0, %v6581_v31 }
 0x251   : > { %v1254_v42 = vrot.slane %v1240_v3, %v6581_v31  ;;  %v1263_v33 = vrot.slane %v1255_v59, %v6581_v31  ;;  %v1270_v25 = vrot.slane %v1256_v57, %v6581_v31  ;;  %v6911_v45 = vrot.slane %v5571_v39, %v6567_v26 }
 0x252   : > { %v1443_v27 = vcombine.low %v6886_v51, %v6889_v52  ;;  %v1375_v50 = vcombine.low %v6855_v35, %v6865_v15  ;;  %v1391_v24 = vcombine.low %v6892_v4, %v6895_v62  ;;  %v6926_v57 = vrot.slane %v1307_v43, %v6581_v31 }
 0x253   : > { %v1479_v28 = vcombine.low %v1247_v41, %v1254_v42  ;;  %v5572_v0 = vcombine.high %v1247_v41, %v1254_v42  ;;  %v1495_v38 = vcombine.low %v1263_v33, %v1270_v25  ;;  %v5573_v3 = vcombine.high %v1263_v33, %v1270_v25 }
 0x254   : > { %v1572_v23 = vpop.permute.xlu1 %1571  ;;  %v6920_v59 = vrot.slane %v1375_v50, %v6581_v31  ;;  %v6923_v39 = vrot.slane %v1391_v24, %v6581_v31  ;;  %v6929_v29 = vrot.slane %v1323_v2, %v6581_v31  ;;  %v1459_v25 = vcombine.low %v6902_v56, %v6911_v45 }
 0x255   : > { %v6932_v48 = vrot.slane %v1479_v28, %v6567_v26  ;;  %v6935_v41 = vrot.slane %v5572_v0, %v6567_v26  ;;  %v6938_v42 = vrot.slane %v1495_v38, %v6567_v26  ;;  %v6941_v33 = vrot.slane %v5573_v3, %v6567_v26 }
 0x256   : > { %v1407_v43 = vcombine.low %v6920_v59, %v6923_v39  ;;  %v1339_v2 = vcombine.low %v6926_v57, %v6929_v29  ;;  %v1595_v28 = vcombine.low %v6879_v22, %v1564_v21  ;;  %v1308_v50 = vcombine.high %v6858_v60, %v6861_v63 }
 0x257   : > { %v1324_v38 = vcombine.high %v6872_v49, %v6875_v46  ;;  %v1511_v0 = vcombine.low %v6932_v48, %v6935_v41  ;;  %v1527_v7 = vcombine.low %v6938_v42, %v6941_v33  ;;  %v1596_v60 = vcombine.high %v6879_v22, %v1564_v21 }
 0x258   : > { %v1550_v3 = vpop.permute.xlu1 %1549  ;;  %5750 = vmatpush3.xpose.msk.msra.mxu1 %vm2139_vm2, %v1407_v43  ;;  %5745 = vmatpush3.xpose.msk.msra.mxu0 %vm2139_vm2, %v1339_v2  ;;  %v1376_v63 = vcombine.high %v6855_v35, %v6865_v15  ;;  %v1611_v49 = vcombine.low %v1556_v14, %v1572_v23  ;;  %v1612_v46 = vcombine.high %v1556_v14, %v1572_v23 }
 0x259   : > { %5754 = vmatprep.subr.mxu1 %v6282_v53  ;;  %v6969_v24 = vrot.slane %v1443_v27, %v6581_v31  ;;  %v1392_v19 = vcombine.high %v6892_v4, %v6895_v62  ;;  %v1603_v40 = vrot.slane %v1595_v28, %v6567_v26  ;;  %v1467_v43 = vrot.slane %v1459_v25, %v6581_v31 }
 0x25a   : > { %5759 = vmatprep.subr.mxu0 %v6282_v53  ;;  %v6977_v22 = vrot.slane %v1511_v0, %v6581_v31  ;;  %v1610_v14 = vrot.slane %v1596_v60, %v6567_v26  ;;  %v1619_v23 = vrot.slane %v1611_v49, %v6567_v26  ;;  %v1626_v35 = vrot.slane %v1612_v46, %v6567_v26 }
 0x25b   : > { %5752 = vmatmul.mubr.msk.f32.vlgmr.msra.gmra.mrb[0].mxu1 %vm2139_vm2, %v815_v6  ;;  %5747 = vmatmul.mubr.msk.f32.vlgmr.msra.gmra.mrb[4].mxu0 %vm2139_vm2, %v747_v36  ;;  %v1408_v4 = vcombine.high %v6920_v59, %v6923_v39  ;;  %v1475_v62 = vcombine.low %v6969_v24, %v1467_v43  ;;  %v6996_v6 = vrot.slane %v1527_v7, %v6581_v31 }
 0x25c   : > { %v1558_v15 = vpop.permute.xlu1 %1557  ;;  %5756 = vmatprep.mubr.msk.f32.mxu1 %vm6283_vm1, %v6282_v53  ;;  %5761 = vmatprep.mubr.msk.f32.mxu0 %vm6283_vm1, %v6282_v53  ;;  %v1627_v36 = vcombine.low %v1603_v40, %v1619_v23  ;;  %v1628_v21 = vcombine.high %v1603_v40, %v1619_v23  ;;  %v1643_v27 = vcombine.low %v1610_v14, %v1626_v35 }
 0x25d   : > { %v1644_v25 = vcombine.high %v1610_v14, %v1626_v35  ;;  %v1512_v2 = vcombine.high %v6932_v48, %v6935_v41  ;;  %v1528_v59 = vcombine.high %v6938_v42, %v6941_v33  ;;  %5755 = vmatpush3.xpose.msk.msra.mxu1 %vm2139_vm2, %v1475_v62  ;;  %v1543_v39 = vcombine.low %v6977_v22, %v6996_v6 }
 0x25e   : > { %v7008_v7 = vrot.slane %v1308_v50, %v6581_v31  ;;  %v1635_v28 = vrot.slane %v1627_v36, %v6581_v31  ;;  %v1642_v40 = vrot.slane %v1628_v21, %v6581_v31  ;;  %v1651_v0 = vrot.slane %v1643_v27, %v6581_v31  ;;  %5764 = vmatprep.subr.mxu1 %v6282_v53 }
 0x25f   : > { %v1658_v60 = vrot.slane %v1644_v25, %v6581_v31  ;;  %5760 = vmatpush3.xpose.msk.msra.mxu0 %vm2139_vm2, %v1543_v39  ;;  %v1340_v41 = vcombine.high %v6926_v57, %v6929_v29  ;;  %v7019_v50 = vrot.slane %v1324_v38, %v6581_v31  ;;  %v1476_v14 = vcombine.high %v6969_v24, %v1467_v43 }
 0x260   : > { %v1566_v48 = vpop.permute.xlu1 %1565  ;;  %v1867_v49 = vcombine.low %v1635_v28, %v1642_v40  ;;  %v5574_v46 = vcombine.high %v1635_v28, %v1642_v40  ;;  %5757 = vmatmul.mubr.msk.f32.vlgmr.msra.gmra.mrb[2].mxu1 %vm2139_vm2, %v883_v18  ;;  %v1544_v23 = vcombine.high %v6977_v22, %v6996_v6  ;;  %v7032_v29 = vrot.slane %v1376_v63, %v6581_v31 }
 0x261   : > { %v1663_v42 = vcombine.low %v1550_v3, %v1566_v48  ;;  %v1664_v33 = vcombine.high %v1550_v3, %v1566_v48  ;;  %v1883_v35 = vcombine.low %v1651_v0, %v1658_v60  ;;  %v5575_v62 = vcombine.high %v1651_v0, %v1658_v60  ;;  %5765 = vmatpush3.xpose.msk.msra.mxu1 %vm2139_vm2, %v1340_v41 }
 0x262   : > { %5766 = vmatprep.mubr.msk.f32.mxu1 %vm6283_vm1, %v6282_v53  ;;  %v7035_v57 = vrot.slane %v1867_v49, %v6567_v26  ;;  %v7815_v18 = vcombine.low %v6806_v55, %v6809_v44  ;;  %v1341_v3 = vcombine.low %v7008_v7, %v7019_v50  ;;  %v7046_v22 = vrot.slane %v5574_v46, %v6567_v26 }
 0x263   : > { %v1671_v38 = vrot.slane %v1663_v42, %v6567_v26  ;;  %v1678_v24 = vrot.slane %v1664_v33, %v6567_v26  ;;  %5769 = vmatprep.subr.mxu0 %v6282_v53  ;;  %5774 = vmatprep.subr.mxu1 %v6282_v53  ;;  %v7816_v36 = vcombine.high %v6705_v1, %v6713_v13 }
 0x264   : > { %5762 = vmatmul.mubr.msk.f32.vlgmr.msra.gmra.mrb[6].mxu0 %vm2139_vm2, %v7815_v18  ;;  %v1574_v43 = vpop.permute.xlu1 %1573  ;;  %v7056_v21 = vrot.slane %v1392_v19, %v6581_v31  ;;  %v7817_v27 = vcombine.high %v6886_v51, %v6889_v52  ;;  %v7071_v1 = vrot.slane %v1883_v35, %v6567_v26  ;;  %v1898_v51 = vrot.slane %v5575_v62, %v6567_v26 }
 0x265   : > { %v1679_v63 = vcombine.low %v1558_v15, %v1574_v43  ;;  %v1680_v6 = vcombine.high %v1558_v15, %v1574_v43  ;;  %5767 = vmatmul.mubr.msk.f32.vlgmr.msra.gmra.mrb[4].mxu1 %vm2139_vm2, %v7816_v36  ;;  %5770 = vmatpush3.xpose.msk.msra.mxu0 %vm2139_vm2, %v1408_v4  ;;  %v7818_v15 = vcombine.high %v6902_v56, %v6911_v45 }
 0x266   : > { %v7062_v25 = vrot.slane %v7817_v27, %v6581_v31  ;;  %5775 = vmatpush3.xpose.msk.msra.mxu1 %vm2139_vm2, %v1476_v14  ;;  %5771 = vmatprep.mubr.msk.f32.mxu0 %vm6283_vm1, %v6282_v53  ;;  %v7083_v52 = vrot.slane %v1512_v2, %v6581_v31  ;;  %v7086_v56 = vrot.slane %v1528_v59, %v6581_v31 }
 0x267   : > { %v7068_v39 = vrot.slane %v7818_v15, %v6581_v31  ;;  %v1687_v13 = vrot.slane %v1679_v63, %v6567_v26  ;;  %v1694_v19 = vrot.slane %v1680_v6, %v6567_v26  ;;  %5776 = vmatprep.mubr.msk.f32.mxu1 %vm6283_vm1, %v6282_v53  ;;  %5779 = vmatprep.subr.mxu0 %v6282_v53 }
 0x268   : > { %v7819_v45 = vcombine.high %v6698_v58, %v6710_v11  ;;  %5784 = vmatprep.subr.mxu1 %v6282_v53  ;;  %v7820_v0 = vcombine.high %v6724_v8, %v6727_v9  ;;  %v1409_v59 = vcombine.low %v7032_v29, %v7056_v21  ;;  %v1545_v9 = vcombine.low %v7083_v52, %v7086_v56 }
 0x269   : > { %v1695_v4 = vcombine.low %v1671_v38, %v1687_v13  ;;  %v1696_v28 = vcombine.high %v1671_v38, %v1687_v13  ;;  %v1711_v40 = vcombine.low %v1678_v24, %v1694_v19  ;;  %v1712_v2 = vcombine.high %v1678_v24, %v1694_v19 }
 0x26a   : > { %5772 = vmatmul.mubr.msk.f32.vlgmr.msra.gmra.mrb[8].mxu0 %vm2139_vm2, %v7819_v45  ;;  %5777 = vmatmul.mubr.msk.f32.vlgmr.msra.gmra.mrb[6].mxu1 %vm2139_vm2, %v7820_v0  ;;  %v1477_v58 = vcombine.low %v7062_v25, %v7068_v39  ;;  %v1342_v41 = vcombine.high %v7008_v7, %v7019_v50  ;;  %v7821_v49 = vcombine.high %v6806_v55, %v6809_v44 }
 0x26b   : > { %5780 = vmatpush3.xpose.msk.msra.mxu0 %vm2139_vm2, %v1544_v23  ;;  %5785 = vmatpush3.xpose.msk.msra.mxu1 %vm2139_vm2, %v1341_v3  ;;  %v1703_v11 = vrot.slane %v1695_v4, %v6581_v31  ;;  %v1710_v60 = vrot.slane %v1696_v28, %v6581_v31  ;;  %v1719_v48 = vrot.slane %v1711_v40, %v6581_v31 }
 0x26c   : > { %5781 = vmatprep.mubr.msk.f32.mxu0 %vm6283_vm1, %v6282_v53  ;;  %v1726_v8 = vrot.slane %v1712_v2, %v6581_v31  ;;  %5786 = vmatprep.mubr.msk.f32.mxu1 %vm6283_vm1, %v6282_v53  ;;  %v1899_v46 = vcombine.low %v7035_v57, %v7046_v22  ;;  %v7822_v35 = vcombine.low %v6748_v37, %v6751_v20 }
 0x26d   : > { %5789 = vmatprep.subr.mxu0 %v6282_v53  ;;  %v1935_v42 = vcombine.low %v1703_v11, %v1710_v60  ;;  %v5576_v33 = vcombine.high %v1703_v11, %v1710_v60  ;;  %5794 = vmatprep.subr.mxu1 %v6282_v53  ;;  %v1915_v7 = vcombine.low %v7071_v1, %v1898_v51 }
 0x26e   : > { %5782 = vmatmul.mubr.msk.f32.vlgmr.msra.gmra.mrb[10].mxu0 %vm2139_vm2, %v7821_v49  ;;  %v1951_v14 = vcombine.low %v1719_v48, %v1726_v8  ;;  %v5577_v23 = vcombine.high %v1719_v48, %v1726_v8  ;;  %5787 = vmatmul.mubr.msk.f32.vlgmr.msra.gmra.mrb[8].mxu1 %vm2139_vm2, %v7822_v35  ;;  %v7135_v50 = vrot.slane %v1899_v46, %v6581_v31 }
 0x26f   : > { %5790 = vmatpush3.xpose.msk.msra.mxu0 %vm2139_vm2, %v1409_v59  ;;  %v1942_v55 = vrot.slane %v1935_v42, %v6567_v26  ;;  %v1950_v44 = vrot.slane %v5576_v33, %v6567_v26  ;;  %5795 = vmatpush3.xpose.msk.msra.mxu1 %vm2139_vm2, %v1477_v58  ;;  %v7143_v38 = vrot.slane %v1915_v7, %v6581_v31 }
 0x270   : > { %5791 = vmatprep.mubr.msk.f32.mxu0 %vm6283_vm1, %v6282_v53  ;;  %v1958_v62 = vrot.slane %v1951_v14, %v6567_v26  ;;  %v1966_v18 = vrot.slane %v5577_v23, %v6567_v26  ;;  %5796 = vmatprep.mubr.msk.f32.mxu1 %vm6283_vm1, %v6282_v53  ;;  %v7823_v24 = vcombine.low %v6738_v16, %v6741_v17 }
 0x271   : > { %5799 = vmatprep.subr.mxu0 %v6282_v53  ;;  %5804 = vmatprep.subr.mxu1 %v6282_v53  ;;  %v1967_v3 = vcombine.low %v1942_v55, %v1950_v44  ;;  %v1900_v43 = vcombine.high %v7035_v57, %v7046_v22  ;;  %v1916_v63 = vcombine.high %v7071_v1, %v1898_v51 }
 0x272   : > { %5792 = vmatmul.mubr.msk.f32.vlgmr.msra.gmra.mrb[12].mxu0 %vm2139_vm2, %v7823_v24  ;;  %v7824_v6 = vcombine.low %v6760_v30, %v6765_v34  ;;  %v1410_v36 = vcombine.high %v7032_v29, %v7056_v21  ;;  %v1983_v27 = vcombine.low %v1958_v62, %v1966_v18  ;;  %v1932_v15 = vcombine.high %v7135_v50, %v7143_v38 }
 0x273   : > { %5800 = vmatpush3.xpose.msk.msra.mxu0 %vm2139_vm2, %v1545_v9  ;;  %5801 = vmatprep.mubr.msk.f32.mxu0 %vm6283_vm1, %v6282_v53  ;;  %v7166_v57 = vrot.slane %v1967_v3, %v6581_v31  ;;  %v7169_v22 = vrot.slane %v1900_v43, %v6581_v31  ;;  %v7172_v1 = vrot.slane %v1916_v63, %v6581_v31 }
 0x274   : > { %5797 = vmatmul.mubr.msk.f32.vlgmr.msra.gmra.mrb[10].mxu1 %vm2139_vm2, %v7824_v6  ;;  %5809 = vmatprep.subr.mxu0 %v6282_v53  ;;  %v7178_v29 = vrot.slane %v1983_v27, %v6581_v31  ;;  %v1968_v21 = vcombine.high %v1942_v55, %v1950_v44  ;;  %v1984_v13 = vcombine.high %v1958_v62, %v1966_v18 }
 0x275   : > { %5805 = vmatpush3.xpose.msk.msra.mxu1 %vm2139_vm2, %v1342_v41  ;;  %5806 = vmatprep.mubr.msk.f32.mxu1 %vm6283_vm1, %v6282_v53  ;;  %v7825_v19 = vcombine.low %v6836_v61, %v6843_v10  ;;  %v1478_v51 = vcombine.high %v7062_v25, %v7068_v39  ;;  %v1933_v45 = vcombine.low %v7169_v22, %v7172_v1 }
 0x276   : > { %5814 = vmatprep.subr.mxu1 %v6282_v53  ;;  %v1934_v4 = vcombine.high %v7169_v22, %v7172_v1  ;;  %v7826_v28 = vcombine.high %v6748_v37, %v6751_v20  ;;  %v2000_v40 = vcombine.high %v7166_v57, %v7178_v29  ;;  %v7199_v0 = vrot.slane %v1968_v21, %v6581_v31 }
 0x277   : > { %5802 = vmatmul.mubr.msk.f32.vlgmr.msra.gmra.mrb[14].mxu0 %vm2139_vm2, %v7825_v19  ;;  %v7205_v25 = vrot.slane %v1984_v13, %v6581_v31  ;;  %v1546_v37 = vcombine.high %v7083_v52, %v7086_v56  ;;  %v7827_v20 = vcombine.high %v6738_v16, %v6741_v17  ;;  %v1931_v39 = vcombine.low %v7135_v50, %v7143_v38 }
 0x278   : > { %5807 = vmatmul.mubr.msk.f32.vlgmr.msra.gmra.mrb[12].mxu1 %vm2139_vm2, %v7826_v28  ;;  %5810 = vmatpush3.xpose.msk.msra.mxu0 %vm2139_vm2, %v1410_v36  ;;  %v7828_v58 = vcombine.high %v6760_v30, %v6765_v34  ;;  %v1999_v16 = vcombine.low %v7166_v57, %v7178_v29  ;;  %v954_v17 = vcombine.high %v6836_v61, %v6843_v10 }
 0x279   : > { %5815 = vmatpush3.xpose.msk.msra.mxu1 %vm2139_vm2, %v1478_v51  ;;  %5811 = vmatprep.mubr.msk.f32.mxu0 %vm6283_vm1, %v6282_v53  ;;  %v2001_v2 = vcombine.low %v7199_v0, %v7205_v25  ;;  %v2002_v59 = vcombine.high %v7199_v0, %v7205_v25 }
 0x27a   : > { %5816 = vmatprep.mubr.msk.f32.mxu1 %vm6283_vm1, %v6282_v53  ;;  %5819 = vmatprep.subr.mxu0 %v6282_v53 }
 0x27b   : > { %5812 = vmatmul.mubr.msk.f32.vlgmr.msra.gmra.mrb[16].mxu0 %vm2139_vm2, %v7827_v20  ;;  %5824 = vmatprep.subr.mxu1 %v6282_v53 }
 0x27c   : > { %5817 = vmatmul.mubr.msk.f32.vlgmr.msra.gmra.mrb[14].mxu1 %vm2139_vm2, %v7828_v58  ;;  %5820 = vmatpush3.xpose.msk.msra.mxu0 %vm2139_vm2, %v1546_v37 }
 0x27d   : > { %5825 = vmatpush3.msra.mxu1 %v1931_v39  ;;  %5821 = vmatprep.mubr.msk.f32.mxu0 %vm6283_vm1, %v6282_v53 }
 0x27e   : > { %5829 = vmatprep.subr.mxu0 %v6282_v53  ;;  %5826 = vmatprep.mubr.msk.f32.mxu1 %vm6283_vm1, %v6282_v53 }
 0x27f   : > { %5822 = vmatmul.mubr.msk.f32.vlgmr.msra.gmra.mrb[18].mxu0 %vm2139_vm2, %v954_v17  ;;  %5834 = vmatprep.subr.mxu1 %v6282_v53 }
 0x280   : > { %5830 = vmatpush3.msra.mxu0 %v1999_v16  ;;  %5831 = vmatprep.mubr.msk.f32.mxu0 %vm6283_vm1, %v6282_v53 }
 0x281   : > { %5839 = vmatprep.subr.mxu0 %v6282_v53 }
 0x32e   : > { %v7242_v30 = vpop.f32.mrb[0].mxu1  ;;  %v7244_v34 = vpop.f32.mrb[4].mxu0 }
 0x32f   : > { %v5753_v10 = vpop.f32.mrb[1].mxu1  ;;  %v3359_v61 = vsel %vm2139_vm2, %v7242_v30, -inf  ;;  %v5748_v52 = vpop.f32.mrb[5].mxu0  ;;  %v3356_v56 = vsel %vm2139_vm2, %v7244_v34, -inf }
 0x330   : > { %3360 = vmax.xlane.f32.xlu1 %v3359_v61  ;;  %3357 = vmax.xlane.f32.xlu0 %v3356_v56 }
 0x333   : > { %v7250_v11 = vpop.f32.mrb[2].mxu1 }
 0x334   : > { %v5758_v60 = vpop.f32.mrb[3].mxu1  ;;  %v3362_v48 = vsel %vm2139_vm2, %v7250_v11, -inf }
 0x335   : > { %3363 = vmax.xlane.f32.xlu0 %v3362_v48 }
 0x337   : > { %v7254_v8 = vpop.f32.mrb[6].mxu0 }
 0x338   : > { %v5763_v9 = vpop.f32.mrb[7].mxu0  ;;  %v3365_v41 = vsel %vm2139_vm2, %v7254_v8, -inf  ;;  %v7258_v42 = vpop.f32.mrb[4].mxu1 }
 0x339   : > { %v5768_v33 = vpop.f32.mrb[5].mxu1  ;;  %v3368_v49 = vsel %vm2139_vm2, %v7258_v42, -inf  ;;  %3366 = vmax.xlane.f32.xlu0 %v3365_v41  ;;  %v7314_v9 = vpop.permute.xlu0 %1551 }
 0x33a   : > { %3369 = vmax.xlane.f32.xlu1 %v3368_v49  ;;  %v7318_v33 = vpop.permute.xlu1 %1559 }
 0x33d   : > { %v7262_v46 = vpop.f32.mrb[8].mxu0  ;;  %v7264_v14 = vpop.f32.mrb[6].mxu1 }
 0x33e   : > { %v5773_v23 = vpop.f32.mrb[9].mxu0  ;;  %v3371_v35 = vsel %vm2139_vm2, %v7262_v46, -inf  ;;  %v5778_v7 = vpop.f32.mrb[7].mxu1  ;;  %v3374_v55 = vsel %vm2139_vm2, %v7264_v14, -inf }
 0x33f   : > { %3375 = vmax.xlane.f32.xlu1 %v3374_v55  ;;  %3372 = vmax.xlane.f32.xlu0 %v3371_v35  ;;  %v7316_v41 = vpop.permute.xlu0 %1567 }
 0x341   : > { %v7270_v44 = vpop.f32.mrb[10].mxu0  ;;  %v7272_v62 = vpop.f32.mrb[8].mxu1 }
 0x342   : > { %v5783_v18 = vpop.f32.mrb[11].mxu0  ;;  %v3377_v24 = vsel %vm2139_vm2, %v7270_v44, -inf  ;;  %v5788_v3 = vpop.f32.mrb[9].mxu1  ;;  %v3380_v43 = vsel %vm2139_vm2, %v7272_v62, -inf }
 0x343   : > { %3381 = vmax.xlane.f32.xlu1 %v3380_v43  ;;  %3378 = vmax.xlane.f32.xlu0 %v3377_v24 }
 0x345   : > { %v7278_v63 = vpop.f32.mrb[12].mxu0 }
 0x346   : > { %v5793_v36 = vpop.f32.mrb[13].mxu0  ;;  %v3383_v27 = vsel %vm2139_vm2, %v7278_v63, -inf }
 0x347   : > { %v7280_v6 = vpop.f32.mrb[10].mxu1  ;;  %3384 = vmax.xlane.f32.xlu0 %v3383_v27 }
 0x348   : > { %v5798_v21 = vpop.f32.mrb[11].mxu1  ;;  %v3386_v13 = vsel %vm2139_vm2, %v7280_v6, -inf }
 0x349   : > { %3387 = vmax.xlane.f32.xlu1 %v3386_v13 }
 0x34a   : > { %v7286_v19 = vpop.f32.mrb[14].mxu0 }
 0x34b   : > { %v7288_v51 = vpop.f32.mrb[12].mxu1  ;;  %v5803_v28 = vpop.f32.mrb[15].mxu0  ;;  %v3389_v37 = vsel %vm2139_vm2, %v7286_v19, -inf }
 0x34c   : > { %v5808_v20 = vpop.f32.mrb[13].mxu1  ;;  %v3392_v39 = vsel %vm2139_vm2, %v7288_v51, -inf  ;;  %3390 = vmax.xlane.f32.xlu0 %v3389_v37 }
 0x34d   : > { %3393 = vmax.xlane.f32.xlu1 %v3392_v39 }
 0x34e   : > { %v7294_v58 = vpop.f32.mrb[16].mxu0 }
 0x34f   : > { %v7296_v16 = vpop.f32.mrb[14].mxu1  ;;  %v5813_v17 = vpop.f32.mrb[17].mxu0  ;;  %v3395_v10 = vsel %vm2139_vm2, %v7294_v58, -inf }
 0x350   : > { %v5818_v61 = vpop.f32.mrb[15].mxu1  ;;  %v3398_v52 = vsel %vm2139_vm2, %v7296_v16, -inf  ;;  %3396 = vmax.xlane.f32.xlu0 %v3395_v10 }
 0x351   : > { %3399 = vmax.xlane.f32.xlu1 %v3398_v52 }
 0x352   : > { %v7302_v56 = vpop.f32.mrb[18].mxu0 }
 0x353   : > { %v5823_v60 = vpop.f32.mrb[19].mxu0  ;;  %v3401_v48 = vsel %vm2139_vm2, %v7302_v56, -inf }
 0x354   : > { %3402 = vmax.xlane.f32.xlu0 %v3401_v48 }
 0x362   : > { %1553 = vrot.lane.b32.xlu1 %v6535_v12, %s6281_s22 }
 0x366   : > { %1561 = vrot.lane.b32.xlu1 %v6615_v54, %s6281_s22 }
 0x36a   : > { %1569 = vrot.lane.b32.xlu1 %v6663_v32, %s6281_s22  ;;  %1575 = vrot.lane.b32.xlu0 %v6633_v5, %s6281_s22 }
 0x3bd   : > { %v3361_v49 = vpop.xlane.xlu1 %3360  ;;  %v3358_v23 = vpop.xlane.xlu0 %3357 }
 0x3be   : > { %v3405_v35 = vsub.f32 %v7242_v30, %v3361_v49  ;;  %v3404_v12 = vsub.f32 %v7244_v34, %v3358_v23 }
 0x3c0   : > { %v3422_v7 = vmul.f32 1.442695, %v3405_v35  ;;  %v3420_v54 = vmul.f32 1.442695, %v3404_v12 }
 0x3c2   : > { %6032 = vpow2.f32 %v3422_v7  ;;  %v3364_v32 = vpop.xlane.xlu0 %3363 }
 0x3c3   : > { %6034 = vpow2.f32 %v3420_v54  ;;  %v3406_v55 = vsub.f32 %v7250_v11, %v3364_v32 }
 0x3c5   : > { %v3424_v5 = vmul.f32 1.442695, %v3406_v55 }
 0x3c6   : > { %v3367_v24 = vpop.xlane.xlu0 %3366 }
 0x3c7   : > { %v3370_v18 = vpop.xlane.xlu1 %3369  ;;  %6036 = vpow2.f32 %v3424_v5  ;;  %v3407_v43 = vsub.f32 %v7254_v8, %v3367_v24 }
 0x3c8   : > { %v3408_v3 = vsub.f32 %v7258_v42, %v3370_v18 }
 0x3c9   : > { %v3426_v36 = vmul.f32 1.442695, %v3407_v43 }
 0x3ca   : > { %v3428_v27 = vmul.f32 1.442695, %v3408_v3 }
 0x3cb   : > { %6038 = vpow2.f32 %v3426_v36  ;;  %v1732_v36 = vcombine.high %v7314_v9, %v7316_v41 }
 0x3cc   : > { %v3376_v30 = vpop.xlane.xlu1 %3375  ;;  %v7325_v21 = vpop.xlane.xlu0 %3372  ;;  %6040 = vpow2.f32 %v3428_v27 }
 0x3cd   : > { %v7327_v34 = vpop.eup %6032  ;;  %v3410_v13 = vsub.f32 %v7264_v14, %v3376_v30 }
 0x3ce   : > { %v7330_v28 = vpop.eup %6034  ;;  %v3455_v11 = vsel %vm2139_vm2, %v7327_v34, 0.0 }
 0x3cf   : > { %3456 = vadd.xlane.f32.xlu0 %v3455_v11  ;;  %v3452_v42 = vsel %vm2139_vm2, %v7330_v28, 0.0  ;;  %v3432_v8 = vmul.f32 1.442695, %v3410_v13 }
 0x3d0   : > { %3453 = vadd.xlane.f32.xlu1 %v3452_v42  ;;  %v3382_v37 = vpop.xlane.xlu1 %3381  ;;  %v7336_v20 = vpop.xlane.xlu0 %3378 }
 0x3d1   : > { %v3412_v39 = vsub.f32 %v7272_v62, %v3382_v37  ;;  %v7339_v17 = vpop.eup %6036  ;;  %6042 = vpow2.f32 %v3432_v8 }
 0x3d2   : > { %v3458_v52 = vsel %vm2139_vm2, %v7339_v17, 0.0 }
 0x3d3   : > { %v3436_v14 = vmul.f32 1.442695, %v3412_v39 }
 0x3d4   : > { %v3385_v61 = vpop.xlane.xlu0 %3384  ;;  %3459 = vadd.xlane.f32.xlu1 %v3458_v52 }
 0x3d5   : > { %v3413_v60 = vsub.f32 %v7278_v63, %v3385_v61  ;;  %v7345_v23 = vpop.eup %6038  ;;  %6044 = vpow2.f32 %v3436_v14 }
 0x3d6   : > { %v3388_v10 = vpop.xlane.xlu1 %3387  ;;  %v3461_v62 = vsel %vm2139_vm2, %v7345_v23, 0.0  ;;  %v7349_v12 = vpop.eup %6040 }
 0x3d7   : > { %v3414_v48 = vsub.f32 %v7280_v6, %v3388_v10  ;;  %v3438_v49 = vmul.f32 1.442695, %v3413_v60  ;;  %3462 = vadd.xlane.f32.xlu0 %v3461_v62  ;;  %v3464_v6 = vsel %vm2139_vm2, %v7349_v12, 0.0 }
 0x3d9   : > { %v3391_v35 = vpop.xlane.xlu0 %3390  ;;  %v3440_v7 = vmul.f32 1.442695, %v3414_v48  ;;  %6046 = vpow2.f32 %v3438_v49 }
 0x3da   : > { %v3415_v54 = vsub.f32 %v7286_v19, %v3391_v35  ;;  %v3394_v32 = vpop.xlane.xlu1 %3393  ;;  %v1731_v19 = vcombine.low %v7314_v9, %v7316_v41  ;;  %v1746_v9 = vrot.slane %v1732_v36, %v6567_v26 }
 0x3db   : > { %v7354_v55 = vpop.eup %6042  ;;  %3465 = vadd.xlane.f32.xlu0 %v3464_v6  ;;  %6048 = vpow2.f32 %v3440_v7  ;;  %v3416_v5 = vsub.f32 %v7288_v51, %v3394_v32 }
 0x3dc   : > { %v3442_v18 = vmul.f32 1.442695, %v3415_v54  ;;  %v3470_v3 = vsel %vm2139_vm2, %v7354_v55, 0.0  ;;  %v1739_v39 = vrot.slane %v1731_v19, %v6567_v26 }
 0x3dd   : > { %v3397_v63 = vpop.xlane.xlu0 %3396  ;;  %v3444_v27 = vmul.f32 1.442695, %v3416_v5 }
 0x3de   : > { %6050 = vpow2.f32 %v3442_v18  ;;  %v3417_v30 = vsub.f32 %v7294_v58, %v3397_v63  ;;  %v3400_v11 = vpop.xlane.xlu1 %3399 }
 0x3df   : > { %v7359_v43 = vpop.eup %6044  ;;  %3471 = vadd.xlane.f32.xlu0 %v3470_v3  ;;  %6052 = vpow2.f32 %v3444_v27  ;;  %v3418_v14 = vsub.f32 %v7296_v16, %v3400_v11 }
 0x3e0   : > { %v3476_v37 = vsel %vm2139_vm2, %v7359_v43, 0.0  ;;  %v3446_v10 = vmul.f32 1.442695, %v3417_v30 }
 0x3e1   : > { %v3403_v24 = vpop.xlane.xlu0 %3402  ;;  %v3448_v16 = vmul.f32 1.442695, %v3418_v14  ;;  %v3409_v14 = vsub.f32 %v7262_v46, %v7325_v21  ;;  %v3411_v21 = vsub.f32 %v7270_v44, %v7336_v20 }
 0x3e2   : > { %6054 = vpow2.f32 %v3446_v10  ;;  %v3419_v54 = vsub.f32 %v7302_v56, %v3403_v24 }
 0x3e3   : > { %v7366_v51 = vpop.eup %6046  ;;  %3477 = vadd.xlane.f32.xlu0 %v3476_v37  ;;  %6056 = vpow2.f32 %v3448_v16  ;;  %v3430_v46 = vmul.f32 1.442695, %v3409_v14 }
 0x3e4   : > { %v3450_v56 = vmul.f32 1.442695, %v3419_v54 }
 0x3e5   : > { %v1576_v13 = vpop.permute.xlu0 %1575  ;;  %1577 = vrot.lane.b32.xlu1 %v6679_v47, %s6281_s22  ;;  %v7381_v61 = vpop.eup %6048  ;;  %s6188_s22 = scalar_lea.vmem %s6187_s21, 1024 }
 0x3e6   : > { %v1747_v42 = vcombine.low %v7318_v33, %v1576_v13  ;;  %v1748_v8 = vcombine.high %v7318_v33, %v1576_v13  ;;  %v3479_v33 = vsel %vm2139_vm2, %v7366_v51, 0.0  ;;  %v3482_v32 = vsel %vm2139_vm2, %v7381_v61, 0.0  ;;  %p6190_p5 = scmp.lt.s32.totalorder %s6188_s22, %s6182_s18 }
 0x3e7   : > { %3480 = vadd.xlane.f32.xlu0 %v3479_v33  ;;  %6058 = vpow2.f32 %v3450_v56 }
 0x3e8   : > { %v1755_v58 = vrot.slane %v1747_v42, %v6567_v26  ;;  %v1762_v41 = vrot.slane %v1748_v8, %v6567_v26  ;;  %v7390_v63 = vpop.eup %6050  ;;  %6060 = vpow2.f32 %v3430_v46  ;;  %p6191_p9 = por %p6190_p5, %p6189_p3 }
 0x3e9   : > { %v3485_v24 = vsel %vm2139_vm2, %v7390_v63, 0.0  ;;  %v7398_v13 = vpop.eup %6052 }
 0x3ea   : > { %v1763_v52 = vcombine.low %v1739_v39, %v1755_v58  ;;  %v1764_v60 = vcombine.high %v1739_v39, %v1755_v58  ;;  %v1779_v48 = vcombine.low %v1746_v9, %v1762_v41  ;;  %v1780_v49 = vcombine.high %v1746_v9, %v1762_v41  ;;  %p6192_p11 = pnand %p6191_p9, %p6185_p10 }
 0x3eb   : > { %3483 = vadd.xlane.f32.xlu0 %v3482_v32  ;;  %v3488_v10 = vsel %vm2139_vm2, %v7398_v13, 0.0 }
 0x3ec   : > { %v1771_v47 = vrot.slane %v1763_v52, %v6581_v31  ;;  %v1778_v35 = vrot.slane %v1764_v60, %v6581_v31  ;;  %v1787_v62 = vrot.slane %v1779_v48, %v6581_v31  ;;  %v1794_v7 = vrot.slane %v1780_v49, %v6581_v31  ;;  %v7424_v49 = vpop.eup %6054 }
 0x3ee   : > { %v2003_v6 = vcombine.low %v1771_v47, %v1778_v35  ;;  %v5578_v5 = vcombine.high %v1771_v47, %v1778_v35  ;;  %v2019_v18 = vcombine.low %v1787_v62, %v1794_v7  ;;  %v5579_v3 = vcombine.high %v1787_v62, %v1794_v7  ;;  %v7430_v35 = vpop.eup %6056 }
 0x3ef   : > { %3486 = vadd.xlane.f32.xlu0 %v3485_v24  ;;  %v3491_v47 = vsel %vm2139_vm2, %v7424_v49, 0.0  ;;  %v3434_v62 = vmul.f32 1.442695, %v3411_v21  ;;  %v3494_v7 = vsel %vm2139_vm2, %v7430_v35, 0.0 }
 0x3f0   : > { %v2010_v19 = vrot.slane %v2003_v6, %v6567_v26  ;;  %v2018_v36 = vrot.slane %v5578_v5, %v6567_v26  ;;  %v2026_v27 = vrot.slane %v2019_v18, %v6567_v26  ;;  %v2034_v30 = vrot.slane %v5579_v3, %v6567_v26  ;;  %v1554_v5 = vpop.permute.xlu1 %1553 }
 0x3f1   : > { %v7434_v16 = vpop.eup %6058  ;;  %6062 = vpow2.f32 %v3434_v62 }
 0x3f2   : > { %v2035_v11 = vcombine.low %v2010_v19, %v2018_v36  ;;  %v2051_v42 = vcombine.low %v2026_v27, %v2034_v30  ;;  %v2036_v8 = vcombine.high %v2010_v19, %v2018_v36  ;;  %v2052_v37 = vcombine.high %v2026_v27, %v2034_v30  ;;  %v7438_v44 = vpop.eup %6060 }
 0x3f3   : > { %3489 = vadd.xlane.f32.xlu0 %v3488_v10  ;;  %v3497_v54 = vsel %vm2139_vm2, %v7434_v16, 0.0  ;;  %v3467_v20 = vsel %vm2139_vm2, %v7438_v44, 0.0 }
 0x3f4   : > { %v7401_v39 = vrot.slane %v2035_v11, %v6581_v31  ;;  %v7404_v9 = vrot.slane %v2051_v42, %v6581_v31  ;;  %v7407_v58 = vrot.slane %v2036_v8, %v6581_v31  ;;  %v7410_v41 = vrot.slane %v2052_v37, %v6581_v31  ;;  %v1562_v18 = vpop.permute.xlu1 %1561 }
 0x3f6   : > { %v2067_v33 = vcombine.low %v7401_v39, %v7404_v9  ;;  %v2068_v52 = vcombine.high %v7401_v39, %v7404_v9  ;;  %v2069_v60 = vcombine.low %v7407_v58, %v7410_v41  ;;  %v2070_v48 = vcombine.high %v7407_v58, %v7410_v41 }
 0x3f7   : > { %3492 = vadd.xlane.f32.xlu0 %v3491_v47 }
 0x3f8   : > { %v1570_v3 = vpop.permute.xlu1 %1569 }
 0x3f9   : > { %v1799_v30 = vcombine.low %v1554_v5, %v1570_v3  ;;  %v1800_v56 = vcombine.high %v1554_v5, %v1570_v3 }
 0x3fb   : > { %3495 = vadd.xlane.f32.xlu0 %v3494_v7  ;;  %v7442_v32 = vpop.eup %6062  ;;  %v1807_v10 = vrot.slane %v1799_v30, %v6567_v26  ;;  %v1814_v21 = vrot.slane %v1800_v56, %v6567_v26 }
 0x3fc   : > { %v3473_v6 = vsel %vm2139_vm2, %v7442_v32, 0.0 }
 0x3ff   : > { %3498 = vadd.xlane.f32.xlu0 %v3497_v54 }
 0x409   : > { %3468 = vadd.xlane.f32.xlu1 %v3467_v20 }
 0x40d   : > { %3474 = vadd.xlane.f32.xlu1 %v3473_v6 }
 0x45c   : > { %v3457_v19 = vpop.xlane.xlu0 %3456 }
 0x45d   : > { %6064 = vrcp.f32 %v3457_v19  ;;  %v3454_v36 = vpop.xlane.xlu1 %3453 }
 0x45e   : > { %6066 = vrcp.f32 %v3454_v36 }
 0x461   : > { %v3460_v27 = vpop.xlane.xlu1 %3459 }
 0x462   : > { %6068 = vrcp.f32 %v3460_v27 }
 0x464   : > { %v3463_v37 = vpop.xlane.xlu0 %3462 }
 0x465   : > { %v1578_v24 = vpop.permute.xlu1 %1577  ;;  %6070 = vrcp.f32 %v3463_v37 }
 0x466   : > { %v1815_v42 = vcombine.low %v1562_v18, %v1578_v24  ;;  %v1816_v8 = vcombine.high %v1562_v18, %v1578_v24 }
 0x467   : > { %v6065_v11 = vpop.eup %6064 }
 0x468   : > { %v6067_v14 = vpop.eup %6066  ;;  %v3517_v46 = vmul.f32 %v6065_v11, %v7327_v34  ;;  %v1823_v62 = vrot.slane %v1815_v42, %v6567_v26  ;;  %v1830_v7 = vrot.slane %v1816_v8, %v6567_v26  ;;  %v3466_v18 = vpop.xlane.xlu0 %3465 }
 0x469   : > { %v3516_v47 = vmul.f32 %v6067_v14, %v7330_v28  ;;  %6072 = vrcp.f32 %v3466_v18 }
 0x46a   : > { %5832 = vmatmul.mubr.msk.f32.vlgmr.msra.gmra.mrb[20].mxu0 %vm2139_vm2, %v3517_v46  ;;  %v1831_v54 = vcombine.low %v1807_v10, %v1823_v62  ;;  %v1832_v20 = vcombine.high %v1807_v10, %v1823_v62  ;;  %v1847_v6 = vcombine.low %v1814_v21, %v1830_v7  ;;  %v1848_v5 = vcombine.high %v1814_v21, %v1830_v7 }
 0x46b   : > { %5827 = vmatmul.mubr.msk.f32.vlgmr.msra.gmra.mrb[16].mxu1 %vm2139_vm2, %v3516_v47  ;;  %5841 = vmatprep.mubr.msk.f32.mxu0 %vm6283_vm1, %v6282_v53 }
 0x46c   : > { %5835 = vmatpush3.msra.mxu1 %v2067_v33  ;;  %5836 = vmatprep.mubr.msk.f32.mxu1 %vm6283_vm1, %v6282_v53  ;;  %v6069_v34 = vpop.eup %6068  ;;  %v1839_v28 = vrot.slane %v1831_v54, %v6581_v31  ;;  %v1846_v3 = vrot.slane %v1832_v20, %v6581_v31  ;;  %v1855_v19 = vrot.slane %v1847_v6, %v6581_v31  ;;  %v3472_v11 = vpop.xlane.xlu0 %3471 }
 0x46d   : > { %v1862_v36 = vrot.slane %v1848_v5, %v6581_v31  ;;  %5844 = vmatprep.subr.mxu1 %v6282_v53  ;;  %v3518_v27 = vmul.f32 %v6069_v34, %v7339_v17  ;;  %6074 = vrcp.f32 %v3472_v11 }
 0x46e   : > { %v2071_v33 = vcombine.low %v1839_v28, %v1846_v3  ;;  %v5580_v30 = vcombine.high %v1839_v28, %v1846_v3 }
 0x46f   : > { %v2087_v56 = vcombine.low %v1855_v19, %v1862_v36  ;;  %v5581_v24 = vcombine.high %v1855_v19, %v1862_v36  ;;  %5837 = vmatmul.mubr.msk.f32.vlgmr.msra.gmra.mrb[18].mxu1 %vm2139_vm2, %v3518_v27  ;;  %v6071_v21 = vpop.eup %6070 }
 0x470   : > { %v7466_v42 = vrot.slane %v2071_v33, %v6567_v26  ;;  %v7469_v8 = vrot.slane %v5580_v30, %v6567_v26  ;;  %5845 = vmatpush3.msra.mxu1 %v1932_v15  ;;  %5846 = vmatprep.mubr.msk.f32.mxu1 %vm6283_vm1, %v6282_v53  ;;  %v3478_v14 = vpop.xlane.xlu0 %3477  ;;  %v3519_v54 = vmul.f32 %v6071_v21, %v7345_v23 }
 0x471   : > { %v7472_v37 = vrot.slane %v2087_v56, %v6567_v26  ;;  %v7475_v17 = vrot.slane %v5581_v24, %v6567_v26  ;;  %5854 = vmatprep.subr.mxu1 %v6282_v53  ;;  %6076 = vrcp.f32 %v3478_v14 }
 0x472   : > { %v2103_v10 = vcombine.low %v7466_v42, %v7469_v8  ;;  %v2104_v41 = vcombine.high %v7466_v42, %v7469_v8 }
 0x473   : > { %v2119_v46 = vcombine.low %v7472_v37, %v7475_v17  ;;  %v6073_v38 = vpop.eup %6072 }
 0x474   : > { %v7488_v47 = vrot.slane %v2103_v10, %v6581_v31  ;;  %v3520_v15 = vmul.f32 %v6073_v38, %v7349_v12  ;;  %v3481_v62 = vpop.xlane.xlu0 %3480  ;;  %v2118_v34 = vrot.slane %v2104_v41, %v6581_v31  ;;  %v5306_v41 = vld [vmem:[#allocation7] sm:$0xff] }
 0x475   : > { %v7491_v50 = vrot.slane %v2119_v46, %v6581_v31 }
 0x476   : > { %5847 = vmatmul.mubr.msk.f32.vlgmr.msra.gmra.mrb[20].mxu1 %vm2139_vm2, %v3520_v15 }
 0x477   : > { %v2135_v7 = vcombine.low %v7488_v47, %v7491_v50  ;;  %v6075_v20 = vpop.eup %6074  ;;  %5855 = vmatpush3.msra.mxu1 %v2068_v52  ;;  %5856 = vmatprep.mubr.msk.f32.mxu1 %vm6283_vm1, %v6282_v53  ;;  %v2136_v58 = vcombine.high %v7488_v47, %v7491_v50 }
 0x478   : > { %v3522_v6 = vmul.f32 %v6075_v20, %v7354_v55  ;;  %v3484_v12 = vpop.xlane.xlu0 %3483  ;;  %5864 = vmatprep.subr.mxu1 %v6282_v53 }
 0x479   : > { %5840 = vmatpush3.msra.mxu0 %v2135_v7  ;;  %6078 = vrcp.f32 %v3484_v12 }
 0x47a   : > { %5842 = vmatmul.mubr.msk.f32.vlgmr.msra.gmra.mrb[22].mxu0 %vm2139_vm2, %v3519_v54  ;;  %5849 = vmatprep.subr.mxu0 %v6282_v53 }
 0x47b   : > { %5850 = vmatpush3.msra.mxu0 %v2000_v40  ;;  %5857 = vmatmul.mubr.msk.f32.vlgmr.msra.gmra.mrb[22].mxu1 %vm2139_vm2, %v3522_v6  ;;  %v6077_v23 = vpop.eup %6076 }
 0x47c   : > { %5851 = vmatprep.mubr.msk.f32.mxu0 %vm6283_vm1, %v6282_v53  ;;  %5865 = vmatpush3.msra.mxu1 %v1933_v45  ;;  %v3524_v55 = vmul.f32 %v6077_v23, %v7359_v43  ;;  %v3487_v39 = vpop.xlane.xlu0 %3486 }
 0x47d   : > { %5866 = vmatprep.mubr.msk.f32.mxu1 %vm6283_vm1, %v6282_v53  ;;  %5874 = vmatprep.subr.mxu1 %v6282_v53 }
 0x47e   : > { %5859 = vmatprep.subr.mxu0 %v6282_v53 }
 0x47f   : > { %5867 = vmatmul.mubr.msk.f32.vlgmr.msra.gmra.mrb[24].mxu1 %vm2139_vm2, %v3524_v55 }
 0x480   : > { %5875 = vmatpush3.msra.mxu1 %v2069_v60  ;;  %5876 = vmatprep.mubr.msk.f32.mxu1 %vm6283_vm1, %v6282_v53  ;;  %v3490_v57 = vpop.xlane.xlu0 %3489 }
 0x481   : > { %5884 = vmatprep.subr.mxu1 %v6282_v53  ;;  %6080 = vrcp.f32 %v3490_v57 }
 0x483   : > { %v6079_v29 = vpop.eup %6078 }
 0x484   : > { %v3526_v45 = vmul.f32 %v6079_v29, %v7381_v61  ;;  %v3493_v40 = vpop.xlane.xlu0 %3492 }
 0x486   : > { %5877 = vmatmul.mubr.msk.f32.vlgmr.msra.gmra.mrb[26].mxu1 %vm2139_vm2, %v3526_v45 }
 0x487   : > { %5885 = vmatpush3.msra.mxu1 %v1934_v4  ;;  %5886 = vmatprep.mubr.msk.f32.mxu1 %vm6283_vm1, %v6282_v53 }
 0x488   : > { %v3496_v43 = vpop.xlane.xlu0 %3495  ;;  %5894 = vmatprep.subr.mxu1 %v6282_v53 }
 0x489   : > { %6082 = vrcp.f32 %v3496_v43 }
 0x48b   : > { %v6081_v9 = vpop.eup %6080 }
 0x48c   : > { %v3528_v52 = vmul.f32 %v6081_v9, %v7398_v13  ;;  %v3499_v5 = vpop.xlane.xlu0 %3498 }
 0x48e   : > { %5887 = vmatmul.mubr.msk.f32.vlgmr.msra.gmra.mrb[28].mxu1 %vm2139_vm2, %v3528_v52 }
 0x48f   : > { %5895 = vmatpush3.msra.mxu1 %v2070_v48  ;;  %5896 = vmatprep.mubr.msk.f32.mxu1 %vm6283_vm1, %v6282_v53  ;;  %v2120_v48 = vcombine.high %v7472_v37, %v7475_v17 }
 0x491   : > { %v2134_v28 = vrot.slane %v2120_v48, %v6581_v31  ;;  %v5307_v48 = vld [vmem:[#allocation7 + $0x8] sm:$0xff] }
 0x493   : > { %v6083_v22 = vpop.eup %6082  ;;  %v2137_v19 = vcombine.low %v2118_v34, %v2134_v28  ;;  %v2138_v33 = vcombine.high %v2118_v34, %v2134_v28 }
 0x494   : > { %v3530_v1 = vmul.f32 %v6083_v22, %v7430_v35 }
 0x496   : > { %v3469_v4 = vpop.xlane.xlu1 %3468  ;;  %5897 = vmatmul.mubr.msk.f32.vlgmr.msra.gmra.mrb[30].mxu1 %vm2139_vm2, %v3530_v1 }
 0x497   : > { %6084 = vrcp.f32 %v3469_v4 }
 0x49a   : > { %v3475_v61 = vpop.xlane.xlu1 %3474 }
 0x49b   : > { %6086 = vrcp.f32 %v3475_v61 }
 0x49c   : > { %6088 = vrcp.f32 %v3481_v62 }
 0x49d   : > { %6090 = vrcp.f32 %v3487_v39 }
 0x49e   : > { %6092 = vrcp.f32 %v3493_v40 }
 0x49f   : > { %6094 = vrcp.f32 %v3499_v5 }
 0x4a1   : > { %v6085_v13 = vpop.eup %6084 }
 0x4a2   : > { %v3521_v60 = vmul.f32 %v6085_v13, %v7438_v44 }
 0x4a4   : > { %5852 = vmatmul.mubr.msk.f32.vlgmr.msra.gmra.mrb[24].mxu0 %vm2139_vm2, %v3521_v60 }
 0x4a5   : > { %v6087_v35 = vpop.eup %6086  ;;  %5860 = vmatpush3.msra.mxu0 %v2136_v58  ;;  %5861 = vmatprep.mubr.msk.f32.mxu0 %vm6283_vm1, %v6282_v53 }
 0x4a6   : > { %v3523_v44 = vmul.f32 %v6087_v35, %v7442_v32  ;;  %5869 = vmatprep.subr.mxu0 %v6282_v53  ;;  %v6089_v18 = vpop.eup %6088 }
 0x4a7   : > { %v3525_v3 = vmul.f32 %v6089_v18, %v7366_v51  ;;  %v6091_v32 = vpop.eup %6090 }
 0x4a8   : > { %5862 = vmatmul.mubr.msk.f32.vlgmr.msra.gmra.mrb[26].mxu0 %vm2139_vm2, %v3523_v44  ;;  %v3527_v36 = vmul.f32 %v6091_v32, %v7390_v63  ;;  %v5926_v32 = vpack.c.bf16 %v5307_v48, %v5306_v41 }
 0x4a9   : > { %5870 = vmatpush3.msra.mxu0 %v2001_v2  ;;  %5871 = vmatprep.mubr.msk.f32.mxu0 %vm6283_vm1, %v6282_v53  ;;  %v6093_v2 = vpop.eup %6092 }
 0x4aa   : > { %5879 = vmatprep.subr.mxu0 %v6282_v53  ;;  %v3529_v51 = vmul.f32 %v6093_v2, %v7424_v49  ;;  %v6095_v27 = vpop.eup %6094  ;;  %5927 = vmatprep.subr.bf16.mxu1 %v5926_v32 }
 0x4ab   : > { %v3531_v63 = vmul.f32 %v6095_v27, %v7434_v16  ;;  %5929 = vmatpush3.bf16.msra.mxu1 %v5926_v32 }
 0x4ac   : > { %5872 = vmatmul.mubr.msk.f32.vlgmr.msra.gmra.mrb[28].mxu0 %vm2139_vm2, %v3525_v3 }
 0x4ad   : > { %5880 = vmatpush3.msra.mxu0 %v2137_v19  ;;  %5881 = vmatprep.mubr.msk.f32.mxu0 %vm6283_vm1, %v6282_v53 }
 0x4ae   : > { %5889 = vmatprep.subr.mxu0 %v6282_v53 }
 0x4b0   : > { %5882 = vmatmul.mubr.msk.f32.vlgmr.msra.gmra.mrb[30].mxu0 %vm2139_vm2, %v3527_v36 }
 0x4b1   : > { %5890 = vmatpush3.msra.mxu0 %v2002_v59  ;;  %5891 = vmatprep.mubr.msk.f32.mxu0 %vm6283_vm1, %v6282_v53 }
 0x4b2   : > { %5899 = vmatprep.subr.mxu0 %v6282_v53 }
 0x4b4   : > { %5892 = vmatmul.mubr.msk.f32.vlgmr.msra.gmra.mrb[32].mxu0 %vm2139_vm2, %v3529_v51 }
 0x4b5   : > { %5900 = vmatpush3.msra.mxu0 %v2138_v33  ;;  %5901 = vmatprep.mubr.msk.f32.mxu0 %vm6283_vm1, %v6282_v53 }
 0x4b8   : > { %5902 = vmatmul.mubr.msk.f32.vlgmr.msra.gmra.mrb[34].mxu0 %vm2139_vm2, %v3531_v63 }
 0x53d   : > { %v7585_v0 = vpop.f32.mrb[20].mxu0 }
 0x53e   : > { %v5833_v25 = vpop.f32.mrb[21].mxu0  ;;  %v3601_v59 = vpop.f32.mrb[16].mxu1 }
 0x53f   : > { %v5828_v30 = vpop.f32.mrb[17].mxu1 }
 0x542   : > { %v3747_v49 = vpop.f32.mrb[18].mxu1 }
 0x543   : > { %v5838_v56 = vpop.f32.mrb[19].mxu1 }
 0x549   : > { %v3893_v24 = vpop.f32.mrb[20].mxu1 }
 0x54a   : > { %v5848_v11 = vpop.f32.mrb[21].mxu1 }
 0x54d   : > { %v7587_v42 = vpop.f32.mrb[22].mxu0 }
 0x54e   : > { %v5843_v8 = vpop.f32.mrb[23].mxu0  ;;  %v4039_v37 = vpop.f32.mrb[22].mxu1 }
 0x54f   : > { %v5858_v17 = vpop.f32.mrb[23].mxu1 }
 0x552   : > { %v4185_v14 = vpop.f32.mrb[24].mxu1 }
 0x553   : > { %v4700_v53 = vcombine.low %v3601_v59, %v4185_v14  ;;  %v4701_v10 = vcombine.high %v3601_v59, %v4185_v14  ;;  %v5868_v16 = vpop.f32.mrb[25].mxu1 }
 0x555   : > { %v4708_v54 = vrot.slane %v4700_v53, %v6567_v26  ;;  %v4715_v20 = vrot.slane %v4701_v10, %v6567_v26 }
 0x559   : > { %v4331_v46 = vpop.f32.mrb[26].mxu1 }
 0x55a   : > { %v4836_v21 = vcombine.low %v3747_v49, %v4331_v46  ;;  %v4837_v47 = vcombine.high %v3747_v49, %v4331_v46  ;;  %v5878_v50 = vpop.f32.mrb[27].mxu1 }
 0x55c   : > { %v4844_v13 = vrot.slane %v4836_v21, %v6567_v26  ;;  %v4851_v34 = vrot.slane %v4837_v47, %v6567_v26 }
 0x561   : > { %v4477_v38 = vpop.f32.mrb[28].mxu1 }
 0x562   : > { %v4716_v15 = vcombine.low %v3893_v24, %v4477_v38  ;;  %v4717_v62 = vcombine.high %v3893_v24, %v4477_v38  ;;  %v5888_v7 = vpop.f32.mrb[29].mxu1 }
 0x564   : > { %v4724_v6 = vrot.slane %v4716_v15, %v6567_v26  ;;  %v4731_v12 = vrot.slane %v4717_v62, %v6567_v26 }
 0x566   : > { %v4732_v23 = vcombine.low %v4708_v54, %v4724_v6  ;;  %v4733_v55 = vcombine.high %v4708_v54, %v4724_v6  ;;  %v4748_v39 = vcombine.low %v4715_v20, %v4731_v12  ;;  %v4749_v57 = vcombine.high %v4715_v20, %v4731_v12 }
 0x568   : > { %v4740_v29 = vrot.slane %v4732_v23, %v6581_v31  ;;  %v4747_v45 = vrot.slane %v4733_v55, %v6581_v31  ;;  %v4756_v40 = vrot.slane %v4748_v39, %v6581_v31  ;;  %v4763_v43 = vrot.slane %v4749_v57, %v6581_v31 }
 0x569   : > { %v4623_v9 = vpop.f32.mrb[30].mxu1 }
 0x56a   : > { %v4972_v52 = vcombine.low %v4740_v29, %v4747_v45  ;;  %v5630_v22 = vcombine.high %v4740_v29, %v4747_v45  ;;  %v4988_v1 = vcombine.low %v4756_v40, %v4763_v43  ;;  %v5631_v4 = vcombine.high %v4756_v40, %v4763_v43  ;;  %v5898_v61 = vpop.f32.mrb[31].mxu1 }
 0x56b   : > { %v4852_v60 = vcombine.low %v4039_v37, %v4623_v9  ;;  %v4853_v58 = vcombine.high %v4039_v37, %v4623_v9 }
 0x56c   : > { %v4979_v35 = vrot.slane %v4972_v52, %v6567_v26  ;;  %v4987_v5 = vrot.slane %v5630_v22, %v6567_v26  ;;  %v4995_v44 = vrot.slane %v4988_v1, %v6567_v26  ;;  %v5003_v18 = vrot.slane %v5631_v4, %v6567_v26 }
 0x56d   : > { %v4860_v28 = vrot.slane %v4852_v60, %v6567_v26  ;;  %v4867_v3 = vrot.slane %v4853_v58, %v6567_v26 }
 0x56e   : > { %v5004_v19 = vcombine.low %v4979_v35, %v4987_v5  ;;  %v5020_v36 = vcombine.low %v4995_v44, %v5003_v18  ;;  %v5005_v2 = vcombine.high %v4979_v35, %v4987_v5  ;;  %v5021_v51 = vcombine.high %v4995_v44, %v5003_v18 }
 0x56f   : > { %v4868_v27 = vcombine.low %v4844_v13, %v4860_v28  ;;  %v4869_v33 = vcombine.high %v4844_v13, %v4860_v28  ;;  %v4884_v63 = vcombine.low %v4851_v34, %v4867_v3  ;;  %v4885_v25 = vcombine.high %v4851_v34, %v4867_v3 }
 0x570   : > { %v7606_v59 = vrot.slane %v5004_v19, %v6581_v31  ;;  %v7609_v30 = vrot.slane %v5020_v36, %v6581_v31  ;;  %v7612_v49 = vrot.slane %v5005_v2, %v6581_v31  ;;  %v7615_v56 = vrot.slane %v5021_v51, %v6581_v31 }
 0x571   : > { %v4876_v24 = vrot.slane %v4868_v27, %v6581_v31  ;;  %v4883_v11 = vrot.slane %v4869_v33, %v6581_v31  ;;  %v4892_v8 = vrot.slane %v4884_v63, %v6581_v31  ;;  %v4899_v37 = vrot.slane %v4885_v25, %v6581_v31  ;;  %v5308_v25 = vld [vmem:[#allocation7 + $0x10] sm:$0xff] }
 0x572   : > { %v5037_v17 = vcombine.high %v7606_v59, %v7609_v30  ;;  %v5038_v14 = vcombine.low %v7612_v49, %v7615_v56  ;;  %v5039_v53 = vcombine.high %v7612_v49, %v7615_v56  ;;  %v5036_v10 = vcombine.low %v7606_v59, %v7609_v30 }
 0x573   : > { %v5108_v16 = vcombine.low %v4876_v24, %v4883_v11  ;;  %v5634_v46 = vcombine.high %v4876_v24, %v4883_v11  ;;  %v5124_v21 = vcombine.low %v4892_v8, %v4899_v37  ;;  %v5635_v47 = vcombine.high %v4892_v8, %v4899_v37  ;;  %v5309_v24 = vld [vmem:[#allocation7 + $0x18] sm:$0xff] }
 0x574   : > { %5248 = vrot.lane.b32.xlu1 %v5037_v17, %s6284_s29 }
 0x575   : > { %v5115_v38 = vrot.slane %v5108_v16, %v6567_v26  ;;  %v5123_v15 = vrot.slane %v5634_v46, %v6567_v26  ;;  %v5131_v62 = vrot.slane %v5124_v21, %v6567_v26  ;;  %v5139_v7 = vrot.slane %v5635_v47, %v6567_v26 }
 0x576   : > { %v5930_v21 = vpack.c.bf16 %v5309_v24, %v5308_v25 }
 0x577   : > { %v3966_v50 = vpop.f32.mrb[24].mxu0  ;;  %v5140_v20 = vcombine.low %v5115_v38, %v5123_v15  ;;  %v5156_v6 = vcombine.low %v5131_v62, %v5139_v7  ;;  %v5141_v12 = vcombine.high %v5115_v38, %v5123_v15  ;;  %v5157_v23 = vcombine.high %v5131_v62, %v5139_v7 }
 0x578   : > { %v5853_v54 = vpop.f32.mrb[25].mxu0  ;;  %5264 = vrot.lane.b32.xlu1 %v5038_v14, %s6285_s14  ;;  %5931 = vmatprep.subr.bf16.mxu1 %v5930_v21 }
 0x579   : > { %v7636_v39 = vrot.slane %v5140_v20, %v6581_v31  ;;  %v7639_v57 = vrot.slane %v5156_v6, %v6581_v31  ;;  %v7642_v29 = vrot.slane %v5141_v12, %v6581_v31  ;;  %v7645_v45 = vrot.slane %v5157_v23, %v6581_v31  ;;  %5933 = vmatpush3.bf16.msra.mxu1 %v5930_v21 }
 0x57b   : > { %v4112_v55 = vpop.f32.mrb[26].mxu0  ;;  %v5173_v43 = vcombine.high %v7636_v39, %v7639_v57  ;;  %v5174_v9 = vcombine.low %v7642_v29, %v7645_v45  ;;  %v5175_v52 = vcombine.high %v7642_v29, %v7645_v45  ;;  %v5172_v22 = vcombine.low %v7636_v39, %v7639_v57  ;;  %v5638_v39 = vld [vmem:[%s7799_s3] ss:$0 sm:$0xff] }
 0x57c   : > { %v5863_v40 = vpop.f32.mrb[27].mxu0 }
 0x57f   : > { %v4258_v1 = vpop.f32.mrb[28].mxu0 }
 0x580   : > { %v4768_v4 = vcombine.low %v7585_v0, %v4258_v1  ;;  %v4769_v61 = vcombine.high %v7585_v0, %v4258_v1  ;;  %v5873_v13 = vpop.f32.mrb[29].mxu0 }
 0x582   : > { %v4776_v34 = vrot.slane %v4768_v4, %v6567_v26  ;;  %v4783_v28 = vrot.slane %v4769_v61, %v6567_v26 }
 0x583   : > { %v4404_v60 = vpop.f32.mrb[30].mxu0 }
 0x584   : > { %v4904_v58 = vcombine.low %v7587_v42, %v4404_v60  ;;  %v4905_v41 = vcombine.high %v7587_v42, %v4404_v60  ;;  %v5883_v48 = vpop.f32.mrb[31].mxu0 }
 0x586   : > { %v4912_v42 = vrot.slane %v4904_v58, %v6567_v26  ;;  %v4919_v14 = vrot.slane %v4905_v41, %v6567_v26 }
 0x587   : > { %v4550_v35 = vpop.f32.mrb[32].mxu0 }
 0x588   : > { %v4784_v5 = vcombine.low %v3966_v50, %v4550_v35  ;;  %v4785_v44 = vcombine.high %v3966_v50, %v4550_v35  ;;  %v5893_v18 = vpop.f32.mrb[33].mxu0 }
 0x58a   : > { %v4792_v3 = vrot.slane %v4784_v5, %v6567_v26  ;;  %v4799_v32 = vrot.slane %v4785_v44, %v6567_v26 }
 0x58b   : > { %v4696_v0 = vpop.f32.mrb[34].mxu0 }
 0x58c   : > { %v4800_v19 = vcombine.low %v4776_v34, %v4792_v3  ;;  %v4801_v36 = vcombine.high %v4776_v34, %v4792_v3  ;;  %v4816_v2 = vcombine.low %v4783_v28, %v4799_v32  ;;  %v4817_v51 = vcombine.high %v4783_v28, %v4799_v32  ;;  %v5903_v27 = vpop.f32.mrb[35].mxu0 }
 0x58d   : > { %v4920_v33 = vcombine.low %v4112_v55, %v4696_v0  ;;  %v4921_v63 = vcombine.high %v4112_v55, %v4696_v0 }
 0x58e   : > { %v4808_v11 = vrot.slane %v4800_v19, %v6581_v31  ;;  %v4815_v8 = vrot.slane %v4801_v36, %v6581_v31  ;;  %v4824_v37 = vrot.slane %v4816_v2, %v6581_v31  ;;  %v4831_v17 = vrot.slane %v4817_v51, %v6581_v31 }
 0x58f   : > { %v4928_v16 = vrot.slane %v4920_v33, %v6567_v26  ;;  %v4935_v46 = vrot.slane %v4921_v63, %v6567_v26 }
 0x590   : > { %v5040_v47 = vcombine.low %v4808_v11, %v4815_v8  ;;  %v5632_v50 = vcombine.high %v4808_v11, %v4815_v8  ;;  %v5056_v38 = vcombine.low %v4824_v37, %v4831_v17  ;;  %v5633_v15 = vcombine.high %v4824_v37, %v4831_v17 }
 0x591   : > { %v4936_v62 = vcombine.low %v4912_v42, %v4928_v16  ;;  %v4937_v7 = vcombine.high %v4912_v42, %v4928_v16  ;;  %v4952_v54 = vcombine.low %v4919_v14, %v4935_v46  ;;  %v4953_v20 = vcombine.high %v4919_v14, %v4935_v46 }
 0x592   : > { %v5047_v6 = vrot.slane %v5040_v47, %v6567_v26  ;;  %v5055_v12 = vrot.slane %v5632_v50, %v6567_v26  ;;  %v5063_v23 = vrot.slane %v5056_v38, %v6567_v26  ;;  %v5071_v55 = vrot.slane %v5633_v15, %v6567_v26 }
 0x593   : > { %v4944_v40 = vrot.slane %v4936_v62, %v6581_v31  ;;  %v4951_v1 = vrot.slane %v4937_v7, %v6581_v31  ;;  %v4960_v4 = vrot.slane %v4952_v54, %v6581_v31  ;;  %v4967_v61 = vrot.slane %v4953_v20, %v6581_v31 }
 0x594   : > { %v5073_v13 = vcombine.high %v5047_v6, %v5055_v12  ;;  %v5089_v60 = vcombine.high %v5063_v23, %v5071_v55  ;;  %v5072_v58 = vcombine.low %v5047_v6, %v5055_v12  ;;  %v5088_v41 = vcombine.low %v5063_v23, %v5071_v55 }
 0x595   : > { %v5176_v48 = vcombine.low %v4944_v40, %v4951_v1  ;;  %v5636_v35 = vcombine.high %v4944_v40, %v4951_v1  ;;  %v5192_v5 = vcombine.low %v4960_v4, %v4967_v61  ;;  %v5637_v44 = vcombine.high %v4960_v4, %v4967_v61 }
 0x596   : > { %v5087_v18 = vrot.slane %v5073_v13, %v6581_v31  ;;  %v5103_v34 = vrot.slane %v5089_v60, %v6581_v31  ;;  %v5080_v28 = vrot.slane %v5072_v58, %v6581_v31  ;;  %v5096_v3 = vrot.slane %v5088_v41, %v6581_v31 }
 0x597   : > { %v5183_v32 = vrot.slane %v5176_v48, %v6567_v26  ;;  %v5191_v0 = vrot.slane %v5636_v35, %v6567_v26  ;;  %v5199_v19 = vrot.slane %v5192_v5, %v6567_v26  ;;  %v5207_v36 = vrot.slane %v5637_v44, %v6567_v26 }
 0x598   : > { %v5106_v2 = vcombine.low %v5087_v18, %v5103_v34  ;;  %v5105_v51 = vcombine.high %v5080_v28, %v5096_v3  ;;  %v5107_v27 = vcombine.high %v5087_v18, %v5103_v34  ;;  %v5104_v42 = vcombine.low %v5080_v28, %v5096_v3 }
 0x599   : > { %v5208_v33 = vcombine.low %v5183_v32, %v5191_v0  ;;  %v5224_v63 = vcombine.low %v5199_v19, %v5207_v36  ;;  %v5209_v25 = vcombine.high %v5183_v32, %v5191_v0  ;;  %v5225_v24 = vcombine.high %v5199_v19, %v5207_v36 }
 0x59a   : > { %5266 = vrot.lane.b32.xlu1 %v5106_v2, %s6285_s14  ;;  %5250 = vrot.lane.b32.xlu0 %v5105_v51, %s6284_s29 }
 0x59b   : > { %v5216_v11 = vrot.slane %v5208_v33, %v6581_v31  ;;  %v5232_v8 = vrot.slane %v5224_v63, %v6581_v31  ;;  %v5223_v37 = vrot.slane %v5209_v25, %v6581_v31  ;;  %v5239_v26 = vrot.slane %v5225_v24, %v6581_v31 }
 0x59d   : > { %v5241_v17 = vcombine.high %v5216_v11, %v5232_v8  ;;  %v5242_v14 = vcombine.low %v5223_v37, %v5239_v26  ;;  %v5243_v16 = vcombine.high %v5223_v37, %v5239_v26  ;;  %v5240_v46 = vcombine.low %v5216_v11, %v5232_v8 }
 0x59e   : > { %5282 = vrot.lane.b32.xlu1 %v5107_v27, %s6286_s5  ;;  %5280 = vrot.lane.b32.xlu0 %v5039_v53, %s6286_s5 }
 0x5a2   : > { %5252 = vrot.lane.b32.xlu0 %v5173_v43, %s6284_s29  ;;  %5254 = vrot.lane.b32.xlu1 %v5241_v17, %s6284_s29 }
 0x5a6   : > { %5268 = vrot.lane.b32.xlu0 %v5174_v9, %s6285_s14  ;;  %5270 = vrot.lane.b32.xlu1 %v5242_v14, %s6285_s14 }
 0x5aa   : > { %5284 = vrot.lane.b32.xlu0 %v5175_v52, %s6286_s5  ;;  %5286 = vrot.lane.b32.xlu1 %v5243_v16, %s6286_s5 }
 0x5e6   : > { %v5249_v31 = vpop.permute.xlu1 %5248 }
 0x5e7   : > { %v5292_v9 = vsel %vm2139_vm2, %v5036_v10, %v5249_v31 }
 0x5ea   : > { %v5265_v49 = vpop.permute.xlu1 %5264 }
 0x5eb   : > { %v5297_v21 = vsel %vm5296_vm3, %v5292_v9, %v5265_v49 }
 0x60c   : > { %v5267_v56 = vpop.permute.xlu1 %5266  ;;  %v5251_v53 = vpop.permute.xlu0 %5250 }
 0x60d   : > { %v5293_v43 = vsel %vm2139_vm2, %v5104_v42, %v5251_v53 }
 0x60e   : > { %v5298_v29 = vsel %vm5296_vm3, %v5293_v43, %v5267_v56 }
 0x610   : > { %v5283_v47 = vpop.permute.xlu1 %5282  ;;  %v5281_v45 = vpop.permute.xlu0 %5280 }
 0x611   : > { %v5303_v52 = vsel %vm5301_vm4, %v5298_v29, %v5283_v47  ;;  %v5302_v50 = vsel %vm5301_vm4, %v5297_v21, %v5281_v45 }
 0x612   : > { %5912 = vmatprep.mubr.msk.f32.mxu1 %vm273_vm0, %v5302_v50 }
 0x613   : > { %5913 = vmatmul.mubr.msk.f32.vlgmr.msra.gmra.mrb[32].mxu1 %vm273_vm0, %v5303_v52 }
 0x614   : > { %v5255_v38 = vpop.permute.xlu1 %5254  ;;  %v5253_v15 = vpop.permute.xlu0 %5252 }
 0x615   : > { %v5295_v30 = vsel %vm2139_vm2, %v5240_v46, %v5255_v38  ;;  %v5294_v10 = vsel %vm2139_vm2, %v5172_v22, %v5253_v15 }
 0x618   : > { %v5271_v62 = vpop.permute.xlu1 %5270  ;;  %v5269_v59 = vpop.permute.xlu0 %5268 }
 0x619   : > { %v5300_v7 = vsel %vm5296_vm3, %v5295_v30, %v5271_v62  ;;  %v5299_v54 = vsel %vm5296_vm3, %v5294_v10, %v5269_v59 }
 0x61c   : > { %v5287_v20 = vpop.permute.xlu1 %5286  ;;  %v5285_v6 = vpop.permute.xlu0 %5284 }
 0x61d   : > { %v5305_v12 = vsel %vm5301_vm4, %v5300_v7, %v5287_v20  ;;  %v5304_v23 = vsel %vm5301_vm4, %v5299_v54, %v5285_v6 }
 0x61e   : > { %5915 = vmatprep.mubr.msk.f32.mxu1 %vm273_vm0, %v5304_v23 }
 0x61f   : > { %5916 = vmatmul.mubr.msk.f32.gmra.mrb[34].mxu1 %vm273_vm0, %v5305_v12 }
 0x6e6   : > { %v5914_v57 = vpop.f32.mrb[32].mxu1 }
 0x6e7   : > { %v5401_v22 = vadd.f32 %v5914_v57, %v5638_v39  ;;  %v5395_v55 = vpop.f32.mrb[33].mxu1 }
 0x6e8   : > { %v5396_v40 = vadd.f32 %v5638_v39, %v5395_v55 }
 0x6e9   : > { %5415 = vst.msk [vmem:[%s262_s10 + $0x8] sm:$0xff] %vm273_vm0, %v5401_v22 }
 0x6ea   : > { %5414 = vst.msk [vmem:[%s262_s10] sm:$0xff] %vm273_vm0, %v5396_v40 }
 0x6f2   : > { %v5917_v1 = vpop.f32.mrb[34].mxu1 }
 0x6f3   : > { %v5411_v4 = vadd.f32 %v5917_v1, %v5638_v39  ;;  %v5405_v61 = vpop.f32.mrb[35].mxu1 }
 0x6f4   : > { %v5406_v13 = vadd.f32 %v5638_v39, %v5405_v61 }
 0x6f5   : > { %5417 = vst.msk [vmem:[%s262_s10 + $0x18] sm:$0xff] %vm273_vm0, %v5411_v4 }
 0x6f6   : > { %5416 = vst.msk [vmem:[%s262_s10 + $0x10] sm:$0xff] %vm273_vm0, %v5406_v13 }
 0x6f7   : > { %6195 = shalt.err (!%p6192_p11)
}
 0x6f8   : > { %s6196_s14 = scalar_lea.hbm %s7744_s12, 512  ;;  %s6200_s6 = scalar_lea.hbm %s7800_s4, 1024 }
 0x6f9   : > { %p6197_p0 = scmp.ne.s32.totalorder %s7744_s12, %s6196_s14  ;;  %p6201_p6 = scmp.lt.u32.totalorder %s7744_s12, %s7800_s4 }
 0x6fa   : > { %p6202_p7 = scmp.lt.u32.totalorder %s6200_s6, %s6196_s14  ;;  %p6204_p8 = scmp.lt.u32.totalorder %s6196_s14, %s7744_s12 }
 0x6fb   : > { %p6198_p4 = pnand %p6197_p0, %p7829_p12 }
 0x6fc   : > { %p6203_p2 = por %p6202_p7, %p6201_p6 }
 0x6fd   : > { %p6199_p13 = pneg %p6198_p4 }
 0x6fe   : > { %p6205_p1 = por %p6204_p8, %p6203_p2 }
 0x700   : > { %p6206_p10 = pnand %p6205_p1, %p6199_p13 }
 0x702   : > { %6209 = shalt.err (!%p6206_p10)
}
 0x703   : > { %s6288_s28 = smov 128  }
 0x704   : > { %5944 = dma.vmem_to_hbm [thread:$0]  (%p7829_p12), %s7739_s13, 512, %s7744_s12, %s5419_s25, %s6288_s28, %s6288_s28, %s6284_s29  }
 0x705 PF: > { %s5449_s23 = sand.u32 1, %s6248_s15   ;;  %p7830_p3 = scmp.ne.s32.totalorder %s7808_s26, 0 }
 0x706   : > { %p7831_p5 = scmp.ge.s32.totalorder %s6268_s20, 2  ;;  %s5450_s18 = scalar_lea.sflag [#allocation4], %s5449_s23 }
 0x708   : > { %p5958_p9 = pnand %p7831_p5, %p7830_p3 }
 0x70a   : > { %6243 = dma.done.wait (!%p5958_p9), %s5450_s18, 512  }
 0x70b   : > { %6245 = vsyncadd (!%p5958_p9), %s5450_s18, 4294966784  ;;  %s21_s20 = sadd.s32 1, %s6268_s20   ;;  %s7832_s15 = smov %s6252_s16 }
 0x70c   : > { %p18_p11 = scmp.ge.s32.totalorder %s21_s20, 4   ;;  %s7833_s16 = smov %s6256_s17 }
 0x70d   : > { %s7834_s17 = smov %s6462_s11  ;;  %s7835_s18 = smov %s6264_s19 }
 0x70e   : > { %s7836_s19 = smov %s7838_s30  ;;  %20 = sbr.rel (!%p18_p11) target bundleno = 7 (0x7), region = 89 }
 0x715   :  { %5455 = vsyncpa [#allocation3], 1 }
 0x716   :  { %5457 = vsyncpa [#allocation3 + $0x1], 1 }
 0x717   :  { %5458 = vsyncpa [#allocation6], 1 }
 0x718   :  { %5459 = vsyncpa [#allocation4], 1 }
 0x719   :  { %5461 = vsyncpa [#allocation4 + $0x1], 1 }

// kernel: tpu_custom_call.1
= control target key start
LH: loop header
LB: loop body
LE: loop exit
PB: predicated region body
PF: predicated region fallthrough
CT: control target
= control target key end

     0   :  { %9 = vsyncpa [#allocation3], 0  ;;  %s7796_s0 = inlined_call_operand.hbm [shape: f32[2,32,32], index: 0, kind: input, shape index: {}]   ;;  %s7797_s1 = inlined_call_operand.hbm [shape: f32[32,96], index: 1, kind: input, shape index: {}]   ;;  %s7798_s2 = inlined_call_operand.hbm [shape: f32[32,32], index: 2, kind: input, shape index: {}]   ;;  %s7799_s3 = inlined_call_operand.vmem [shape: f32[1,32], index: 3, kind: input, shape index: {}]   ;;  %s7800_s4 = inlined_call_operand.hbm [shape: f32[2,32,32], index: 4, kind: output, shape index: {}]  }
   0x1   :  { %11 = vsyncpa [#allocation3 + $0x1], 0 }
   0x2   :  { %12 = vsyncpa [#allocation6], 0 }
   0x3   :  { %13 = vsyncpa [#allocation4], 0 }
   0x4   :  { %15 = vsyncpa [#allocation4 + $0x1], 0  ;;  %s6314_s15 = smov 0   ;;  %s6316_s16 = smov 0  }
   0x5   :  { %s6318_s17 = smov 0   ;;  %s6320_s18 = smov 0  }
   0x6   :  { %s6322_s19 = smov 0   ;;  %s6324_s20 = smov 0  }
   0x7 LB: > { %s5540_s21 = sadd.s32 4294967295, %s6268_s20   ;;  %s5541_s22 = sadd.s32 4294967294, %s6268_s20   ;;  %s6268_s20 = sphi %s6324_s20, %s21_s20   ;;  %s6264_s19 = sphi %s6322_s19, %s7836_s19   ;;  %s6260_s18 = sphi %s6320_s18, %s7835_s18   ;;  %s6256_s17 = sphi %s6318_s17, %s7834_s17   ;;  %s6252_s16 = sphi %s6316_s16, %s7833_s16   ;;  %s6248_s15 = sphi %s6314_s15, %s7832_s15  }
   0x8   : > { %p55_p0 = scmp.ne.s32.totalorder %s6252_s16, %s6248_s15  ;;  %p6348_p1 = scmp.eq.s32.totalorder %s5540_s21, 0 }
   0x9   : > { %p6352_p2 = scmp.eq.s32.totalorder %s5540_s21, 1  ;;  %p150_p3 = scmp.eq.s32.totalorder %s5541_s22, 1 }
   0xa   : > { %s7805_s23 = scalar_select %p6348_p1, 1, 0 }
   0xb   : > { %p6358_p4 = por %p6348_p1, %p55_p0  ;;  %p5542_p5 = scmp.ge.s32.totalorder %s6268_s20, 1 }
   0xc   : > { %p6363_p6 = por %p150_p3, %p55_p0  ;;  %p157_p7 = scmp.lt.s32.totalorder %s6268_s20, 3 }
   0xd   : > { %s7807_s25 = scalar_select %p6358_p4, 1, 0 }
   0xe   : > { %s7808_s26 = scalar_select %p6363_p6, 1, 0 }
   0xf   : > { %p6368_p8 = pnand %p5542_p5, %p157_p7  ;;  %s6270_s28 = smov [#allocation5]  }
  0x10   : > { %s169_s29 = sshll.u32 %s6270_s28, 4  ;;  %s6271_s5 = smov [#allocation7]   ;;  %s6372_s29 = int_to_ptr.vmem [resolvable:$true] %s169_s29 }
  0x11   : > { %p5946_p9 = pneg %p6368_p8  ;;  %s182_s6 = sshll.u32 %s6271_s5, 4  ;;  %s6383_s6 = int_to_ptr.vmem [resolvable:$true] %s182_s6 }
  0x12   : > { %s6096_s9 = scalar_lea.hbm %s7797_s1, 512 }
  0x13   : > { %p6379_p11 = pnand %p5946_p9, %p6348_p1  ;;  %p6097_p12 = scmp.ne.s32.totalorder %s7797_s1, %s6096_s9 }
  0x14   : > { %p6103_p5 = scmp.lt.u32.totalorder %s6096_s9, %s7797_s1 }
  0x15   : > { %p6098_p13 = pneg %p6379_p11 }
  0x17   : > { %p6099_p0 = pnand %p6098_p13, %p6097_p12 }
  0x19   : > { %p6100_p3 = pneg %p6099_p0 }
  0x1b   : > { %p6105_p7 = pnand %p6103_p5, %p6100_p3 }
  0x1d   : > { %6108 = shalt.err (!%p6105_p7)
}
  0x1e   : > { %s6109_s14 = scalar_lea.vmem %s6372_s29, 512  ;;  %p6117_p1 = scmp.lt.s32.totalorder %s6372_s29, %s6372_s29 }
  0x1f   : > { %p6110_p9 = scmp.ne.s32.totalorder %s6372_s29, %s6109_s14  ;;  %p6118_p12 = scmp.lt.s32.totalorder %s6109_s14, %s6109_s14 }
  0x21   : > { %p6112_p10 = pnand %p6110_p9, %p6098_p13  ;;  %p6119_p0 = por %p6118_p12, %p6117_p1 }
  0x23   : > { %p6113_p6 = pneg %p6112_p10 }
  0x25   : > { %p6120_p4 = pnand %p6119_p0, %p6113_p6 }
  0x27   : > { %6123 = shalt.err (!%p6120_p4)
}
  0x28   : > { %s6272_s21 = smov 128   ;;  %s6273_s22 = smov 8  }
  0x29   : > { %5949 = dma.hbm_to_vmem [thread:$0]  (!%p6379_p11), %s7797_s1, 512, %s6372_s29, [#allocation6], %s6272_s21, %s6272_s21, %s6273_s22  }
  0x2a   : > { %s6124_s9 = scalar_lea.hbm %s7798_s2, 512 }
  0x2b   : > { %p6125_p1 = scmp.ne.s32.totalorder %s7798_s2, %s6124_s9  ;;  %p6131_p10 = scmp.lt.u32.totalorder %s6124_s9, %s7798_s2 }
  0x2d   : > { %p6127_p4 = pnand %p6125_p1, %p6098_p13 }
  0x2f   : > { %p6128_p6 = pneg %p6127_p4 }
  0x31   : > { %p6133_p3 = pnand %p6131_p10, %p6128_p6 }
  0x33   : > { %6136 = shalt.err (!%p6133_p3)
}
  0x34   : > { %s6137_s29 = scalar_lea.vmem %s6383_s6, 512  ;;  %p6145_p12 = scmp.lt.s32.totalorder %s6383_s6, %s6383_s6 }
  0x35   : > { %p6138_p5 = scmp.ne.s32.totalorder %s6383_s6, %s6137_s29  ;;  %p6146_p0 = scmp.lt.s32.totalorder %s6137_s29, %s6137_s29 }
  0x37   : > { %p6140_p7 = pnand %p6138_p5, %p6098_p13  ;;  %p6147_p1 = por %p6146_p0, %p6145_p12 }
  0x39   : > { %p6141_p9 = pneg %p6140_p7 }
  0x3b   : > { %p6148_p4 = pnand %p6147_p1, %p6141_p9 }
  0x3d   : > { %6151 = shalt.err (!%p6148_p4)
}
  0x3e   : > { %5952 = dma.hbm_to_vmem [thread:$0]  (!%p6379_p11), %s7798_s2, 512, %s6383_s6, [#allocation6], %s6272_s21, %s6272_s21, %s6273_s22  }
  0x3f   : > { %s33_s30 = sadd.s32 1, %s6264_s19  ;;  %s42_s5 = sadd.s32 1, %s6256_s17 }
  0x40   : > { %p35_p13 = scmp.ge.s32.totalorder %s33_s30, 2  ;;  %p49_p6 = scmp.ne.s32.totalorder %s6256_s17, %s6252_s16 }
  0x41   : > { %p50_p10 = scmp.eq.s32.totalorder %s6268_s20, 0  ;;  %p5963_p3 = scmp.lt.s32.totalorder %s6268_s20, 2 }
  0x42   : > { %s7838_s30 = smov (%p35_p13, %s33_s30), 0  ;;  %p6453_p7 = por %p6352_p2, %p49_p6 }
  0x43   : > { %p51_p5 = por %p50_p10, %p49_p6  ;;  %s37_s8 = ssub.s32 %s6264_s19, %s7838_s30 }
  0x44   : > { %s7811_s7 = scalar_select %p6453_p7, 1, 0 }
  0x45   : > { %s199_s9 = sand.u32 1, %s6256_s17   ;;  %p40_p9 = scmp.eq.s32.totalorder %s37_s8, 0 }
  0x46   : > { %s5546_s6 = sshll.u32 %s199_s9, 5  ;;  %s5648_s10 = sshll.u32 %s6264_s19, 9 }
  0x47   : > { %s6462_s11 = scalar_select %p40_p9, %s6256_s17, %s42_s5  }
  0x48   : > { %s6467_s29 = scalar_lea.hbm %s7796_s0, %s5648_s10  ;;  %s203_s24 = scalar_lea.vmem [#allocation2], %s5546_s6 }
  0x49   : > { %s212_s14 = sshll.u32 %s203_s24, 4  ;;  %p6471_p2 = pnand %p5963_p3, %p51_p5  ;;  %s6475_s14 = int_to_ptr.vmem [resolvable:$true] %s212_s14 }
  0x4a   : > { %s6477_s5 = scalar_lea.sflag [#allocation3], %s199_s9  ;;  %s6152_s8 = scalar_lea.hbm %s6467_s29, 512 }
  0x4b   : > { %p6153_p11 = scmp.ne.s32.totalorder %s6467_s29, %s6152_s8  ;;  %p6154_p12 = pneg %p6471_p2 }
  0x4c   : > { %s6157_s12 = scalar_lea.hbm %s7796_s0, 1024  ;;  %p6158_p4 = scmp.lt.u32.totalorder %s6467_s29, %s7796_s0 }
  0x4d   : > { %p6155_p0 = pnand %p6154_p12, %p6153_p11  ;;  %p6159_p13 = scmp.lt.u32.totalorder %s6157_s12, %s6152_s8 }
  0x4e   : > { %p6161_p10 = scmp.lt.u32.totalorder %s6152_s8, %s6467_s29 }
  0x4f   : > { %p6156_p1 = pneg %p6155_p0  ;;  %p6160_p6 = por %p6159_p13, %p6158_p4 }
  0x51   : > { %p6162_p3 = por %p6161_p10, %p6160_p6 }
  0x53   : > { %p6163_p5 = pnand %p6162_p3, %p6156_p1 }
  0x55   : > { %6166 = shalt.err (!%p6163_p5)
}
  0x56   : > { %s6167_s9 = scalar_lea.vmem %s6475_s14, 512  ;;  %s6274_s6 = smov [#allocation2]  }
  0x57   : > { %p6168_p9 = scmp.ne.s32.totalorder %s6475_s14, %s6167_s9  ;;  %s6172_s10 = sshll.u32 %s6274_s6, 4  ;;  %s6173_s10 = int_to_ptr.vmem [resolvable:$false] %s6172_s10 }
  0x58   : > { %s6174_s13 = scalar_lea.vmem %s6173_s10, 1024  ;;  %p6175_p7 = scmp.lt.s32.totalorder %s6475_s14, %s6173_s10 }
  0x59   : > { %p6170_p11 = pnand %p6168_p9, %p6154_p12  ;;  %p6176_p4 = scmp.lt.s32.totalorder %s6174_s13, %s6167_s9 }
  0x5b   : > { %p6171_p0 = pneg %p6170_p11  ;;  %p6177_p13 = por %p6176_p4, %p6175_p7 }
  0x5d   : > { %p6178_p6 = pnand %p6177_p13, %p6171_p0 }
  0x5f   : > { %6181 = shalt.err (!%p6178_p6)
}
  0x60   : > { %5956 = dma.hbm_to_vmem [thread:$0]  (!%p6471_p2), %s6467_s29, 512, %s6475_s14, %s6477_s5, %s6272_s21, %s6272_s21, %s6273_s22  }
  0x61   : > { %224 = sbr.rel (%p6368_p8) target bundleno = 1797 (0x705), region = 36  ;;  %s6511_s8 = sand.u32 (!%p6368_p8), 1, %s6252_s16  }
  0x62   : > { %s5550_s12 = sshll.u32 (!%p6368_p8), %s6511_s8, 5  ;;  %s227_s24 = scalar_lea.sflag (!%p6368_p8), [#allocation3], %s6511_s8 }
  0x63   : > { %s230_s28 = scalar_lea.vmem (!%p6368_p8), [#allocation2], %s5550_s12  ;;  %p7813_p7 = scmp.ne.s32.totalorder (!%p6368_p8), %s7807_s25, 0 }
  0x68   : > { %6235 = dma.done.wait (%p7813_p7), %s227_s24, 512  }
  0x69   : > { %6237 = vsyncadd (%p7813_p7), %s227_s24, 4294966784  ;;  %p7814_p2 = scmp.ne.s32.totalorder %s7805_s23, 0 }
  0x6b   : > { %6239 = dma.done.wait (%p7814_p2), [#allocation6], 1024  }
  0x6c   : > { %6241 = vsyncadd (%p7814_p2), [#allocation6], 4294966272  ;;  %vm273_vm0 = vcmask 261120   ;;  %v269_v0 = vld [vmem:[#allocation5] sm:$0xff]  ;;  %v270_v1 = vld [vmem:[#allocation5 + $0x8] sm:$0xff]  ;;  %s6275_s23 = smov 112   ;;  %v416_v16 = vlaneseq }
  0x6d   : > { %v271_v2 = vld [vmem:[#allocation5 + $0x10] sm:$0xff]  ;;  %v5918_v3 = vpack.c.bf16 %v270_v1, %v269_v0  ;;  %v272_v4 = vld [vmem:[#allocation5 + $0x18] sm:$0xff]  ;;  %v265_v5 = vld [vmem:[%s230_s28] sm:$0xff]  ;;  %s6276_s25 = smov 120   ;;  %s6277_s27 = smov 104   ;;  %vm6283_vm1 = vmmov 0  }
  0x6e   : > { %v5922_v6 = vpack.c.bf16 %v272_v4, %v271_v2  ;;  %5738 = vmatprep.mubr.msk.f32.mxu0 %vm273_vm0, %v265_v5  ;;  %v266_v7 = vld [vmem:[%s230_s28 + $0x8] sm:$0xff]  ;;  %v267_v8 = vld [vmem:[%s230_s28 + $0x10] sm:$0xff]  ;;  %v268_v9 = vld [vmem:[%s230_s28 + $0x18] sm:$0xff]  ;;  %s6278_s21 = smov 96   ;;  %v6279_v14 = vmov 1983009808  }
  0x6f   : > { %5919 = vmatprep.subr.bf16.mxu0 %v5918_v3  ;;  %v414_v15 = vunpack.c.l.s4 %v6279_v14  ;;  %v6280_v17 = vmov 1934713408   ;;  %v417_v20 = vshrl.u32 %v416_v16, 7  ;;  %s6281_s22 = smov 64   ;;  %vm2139_vm2 = vcmask 64512   ;;  %s6284_s29 = smov 8  }
  0x70   : > { %5921 = vmatpush3.bf16.msra.mxu0 %v5918_v3  ;;  %v446_v18 = vunpack.c.l.s4 %v6280_v17  ;;  %s6285_s14 = smov 16   ;;  %s6286_s5 = smov 24   ;;  %vm5296_vm3 = vcmask 130048   ;;  %vm5301_vm4 = vcmask 195584  }
  0x71   : > { %5923 = vmatprep.subr.bf16.mxu0 %v5922_v6  ;;  %v415_v19 = vunpack.c.0.s8 %v414_v15  ;;  %s262_s10 = scalar_lea.vmem [#allocation8], %s5550_s12  ;;  %s5649_s24 = sshll.u32 %s6260_s18, 9 }
  0x72   : > { %v447_v25 = vunpack.c.0.s8 %v446_v18  ;;  %s5434_s13 = sshll.u32 %s262_s10, 4  ;;  %s7744_s12 = scalar_lea.hbm %s7800_s4, %s5649_s24  ;;  %s7739_s13 = int_to_ptr.vmem [resolvable:$true] %s5434_s13 }
  0x73   : > { %v6567_v26 = vsub.s32 %v415_v19, %v417_v20  ;;  %s6182_s18 = scalar_lea.vmem %s7739_s13, 512  ;;  %p7829_p12 = scmp.ne.s32.totalorder %s7811_s7, 0 }
  0x74   : > { %5925 = vmatpush3.bf16.msra.mxu0 %v5922_v6  ;;  %v6581_v31 = vsub.s32 %v447_v25, %v417_v20  ;;  %p6183_p8 = scmp.ne.s32.totalorder %s7739_s13, %s6182_s18 }
  0x76   : > { %p6184_p1 = pnand %p6183_p8, %p7829_p12 }
  0x77   : > { %5739 = vmatmul.mubr.msk.f32.vlgmr.msra.gmra.mrb[0].mxu0 %vm273_vm0, %v266_v7 }
  0x78   : > { %5741 = vmatprep.mubr.msk.f32.mxu0 %vm273_vm0, %v267_v8  ;;  %p6185_p10 = pneg %p6184_p1 }
  0x7b   : > { %5742 = vmatmul.mubr.msk.f32.gmra.mrb[2].mxu0 %vm273_vm0, %v268_v9 }
 0x14a   : > { %v6529_v10 = vpop.f32.mrb[0].mxu0 }
 0x14b   : > { %389 = vrot.lane.b32.xlu1 %v6529_v10, %s6275_s23  ;;  %377 = vrot.lane.b32.xlu0 %v6529_v10, %s6276_s25  ;;  %v6533_v11 = vpop.f32.mrb[1].mxu0 }
 0x14e   : > { %v6535_v12 = vpop.f32.mrb[2].mxu0 }
 0x14f   : > { %401 = vrot.lane.b32.xlu1 %v6529_v10, %s6277_s27  ;;  %375 = vrot.lane.b32.xlu0 %v6533_v11, %s6276_s25  ;;  %v6539_v13 = vpop.f32.mrb[3].mxu0 }
 0x153   : > { %387 = vrot.lane.b32.xlu1 %v6533_v11, %s6275_s23  ;;  %399 = vrot.lane.b32.xlu0 %v6533_v11, %s6277_s27 }
 0x157   : > { %381 = vrot.lane.b32.xlu1 %v6535_v12, %s6276_s25  ;;  %379 = vrot.lane.b32.xlu0 %v6539_v13, %s6276_s25  ;;  %s5419_s25 = scalar_lea.sflag [#allocation4], %s6511_s8 }
 0x15b   : > { %391 = vrot.lane.b32.xlu1 %v6539_v13, %s6275_s23  ;;  %403 = vrot.lane.b32.xlu0 %v6539_v13, %s6277_s27 }
 0x15f   : > { %405 = vrot.lane.b32.xlu1 %v6535_v12, %s6277_s27  ;;  %393 = vrot.lane.b32.xlu0 %v6535_v12, %s6275_s23  ;;  %s6287_s27 = smov [#allocation8]  }
 0x163   : > { %957 = vrot.lane.b32.xlu1 %v6529_v10, %s6278_s21  ;;  %955 = vrot.lane.b32.xlu0 %v6533_v11, %s6278_s21 }
 0x167   : > { %961 = vrot.lane.b32.xlu0 %v6535_v12, %s6278_s21 }
 0x16b   : > { %959 = vrot.lane.b32.xlu0 %v6539_v13, %s6278_s21 }
 0x1bd   : > { %v6557_v21 = vpop.permute.xlu1 %389  ;;  %v6559_v22 = vpop.permute.xlu0 %377 }
 0x1be   : > { %v479_v23 = vcombine.low %v6529_v10, %v6557_v21  ;;  %v480_v24 = vcombine.high %v6529_v10, %v6557_v21  ;;  %965 = vrot.lane.b32.xlu1 %v6559_v22, %s6278_s21 }
 0x1c0   : > { %v487_v32 = vrot.slane %v479_v23, %v6567_v26  ;;  %v494_v33 = vrot.slane %v480_v24, %v6567_v26 }
 0x1c1   : > { %v6569_v27 = vpop.permute.xlu1 %401  ;;  %v6571_v28 = vpop.permute.xlu0 %375 }
 0x1c2   : > { %v495_v29 = vcombine.low %v6559_v22, %v6569_v27  ;;  %v496_v30 = vcombine.high %v6559_v22, %v6569_v27  ;;  %973 = vrot.lane.b32.xlu1 %v6557_v21, %s6278_s21  ;;  %963 = vrot.lane.b32.xlu0 %v6571_v28, %s6278_s21 }
 0x1c4   : > { %v503_v34 = vrot.slane %v495_v29, %v6567_v26  ;;  %v510_v35 = vrot.slane %v496_v30, %v6567_v26 }
 0x1c5   : > { %v6587_v36 = vpop.permute.xlu1 %387  ;;  %v6589_v37 = vpop.permute.xlu0 %399 }
 0x1c6   : > { %v511_v38 = vcombine.low %v487_v32, %v503_v34  ;;  %v512_v39 = vcombine.high %v487_v32, %v503_v34  ;;  %v527_v40 = vcombine.low %v494_v33, %v510_v35  ;;  %v528_v41 = vcombine.high %v494_v33, %v510_v35  ;;  %981 = vrot.lane.b32.xlu1 %v6569_v27, %s6278_s21 }
 0x1c7   : > { %v411_v42 = vcombine.low %v6533_v11, %v6587_v36  ;;  %v412_v43 = vcombine.high %v6533_v11, %v6587_v36  ;;  %v427_v44 = vcombine.low %v6571_v28, %v6589_v37  ;;  %v428_v45 = vcombine.high %v6571_v28, %v6589_v37  ;;  %971 = vrot.lane.b32.xlu0 %v6587_v36, %s6278_s21 }
 0x1c8   : > { %v519_v46 = vrot.slane %v511_v38, %v6581_v31  ;;  %v526_v47 = vrot.slane %v512_v39, %v6581_v31  ;;  %v6606_v48 = vrot.slane %v527_v40, %v6581_v31  ;;  %v6609_v49 = vrot.slane %v528_v41, %v6581_v31 }
 0x1c9   : > { %v419_v50 = vrot.slane %v411_v42, %v6567_v26  ;;  %v426_v51 = vrot.slane %v412_v43, %v6567_v26  ;;  %v435_v52 = vrot.slane %v427_v44, %v6567_v26  ;;  %v442_v53 = vrot.slane %v428_v45, %v6567_v26  ;;  %v6615_v54 = vpop.permute.xlu1 %381  ;;  %v6617_v55 = vpop.permute.xlu0 %379 }
 0x1ca   : > { %v751_v56 = vcombine.low %v519_v46, %v526_v47  ;;  %v5560_v57 = vcombine.high %v519_v46, %v526_v47  ;;  %v767_v58 = vcombine.low %v6606_v48, %v6609_v49  ;;  %v5561_v59 = vcombine.high %v6606_v48, %v6609_v49  ;;  %969 = vrot.lane.b32.xlu1 %v6615_v54, %s6278_s21 }
 0x1cb   : > { %v443_v60 = vcombine.low %v419_v50, %v435_v52  ;;  %v444_v61 = vcombine.high %v419_v50, %v435_v52  ;;  %v459_v62 = vcombine.low %v426_v51, %v442_v53  ;;  %v460_v63 = vcombine.high %v426_v51, %v442_v53  ;;  %979 = vrot.lane.b32.xlu0 %v6589_v37, %s6278_s21 }
 0x1cc   : > { %v758_v41 = vrot.slane %v751_v56, %v6567_v26  ;;  %v766_v42 = vrot.slane %v5560_v57, %v6567_v26  ;;  %v6282_v53 = vmov 0.0   ;;  %v774_v56 = vrot.slane %v767_v58, %v6567_v26 }
 0x1cd   : > { %v451_v0 = vrot.slane %v443_v60, %v6581_v31  ;;  %v458_v1 = vrot.slane %v444_v61, %v6581_v31  ;;  %v467_v2 = vrot.slane %v459_v62, %v6581_v31  ;;  %v474_v3 = vrot.slane %v460_v63, %v6581_v31  ;;  %v6631_v4 = vpop.permute.xlu1 %391  ;;  %v6633_v5 = vpop.permute.xlu0 %403  ;;  %5749 = vmatprep.subr.mxu1 %v6282_v53 }
 0x1ce   : > { %v547_v6 = vcombine.low %v6539_v13, %v6631_v4  ;;  %v548_v7 = vcombine.high %v6539_v13, %v6631_v4  ;;  %v563_v8 = vcombine.low %v6617_v55, %v6633_v5  ;;  %v564_v9 = vcombine.high %v6617_v55, %v6633_v5  ;;  %967 = vrot.lane.b32.xlu1 %v6617_v55, %s6278_s21 }
 0x1cf   : > { %v683_v14 = vcombine.low %v451_v0, %v458_v1  ;;  %v5558_v15 = vcombine.high %v451_v0, %v458_v1  ;;  %v699_v16 = vcombine.low %v467_v2, %v474_v3  ;;  %v5559_v17 = vcombine.high %v467_v2, %v474_v3  ;;  %975 = vrot.lane.b32.xlu0 %v6631_v4, %s6278_s21 }
 0x1d0   : > { %v555_v18 = vrot.slane %v547_v6, %v6567_v26  ;;  %v562_v19 = vrot.slane %v548_v7, %v6567_v26  ;;  %v571_v20 = vrot.slane %v563_v8, %v6567_v26  ;;  %v578_v23 = vrot.slane %v564_v9, %v6567_v26  ;;  %5744 = vmatprep.subr.mxu0 %v6282_v53 }
 0x1d1   : > { %v6652_v24 = vrot.slane %v683_v14, %v6567_v26  ;;  %v6655_v25 = vrot.slane %v5558_v15, %v6567_v26  ;;  %v6658_v29 = vrot.slane %v699_v16, %v6567_v26  ;;  %v6661_v30 = vrot.slane %v5559_v17, %v6567_v26  ;;  %v6663_v32 = vpop.permute.xlu0 %393  ;;  %v6679_v47 = vpop.permute.xlu1 %405  ;;  %5751 = vmatprep.mubr.msk.f32.mxu1 %vm6283_vm1, %v6282_v53 }
 0x1d2   : > { %v579_v33 = vcombine.low %v555_v18, %v571_v20  ;;  %v580_v34 = vcombine.high %v555_v18, %v571_v20  ;;  %v595_v35 = vcombine.low %v562_v19, %v578_v23  ;;  %v596_v38 = vcombine.high %v562_v19, %v578_v23  ;;  %983 = vrot.lane.b32.xlu1 %v6633_v5, %s6278_s21 }
 0x1d3   : > { %v715_v39 = vcombine.low %v6652_v24, %v6655_v25  ;;  %v731_v40 = vcombine.low %v6658_v29, %v6661_v30  ;;  %977 = vrot.lane.b32.xlu0 %v6663_v32, %s6278_s21  ;;  %v783_v52 = vcombine.low %v758_v41, %v766_v42  ;;  %v782_v57 = vrot.slane %v5561_v59, %v6567_v26 }
 0x1d4   : > { %v587_v43 = vrot.slane %v579_v33, %v6581_v31  ;;  %v594_v44 = vrot.slane %v580_v34, %v6581_v31  ;;  %v603_v45 = vrot.slane %v595_v35, %v6581_v31  ;;  %v610_v46 = vrot.slane %v596_v38, %v6581_v31  ;;  %5746 = vmatprep.mubr.msk.f32.mxu0 %vm6283_vm1, %v6282_v53 }
 0x1d5   : > { %v6698_v58 = vrot.slane %v783_v52, %v6581_v31  ;;  %v799_v59 = vcombine.low %v774_v56, %v782_v57  ;;  %v800_v0 = vcombine.high %v774_v56, %v782_v57  ;;  %v6705_v1 = vrot.slane %v715_v39, %v6581_v31  ;;  %v958_v57 = vpop.permute.xlu1 %957 }
 0x1d6   : > { %v819_v48 = vcombine.low %v587_v43, %v594_v44  ;;  %v5562_v49 = vcombine.high %v587_v43, %v594_v44  ;;  %v835_v50 = vcombine.low %v603_v45, %v610_v46  ;;  %v5563_v51 = vcombine.high %v603_v45, %v610_v46  ;;  %985 = vrot.lane.b32.xlu1 %v6679_v47, %s6278_s21  ;;  %v956_v43 = vpop.permute.xlu0 %955  ;;  %s6186_s21 = sshll.u32 %s6287_s27, 4  ;;  %s6187_s21 = int_to_ptr.vmem [resolvable:$false] %s6186_s21 }
 0x1d7   : > { %1555 = vrot.lane.b32.xlu0 %v6571_v28, %s6281_s22  ;;  %v784_v28 = vcombine.high %v758_v41, %v766_v42  ;;  %v732_v15 = vcombine.high %v6658_v29, %v6661_v30  ;;  %v6741_v17 = vrot.slane %v800_v0, %v6581_v31  ;;  %v631_v39 = vcombine.low %v6615_v54, %v6679_v47  ;;  %p6189_p3 = scmp.lt.s32.totalorder %s7739_s13, %s6187_s21 }
 0x1d8   : > { %v826_v60 = vrot.slane %v819_v48, %v6567_v26  ;;  %v834_v61 = vrot.slane %v5562_v49, %v6567_v26  ;;  %v842_v62 = vrot.slane %v835_v50, %v6567_v26  ;;  %v850_v63 = vrot.slane %v5563_v51, %v6567_v26 }
 0x1d9   : > { %v6738_v16 = vrot.slane %v784_v28, %v6581_v31  ;;  %v6751_v20 = vrot.slane %v732_v15, %v6581_v31  ;;  %v615_v41 = vcombine.low %v6535_v12, %v6663_v32 }
 0x1da   : > { %1547 = vrot.lane.b32.xlu1 %v6533_v11, %s6281_s22  ;;  %v6710_v11 = vrot.slane %v799_v59, %v6581_v31  ;;  %v851_v2 = vcombine.low %v826_v60, %v834_v61  ;;  %v867_v3 = vcombine.low %v842_v62, %v850_v63  ;;  %v6797_v56 = vpop.permute.xlu0 %961 }
 0x1db   : > { %1551 = vrot.lane.b32.xlu0 %v6539_v13, %s6281_s22  ;;  %v6713_v13 = vrot.slane %v731_v40, %v6581_v31  ;;  %v632_v40 = vcombine.high %v6615_v54, %v6679_v47 }
 0x1dc   : > { %v815_v6 = vcombine.low %v6698_v58, %v6710_v11  ;;  %v6724_v8 = vrot.slane %v851_v2, %v6581_v31  ;;  %v6727_v9 = vrot.slane %v867_v3, %v6581_v31 }
 0x1dd   : > { %v646_v42 = vrot.slane %v632_v40, %v6567_v26 }
 0x1de   : > { %1563 = vrot.lane.b32.xlu1 %v6587_v36, %s6281_s22  ;;  %v747_v36 = vcombine.low %v6705_v1, %v6713_v13  ;;  %v883_v18 = vcombine.low %v6724_v8, %v6727_v9  ;;  %v6799_v28 = vpop.permute.xlu0 %959 }
 0x1df   : > { %1567 = vrot.lane.b32.xlu0 %v6631_v4, %s6281_s22  ;;  %v716_v4 = vcombine.high %v6652_v24, %v6655_v25  ;;  %v852_v24 = vcombine.high %v826_v60, %v834_v61  ;;  %v868_v25 = vcombine.high %v842_v62, %v850_v63 }
 0x1e1   : > { %v6760_v30 = vrot.slane %v852_v24, %v6581_v31  ;;  %v6765_v34 = vrot.slane %v868_v25, %v6581_v31 }
 0x1e2   : > { %1571 = vrot.lane.b32.xlu1 %v6589_v37, %s6281_s22  ;;  %v6748_v37 = vrot.slane %v716_v4, %v6581_v31 }
 0x1e6   : > { %1549 = vrot.lane.b32.xlu1 %v6529_v10, %s6281_s22 }
 0x1ea   : > { %1557 = vrot.lane.b32.xlu1 %v6559_v22, %s6281_s22  ;;  %v616_v22 = vcombine.high %v6535_v12, %v6663_v32 }
 0x1ee   : > { %1565 = vrot.lane.b32.xlu1 %v6557_v21, %s6281_s22  ;;  %v639_v21 = vrot.slane %v631_v39, %v6567_v26 }
 0x1f2   : > { %1573 = vrot.lane.b32.xlu1 %v6569_v27, %s6281_s22  ;;  %v623_v27 = vrot.slane %v615_v41, %v6567_v26 }
 0x1f4   : > { %v647_v44 = vcombine.low %v623_v27, %v639_v21  ;;  %v648_v45 = vcombine.high %v623_v27, %v639_v21 }
 0x1f6   : > { %1559 = vrot.lane.b32.xlu1 %v6617_v55, %s6281_s22  ;;  %v630_v55 = vrot.slane %v616_v22, %v6567_v26  ;;  %v655_v49 = vrot.slane %v647_v44, %v6581_v31  ;;  %v662_v50 = vrot.slane %v648_v45, %v6581_v31 }
 0x1f8   : > { %v663_v46 = vcombine.low %v630_v55, %v646_v42  ;;  %v664_v48 = vcombine.high %v630_v55, %v646_v42  ;;  %v887_v60 = vcombine.low %v655_v49, %v662_v50  ;;  %v5564_v61 = vcombine.high %v655_v49, %v662_v50 }
 0x1fa   : > { %v671_v51 = vrot.slane %v663_v46, %v6581_v31  ;;  %v678_v52 = vrot.slane %v664_v48, %v6581_v31  ;;  %v894_v0 = vrot.slane %v887_v60, %v6567_v26  ;;  %v902_v2 = vrot.slane %v5564_v61, %v6567_v26 }
 0x1fc   : > { %v903_v62 = vcombine.low %v671_v51, %v678_v52  ;;  %v5565_v63 = vcombine.high %v671_v51, %v678_v52  ;;  %v919_v25 = vcombine.low %v894_v0, %v902_v2 }
 0x1fe   : > { %v910_v3 = vrot.slane %v903_v62, %v6567_v26  ;;  %v918_v4 = vrot.slane %v5565_v63, %v6567_v26  ;;  %v6806_v55 = vrot.slane %v919_v25, %v6581_v31 }
 0x200   : > { %v935_v39 = vcombine.low %v910_v3, %v918_v4 }
 0x202   : > { %v6809_v44 = vrot.slane %v935_v39, %v6581_v31 }
 0x230   : > { %v966_v59 = vpop.permute.xlu1 %965 }
 0x234   : > { %v974_v15 = vpop.permute.xlu1 %973  ;;  %v964_v24 = vpop.permute.xlu0 %963 }
 0x235   : > { %v1071_v40 = vcombine.low %v958_v57, %v974_v15  ;;  %v1072_v41 = vcombine.high %v958_v57, %v974_v15 }
 0x237   : > { %v1079_v45 = vrot.slane %v1071_v40, %v6567_v26  ;;  %v1086_v46 = vrot.slane %v1072_v41, %v6567_v26  ;;  %v920_v41 = vcombine.high %v894_v0, %v902_v2  ;;  %v936_v0 = vcombine.high %v910_v3, %v918_v4 }
 0x238   : > { %v982_v22 = vpop.permute.xlu1 %981 }
 0x239   : > { %v1087_v21 = vcombine.low %v966_v59, %v982_v22  ;;  %v1088_v42 = vcombine.high %v966_v59, %v982_v22  ;;  %v972_v27 = vpop.permute.xlu0 %971  ;;  %v6843_v10 = vrot.slane %v936_v0, %v6581_v31 }
 0x23a   : > { %v1003_v50 = vcombine.low %v956_v43, %v972_v27  ;;  %v1004_v51 = vcombine.high %v956_v43, %v972_v27 }
 0x23b   : > { %v1095_v48 = vrot.slane %v1087_v21, %v6567_v26  ;;  %v1102_v49 = vrot.slane %v1088_v42, %v6567_v26 }
 0x23c   : > { %v6815_v52 = vpop.permute.xlu1 %969  ;;  %v1011_v22 = vrot.slane %v1003_v50, %v6567_v26  ;;  %v1018_v43 = vrot.slane %v1004_v51, %v6567_v26 }
 0x23d   : > { %v1103_v57 = vcombine.low %v1079_v45, %v1095_v48  ;;  %v1104_v60 = vcombine.high %v1079_v45, %v1095_v48  ;;  %v1119_v61 = vcombine.low %v1086_v46, %v1102_v49  ;;  %v1120_v62 = vcombine.high %v1086_v46, %v1102_v49  ;;  %v980_v63 = vpop.permute.xlu0 %979 }
 0x23e   : > { %v1019_v59 = vcombine.low %v964_v24, %v980_v63  ;;  %v1020_v15 = vcombine.high %v964_v24, %v980_v63 }
 0x23f   : > { %v1111_v25 = vrot.slane %v1103_v57, %v6581_v31  ;;  %v1118_v39 = vrot.slane %v1104_v60, %v6581_v31  ;;  %v6826_v45 = vrot.slane %v1119_v61, %v6581_v31  ;;  %v6829_v24 = vrot.slane %v1120_v62, %v6581_v31 }
 0x240   : > { %v1027_v21 = vrot.slane %v1019_v59, %v6567_v26  ;;  %v1034_v42 = vrot.slane %v1020_v15, %v6567_v26  ;;  %v968_v27 = vpop.permute.xlu1 %967  ;;  %v6836_v61 = vrot.slane %v920_v41, %v6581_v31 }
 0x241   : > { %v976_v46 = vpop.permute.xlu0 %975  ;;  %v1343_v57 = vcombine.low %v1111_v25, %v1118_v39  ;;  %v5569_v41 = vcombine.high %v6826_v45, %v6829_v24 }
 0x242   : > { %v1035_v2 = vcombine.low %v1011_v22, %v1027_v21  ;;  %v1036_v49 = vcombine.high %v1011_v22, %v1027_v21  ;;  %v1051_v50 = vcombine.low %v1018_v43, %v1034_v42  ;;  %v1052_v51 = vcombine.high %v1018_v43, %v1034_v42 }
 0x243   : > { %v1139_v60 = vcombine.low %v6799_v28, %v976_v46  ;;  %v1140_v63 = vcombine.high %v6799_v28, %v976_v46  ;;  %v5568_v22 = vcombine.high %v1111_v25, %v1118_v39  ;;  %v1359_v28 = vcombine.low %v6826_v45, %v6829_v24 }
 0x244   : > { %v1043_v62 = vrot.slane %v1035_v2, %v6581_v31  ;;  %v1050_v59 = vrot.slane %v1036_v49, %v6581_v31  ;;  %v1059_v15 = vrot.slane %v1051_v50, %v6581_v31  ;;  %v1066_v3 = vrot.slane %v1052_v51, %v6581_v31  ;;  %v984_v4 = vpop.permute.xlu1 %983 }
 0x245   : > { %v1155_v21 = vcombine.low %v968_v27, %v984_v4  ;;  %v1156_v43 = vcombine.high %v968_v27, %v984_v4  ;;  %v978_v42 = vpop.permute.xlu0 %977  ;;  %v1147_v49 = vrot.slane %v1139_v60, %v6567_v26  ;;  %v1154_v50 = vrot.slane %v1140_v63, %v6567_v26 }
 0x246   : > { %v1275_v46 = vcombine.low %v1043_v62, %v1050_v59  ;;  %v5566_v2 = vcombine.high %v1043_v62, %v1050_v59  ;;  %v1291_v27 = vcombine.low %v1059_v15, %v1066_v3  ;;  %v5567_v51 = vcombine.high %v1059_v15, %v1066_v3 }
 0x247   : > { %v1163_v25 = vrot.slane %v1155_v21, %v6567_v26  ;;  %v1170_v39 = vrot.slane %v1156_v43, %v6567_v26  ;;  %v1207_v0 = vcombine.low %v6797_v56, %v978_v42  ;;  %v6855_v35 = vrot.slane %v1343_v57, %v6567_v26 }
 0x248   : > { %v986_v4 = vpop.permute.xlu1 %985  ;;  %v6858_v60 = vrot.slane %v1275_v46, %v6567_v26  ;;  %v6861_v63 = vrot.slane %v5566_v2, %v6567_v26  ;;  %v1208_v59 = vcombine.high %v6797_v56, %v978_v42  ;;  %v6865_v15 = vrot.slane %v5568_v22, %v6567_v26 }
 0x249   : > { %v1171_v33 = vcombine.low %v1147_v49, %v1163_v25  ;;  %v1172_v45 = vcombine.high %v1147_v49, %v1163_v25  ;;  %v1187_v24 = vcombine.low %v1154_v50, %v1170_v39  ;;  %v1188_v62 = vcombine.high %v1154_v50, %v1170_v39  ;;  %v1556_v14 = vpop.permute.xlu0 %1555 }
 0x24a   : > { %v6872_v49 = vrot.slane %v1291_v27, %v6567_v26  ;;  %v6875_v46 = vrot.slane %v5567_v51, %v6567_v26  ;;  %v1223_v2 = vcombine.low %v6815_v52, %v986_v4  ;;  %v1224_v56 = vcombine.high %v6815_v52, %v986_v4 }
 0x24b   : > { %v1179_v3 = vrot.slane %v1171_v33, %v6581_v31  ;;  %v1186_v57 = vrot.slane %v1172_v45, %v6581_v31  ;;  %v1195_v21 = vrot.slane %v1187_v24, %v6581_v31  ;;  %v1202_v43 = vrot.slane %v1188_v62, %v6581_v31 }
 0x24c   : > { %v6879_v22 = vpop.permute.xlu1 %1547  ;;  %v1215_v25 = vrot.slane %v1207_v0, %v6567_v26  ;;  %v1222_v45 = vrot.slane %v1208_v59, %v6567_v26  ;;  %v1231_v27 = vrot.slane %v1223_v2, %v6567_v26  ;;  %v1238_v24 = vrot.slane %v1224_v56, %v6567_v26 }
 0x24d   : > { %v1411_v42 = vcombine.low %v1179_v3, %v1186_v57  ;;  %v5570_v33 = vcombine.high %v1179_v3, %v1186_v57  ;;  %v1427_v50 = vcombine.low %v1195_v21, %v1202_v43  ;;  %v5571_v39 = vcombine.high %v1195_v21, %v1202_v43 }
 0x24e   : > { %v6892_v4 = vrot.slane %v1359_v28, %v6567_v26  ;;  %v6895_v62 = vrot.slane %v5569_v41, %v6567_v26  ;;  %v1239_v0 = vcombine.low %v1215_v25, %v1231_v27  ;;  %v1240_v3 = vcombine.high %v1215_v25, %v1231_v27 }
 0x24f   : > { %v6886_v51 = vrot.slane %v1411_v42, %v6567_v26  ;;  %v6889_v52 = vrot.slane %v5570_v33, %v6567_v26  ;;  %v1255_v59 = vcombine.low %v1222_v45, %v1238_v24  ;;  %v1256_v57 = vcombine.high %v1222_v45, %v1238_v24 }
 0x250   : > { %v1564_v21 = vpop.permute.xlu1 %1563  ;;  %v1307_v43 = vcombine.low %v6858_v60, %v6861_v63  ;;  %v1323_v2 = vcombine.low %v6872_v49, %v6875_v46  ;;  %v6902_v56 = vrot.slane %v1427_v50, %v6567_v26  ;;  %v1247_v41 = vrot.slane %v1239_v0, %v6581_v31 }
 0x251   : > { %v1254_v42 = vrot.slane %v1240_v3, %v6581_v31  ;;  %v1263_v33 = vrot.slane %v1255_v59, %v6581_v31  ;;  %v1270_v25 = vrot.slane %v1256_v57, %v6581_v31  ;;  %v6911_v45 = vrot.slane %v5571_v39, %v6567_v26 }
 0x252   : > { %v1443_v27 = vcombine.low %v6886_v51, %v6889_v52  ;;  %v1375_v50 = vcombine.low %v6855_v35, %v6865_v15  ;;  %v1391_v24 = vcombine.low %v6892_v4, %v6895_v62  ;;  %v6926_v57 = vrot.slane %v1307_v43, %v6581_v31 }
 0x253   : > { %v1479_v28 = vcombine.low %v1247_v41, %v1254_v42  ;;  %v5572_v0 = vcombine.high %v1247_v41, %v1254_v42  ;;  %v1495_v38 = vcombine.low %v1263_v33, %v1270_v25  ;;  %v5573_v3 = vcombine.high %v1263_v33, %v1270_v25 }
 0x254   : > { %v1572_v23 = vpop.permute.xlu1 %1571  ;;  %v6920_v59 = vrot.slane %v1375_v50, %v6581_v31  ;;  %v6923_v39 = vrot.slane %v1391_v24, %v6581_v31  ;;  %v6929_v29 = vrot.slane %v1323_v2, %v6581_v31  ;;  %v1459_v25 = vcombine.low %v6902_v56, %v6911_v45 }
 0x255   : > { %v6932_v48 = vrot.slane %v1479_v28, %v6567_v26  ;;  %v6935_v41 = vrot.slane %v5572_v0, %v6567_v26  ;;  %v6938_v42 = vrot.slane %v1495_v38, %v6567_v26  ;;  %v6941_v33 = vrot.slane %v5573_v3, %v6567_v26 }
 0x256   : > { %v1407_v43 = vcombine.low %v6920_v59, %v6923_v39  ;;  %v1339_v2 = vcombine.low %v6926_v57, %v6929_v29  ;;  %v1595_v28 = vcombine.low %v6879_v22, %v1564_v21  ;;  %v1308_v50 = vcombine.high %v6858_v60, %v6861_v63 }
 0x257   : > { %v1324_v38 = vcombine.high %v6872_v49, %v6875_v46  ;;  %v1511_v0 = vcombine.low %v6932_v48, %v6935_v41  ;;  %v1527_v7 = vcombine.low %v6938_v42, %v6941_v33  ;;  %v1596_v60 = vcombine.high %v6879_v22, %v1564_v21 }
 0x258   : > { %v1550_v3 = vpop.permute.xlu1 %1549  ;;  %5750 = vmatpush3.xpose.msk.msra.mxu1 %vm2139_vm2, %v1407_v43  ;;  %5745 = vmatpush3.xpose.msk.msra.mxu0 %vm2139_vm2, %v1339_v2  ;;  %v1376_v63 = vcombine.high %v6855_v35, %v6865_v15  ;;  %v1611_v49 = vcombine.low %v1556_v14, %v1572_v23  ;;  %v1612_v46 = vcombine.high %v1556_v14, %v1572_v23 }
 0x259   : > { %5754 = vmatprep.subr.mxu1 %v6282_v53  ;;  %v6969_v24 = vrot.slane %v1443_v27, %v6581_v31  ;;  %v1392_v19 = vcombine.high %v6892_v4, %v6895_v62  ;;  %v1603_v40 = vrot.slane %v1595_v28, %v6567_v26  ;;  %v1467_v43 = vrot.slane %v1459_v25, %v6581_v31 }
 0x25a   : > { %5759 = vmatprep.subr.mxu0 %v6282_v53  ;;  %v6977_v22 = vrot.slane %v1511_v0, %v6581_v31  ;;  %v1610_v14 = vrot.slane %v1596_v60, %v6567_v26  ;;  %v1619_v23 = vrot.slane %v1611_v49, %v6567_v26  ;;  %v1626_v35 = vrot.slane %v1612_v46, %v6567_v26 }
 0x25b   : > { %5752 = vmatmul.mubr.msk.f32.vlgmr.msra.gmra.mrb[0].mxu1 %vm2139_vm2, %v815_v6  ;;  %5747 = vmatmul.mubr.msk.f32.vlgmr.msra.gmra.mrb[4].mxu0 %vm2139_vm2, %v747_v36  ;;  %v1408_v4 = vcombine.high %v6920_v59, %v6923_v39  ;;  %v1475_v62 = vcombine.low %v6969_v24, %v1467_v43  ;;  %v6996_v6 = vrot.slane %v1527_v7, %v6581_v31 }
 0x25c   : > { %v1558_v15 = vpop.permute.xlu1 %1557  ;;  %5756 = vmatprep.mubr.msk.f32.mxu1 %vm6283_vm1, %v6282_v53  ;;  %5761 = vmatprep.mubr.msk.f32.mxu0 %vm6283_vm1, %v6282_v53  ;;  %v1627_v36 = vcombine.low %v1603_v40, %v1619_v23  ;;  %v1628_v21 = vcombine.high %v1603_v40, %v1619_v23  ;;  %v1643_v27 = vcombine.low %v1610_v14, %v1626_v35 }
 0x25d   : > { %v1644_v25 = vcombine.high %v1610_v14, %v1626_v35  ;;  %v1512_v2 = vcombine.high %v6932_v48, %v6935_v41  ;;  %v1528_v59 = vcombine.high %v6938_v42, %v6941_v33  ;;  %5755 = vmatpush3.xpose.msk.msra.mxu1 %vm2139_vm2, %v1475_v62  ;;  %v1543_v39 = vcombine.low %v6977_v22, %v6996_v6 }
 0x25e   : > { %v7008_v7 = vrot.slane %v1308_v50, %v6581_v31  ;;  %v1635_v28 = vrot.slane %v1627_v36, %v6581_v31  ;;  %v1642_v40 = vrot.slane %v1628_v21, %v6581_v31  ;;  %v1651_v0 = vrot.slane %v1643_v27, %v6581_v31  ;;  %5764 = vmatprep.subr.mxu1 %v6282_v53 }
 0x25f   : > { %v1658_v60 = vrot.slane %v1644_v25, %v6581_v31  ;;  %5760 = vmatpush3.xpose.msk.msra.mxu0 %vm2139_vm2, %v1543_v39  ;;  %v1340_v41 = vcombine.high %v6926_v57, %v6929_v29  ;;  %v7019_v50 = vrot.slane %v1324_v38, %v6581_v31  ;;  %v1476_v14 = vcombine.high %v6969_v24, %v1467_v43 }
 0x260   : > { %v1566_v48 = vpop.permute.xlu1 %1565  ;;  %v1867_v49 = vcombine.low %v1635_v28, %v1642_v40  ;;  %v5574_v46 = vcombine.high %v1635_v28, %v1642_v40  ;;  %5757 = vmatmul.mubr.msk.f32.vlgmr.msra.gmra.mrb[2].mxu1 %vm2139_vm2, %v883_v18  ;;  %v1544_v23 = vcombine.high %v6977_v22, %v6996_v6  ;;  %v7032_v29 = vrot.slane %v1376_v63, %v6581_v31 }
 0x261   : > { %v1663_v42 = vcombine.low %v1550_v3, %v1566_v48  ;;  %v1664_v33 = vcombine.high %v1550_v3, %v1566_v48  ;;  %v1883_v35 = vcombine.low %v1651_v0, %v1658_v60  ;;  %v5575_v62 = vcombine.high %v1651_v0, %v1658_v60  ;;  %5765 = vmatpush3.xpose.msk.msra.mxu1 %vm2139_vm2, %v1340_v41 }
 0x262   : > { %5766 = vmatprep.mubr.msk.f32.mxu1 %vm6283_vm1, %v6282_v53  ;;  %v7035_v57 = vrot.slane %v1867_v49, %v6567_v26  ;;  %v7815_v18 = vcombine.low %v6806_v55, %v6809_v44  ;;  %v1341_v3 = vcombine.low %v7008_v7, %v7019_v50  ;;  %v7046_v22 = vrot.slane %v5574_v46, %v6567_v26 }
 0x263   : > { %v1671_v38 = vrot.slane %v1663_v42, %v6567_v26  ;;  %v1678_v24 = vrot.slane %v1664_v33, %v6567_v26  ;;  %5769 = vmatprep.subr.mxu0 %v6282_v53  ;;  %5774 = vmatprep.subr.mxu1 %v6282_v53  ;;  %v7816_v36 = vcombine.high %v6705_v1, %v6713_v13 }
 0x264   : > { %5762 = vmatmul.mubr.msk.f32.vlgmr.msra.gmra.mrb[6].mxu0 %vm2139_vm2, %v7815_v18  ;;  %v1574_v43 = vpop.permute.xlu1 %1573  ;;  %v7056_v21 = vrot.slane %v1392_v19, %v6581_v31  ;;  %v7817_v27 = vcombine.high %v6886_v51, %v6889_v52  ;;  %v7071_v1 = vrot.slane %v1883_v35, %v6567_v26  ;;  %v1898_v51 = vrot.slane %v5575_v62, %v6567_v26 }
 0x265   : > { %v1679_v63 = vcombine.low %v1558_v15, %v1574_v43  ;;  %v1680_v6 = vcombine.high %v1558_v15, %v1574_v43  ;;  %5767 = vmatmul.mubr.msk.f32.vlgmr.msra.gmra.mrb[4].mxu1 %vm2139_vm2, %v7816_v36  ;;  %5770 = vmatpush3.xpose.msk.msra.mxu0 %vm2139_vm2, %v1408_v4  ;;  %v7818_v15 = vcombine.high %v6902_v56, %v6911_v45 }
 0x266   : > { %v7062_v25 = vrot.slane %v7817_v27, %v6581_v31  ;;  %5775 = vmatpush3.xpose.msk.msra.mxu1 %vm2139_vm2, %v1476_v14  ;;  %5771 = vmatprep.mubr.msk.f32.mxu0 %vm6283_vm1, %v6282_v53  ;;  %v7083_v52 = vrot.slane %v1512_v2, %v6581_v31  ;;  %v7086_v56 = vrot.slane %v1528_v59, %v6581_v31 }
 0x267   : > { %v7068_v39 = vrot.slane %v7818_v15, %v6581_v31  ;;  %v1687_v13 = vrot.slane %v1679_v63, %v6567_v26  ;;  %v1694_v19 = vrot.slane %v1680_v6, %v6567_v26  ;;  %5776 = vmatprep.mubr.msk.f32.mxu1 %vm6283_vm1, %v6282_v53  ;;  %5779 = vmatprep.subr.mxu0 %v6282_v53 }
 0x268   : > { %v7819_v45 = vcombine.high %v6698_v58, %v6710_v11  ;;  %5784 = vmatprep.subr.mxu1 %v6282_v53  ;;  %v7820_v0 = vcombine.high %v6724_v8, %v6727_v9  ;;  %v1409_v59 = vcombine.low %v7032_v29, %v7056_v21  ;;  %v1545_v9 = vcombine.low %v7083_v52, %v7086_v56 }
 0x269   : > { %v1695_v4 = vcombine.low %v1671_v38, %v1687_v13  ;;  %v1696_v28 = vcombine.high %v1671_v38, %v1687_v13  ;;  %v1711_v40 = vcombine.low %v1678_v24, %v1694_v19  ;;  %v1712_v2 = vcombine.high %v1678_v24, %v1694_v19 }
 0x26a   : > { %5772 = vmatmul.mubr.msk.f32.vlgmr.msra.gmra.mrb[8].mxu0 %vm2139_vm2, %v7819_v45  ;;  %5777 = vmatmul.mubr.msk.f32.vlgmr.msra.gmra.mrb[6].mxu1 %vm2139_vm2, %v7820_v0  ;;  %v1477_v58 = vcombine.low %v7062_v25, %v7068_v39  ;;  %v1342_v41 = vcombine.high %v7008_v7, %v7019_v50  ;;  %v7821_v49 = vcombine.high %v6806_v55, %v6809_v44 }
 0x26b   : > { %5780 = vmatpush3.xpose.msk.msra.mxu0 %vm2139_vm2, %v1544_v23  ;;  %5785 = vmatpush3.xpose.msk.msra.mxu1 %vm2139_vm2, %v1341_v3  ;;  %v1703_v11 = vrot.slane %v1695_v4, %v6581_v31  ;;  %v1710_v60 = vrot.slane %v1696_v28, %v6581_v31  ;;  %v1719_v48 = vrot.slane %v1711_v40, %v6581_v31 }
 0x26c   : > { %5781 = vmatprep.mubr.msk.f32.mxu0 %vm6283_vm1, %v6282_v53  ;;  %v1726_v8 = vrot.slane %v1712_v2, %v6581_v31  ;;  %5786 = vmatprep.mubr.msk.f32.mxu1 %vm6283_vm1, %v6282_v53  ;;  %v1899_v46 = vcombine.low %v7035_v57, %v7046_v22  ;;  %v7822_v35 = vcombine.low %v6748_v37, %v6751_v20 }
 0x26d   : > { %5789 = vmatprep.subr.mxu0 %v6282_v53  ;;  %v1935_v42 = vcombine.low %v1703_v11, %v1710_v60  ;;  %v5576_v33 = vcombine.high %v1703_v11, %v1710_v60  ;;  %5794 = vmatprep.subr.mxu1 %v6282_v53  ;;  %v1915_v7 = vcombine.low %v7071_v1, %v1898_v51 }
 0x26e   : > { %5782 = vmatmul.mubr.msk.f32.vlgmr.msra.gmra.mrb[10].mxu0 %vm2139_vm2, %v7821_v49  ;;  %v1951_v14 = vcombine.low %v1719_v48, %v1726_v8  ;;  %v5577_v23 = vcombine.high %v1719_v48, %v1726_v8  ;;  %5787 = vmatmul.mubr.msk.f32.vlgmr.msra.gmra.mrb[8].mxu1 %vm2139_vm2, %v7822_v35  ;;  %v7135_v50 = vrot.slane %v1899_v46, %v6581_v31 }
 0x26f   : > { %5790 = vmatpush3.xpose.msk.msra.mxu0 %vm2139_vm2, %v1409_v59  ;;  %v1942_v55 = vrot.slane %v1935_v42, %v6567_v26  ;;  %v1950_v44 = vrot.slane %v5576_v33, %v6567_v26  ;;  %5795 = vmatpush3.xpose.msk.msra.mxu1 %vm2139_vm2, %v1477_v58  ;;  %v7143_v38 = vrot.slane %v1915_v7, %v6581_v31 }
 0x270   : > { %5791 = vmatprep.mubr.msk.f32.mxu0 %vm6283_vm1, %v6282_v53  ;;  %v1958_v62 = vrot.slane %v1951_v14, %v6567_v26  ;;  %v1966_v18 = vrot.slane %v5577_v23, %v6567_v26  ;;  %5796 = vmatprep.mubr.msk.f32.mxu1 %vm6283_vm1, %v6282_v53  ;;  %v7823_v24 = vcombine.low %v6738_v16, %v6741_v17 }
 0x271   : > { %5799 = vmatprep.subr.mxu0 %v6282_v53  ;;  %5804 = vmatprep.subr.mxu1 %v6282_v53  ;;  %v1967_v3 = vcombine.low %v1942_v55, %v1950_v44  ;;  %v1900_v43 = vcombine.high %v7035_v57, %v7046_v22  ;;  %v1916_v63 = vcombine.high %v7071_v1, %v1898_v51 }
 0x272   : > { %5792 = vmatmul.mubr.msk.f32.vlgmr.msra.gmra.mrb[12].mxu0 %vm2139_vm2, %v7823_v24  ;;  %v7824_v6 = vcombine.low %v6760_v30, %v6765_v34  ;;  %v1410_v36 = vcombine.high %v7032_v29, %v7056_v21  ;;  %v1983_v27 = vcombine.low %v1958_v62, %v1966_v18  ;;  %v1932_v15 = vcombine.high %v7135_v50, %v7143_v38 }
 0x273   : > { %5800 = vmatpush3.xpose.msk.msra.mxu0 %vm2139_vm2, %v1545_v9  ;;  %5801 = vmatprep.mubr.msk.f32.mxu0 %vm6283_vm1, %v6282_v53  ;;  %v7166_v57 = vrot.slane %v1967_v3, %v6581_v31  ;;  %v7169_v22 = vrot.slane %v1900_v43, %v6581_v31  ;;  %v7172_v1 = vrot.slane %v1916_v63, %v6581_v31 }
 0x274   : > { %5797 = vmatmul.mubr.msk.f32.vlgmr.msra.gmra.mrb[10].mxu1 %vm2139_vm2, %v7824_v6  ;;  %5809 = vmatprep.subr.mxu0 %v6282_v53  ;;  %v7178_v29 = vrot.slane %v1983_v27, %v6581_v31  ;;  %v1968_v21 = vcombine.high %v1942_v55, %v1950_v44  ;;  %v1984_v13 = vcombine.high %v1958_v62, %v1966_v18 }
 0x275   : > { %5805 = vmatpush3.xpose.msk.msra.mxu1 %vm2139_vm2, %v1342_v41  ;;  %5806 = vmatprep.mubr.msk.f32.mxu1 %vm6283_vm1, %v6282_v53  ;;  %v7825_v19 = vcombine.low %v6836_v61, %v6843_v10  ;;  %v1478_v51 = vcombine.high %v7062_v25, %v7068_v39  ;;  %v1933_v45 = vcombine.low %v7169_v22, %v7172_v1 }
 0x276   : > { %5814 = vmatprep.subr.mxu1 %v6282_v53  ;;  %v1934_v4 = vcombine.high %v7169_v22, %v7172_v1  ;;  %v7826_v28 = vcombine.high %v6748_v37, %v6751_v20  ;;  %v2000_v40 = vcombine.high %v7166_v57, %v7178_v29  ;;  %v7199_v0 = vrot.slane %v1968_v21, %v6581_v31 }
 0x277   : > { %5802 = vmatmul.mubr.msk.f32.vlgmr.msra.gmra.mrb[14].mxu0 %vm2139_vm2, %v7825_v19  ;;  %v7205_v25 = vrot.slane %v1984_v13, %v6581_v31  ;;  %v1546_v37 = vcombine.high %v7083_v52, %v7086_v56  ;;  %v7827_v20 = vcombine.high %v6738_v16, %v6741_v17  ;;  %v1931_v39 = vcombine.low %v7135_v50, %v7143_v38 }
 0x278   : > { %5807 = vmatmul.mubr.msk.f32.vlgmr.msra.gmra.mrb[12].mxu1 %vm2139_vm2, %v7826_v28  ;;  %5810 = vmatpush3.xpose.msk.msra.mxu0 %vm2139_vm2, %v1410_v36  ;;  %v7828_v58 = vcombine.high %v6760_v30, %v6765_v34  ;;  %v1999_v16 = vcombine.low %v7166_v57, %v7178_v29  ;;  %v954_v17 = vcombine.high %v6836_v61, %v6843_v10 }
 0x279   : > { %5815 = vmatpush3.xpose.msk.msra.mxu1 %vm2139_vm2, %v1478_v51  ;;  %5811 = vmatprep.mubr.msk.f32.mxu0 %vm6283_vm1, %v6282_v53  ;;  %v2001_v2 = vcombine.low %v7199_v0, %v7205_v25  ;;  %v2002_v59 = vcombine.high %v7199_v0, %v7205_v25 }
 0x27a   : > { %5816 = vmatprep.mubr.msk.f32.mxu1 %vm6283_vm1, %v6282_v53  ;;  %5819 = vmatprep.subr.mxu0 %v6282_v53 }
 0x27b   : > { %5812 = vmatmul.mubr.msk.f32.vlgmr.msra.gmra.mrb[16].mxu0 %vm2139_vm2, %v7827_v20  ;;  %5824 = vmatprep.subr.mxu1 %v6282_v53 }
 0x27c   : > { %5817 = vmatmul.mubr.msk.f32.vlgmr.msra.gmra.mrb[14].mxu1 %vm2139_vm2, %v7828_v58  ;;  %5820 = vmatpush3.xpose.msk.msra.mxu0 %vm2139_vm2, %v1546_v37 }
 0x27d   : > { %5825 = vmatpush3.msra.mxu1 %v1931_v39  ;;  %5821 = vmatprep.mubr.msk.f32.mxu0 %vm6283_vm1, %v6282_v53 }
 0x27e   : > { %5829 = vmatprep.subr.mxu0 %v6282_v53  ;;  %5826 = vmatprep.mubr.msk.f32.mxu1 %vm6283_vm1, %v6282_v53 }
 0x27f   : > { %5822 = vmatmul.mubr.msk.f32.vlgmr.msra.gmra.mrb[18].mxu0 %vm2139_vm2, %v954_v17  ;;  %5834 = vmatprep.subr.mxu1 %v6282_v53 }
 0x280   : > { %5830 = vmatpush3.msra.mxu0 %v1999_v16  ;;  %5831 = vmatprep.mubr.msk.f32.mxu0 %vm6283_vm1, %v6282_v53 }
 0x281   : > { %5839 = vmatprep.subr.mxu0 %v6282_v53 }
 0x32e   : > { %v7242_v30 = vpop.f32.mrb[0].mxu1  ;;  %v7244_v34 = vpop.f32.mrb[4].mxu0 }
 0x32f   : > { %v5753_v10 = vpop.f32.mrb[1].mxu1  ;;  %v3359_v61 = vsel %vm2139_vm2, %v7242_v30, -inf  ;;  %v5748_v52 = vpop.f32.mrb[5].mxu0  ;;  %v3356_v56 = vsel %vm2139_vm2, %v7244_v34, -inf }
 0x330   : > { %3360 = vmax.xlane.f32.xlu1 %v3359_v61  ;;  %3357 = vmax.xlane.f32.xlu0 %v3356_v56 }
 0x333   : > { %v7250_v11 = vpop.f32.mrb[2].mxu1 }
 0x334   : > { %v5758_v60 = vpop.f32.mrb[3].mxu1  ;;  %v3362_v48 = vsel %vm2139_vm2, %v7250_v11, -inf }
 0x335   : > { %3363 = vmax.xlane.f32.xlu0 %v3362_v48 }
 0x337   : > { %v7254_v8 = vpop.f32.mrb[6].mxu0 }
 0x338   : > { %v5763_v9 = vpop.f32.mrb[7].mxu0  ;;  %v3365_v41 = vsel %vm2139_vm2, %v7254_v8, -inf  ;;  %v7258_v42 = vpop.f32.mrb[4].mxu1 }
 0x339   : > { %v5768_v33 = vpop.f32.mrb[5].mxu1  ;;  %v3368_v49 = vsel %vm2139_vm2, %v7258_v42, -inf  ;;  %3366 = vmax.xlane.f32.xlu0 %v3365_v41  ;;  %v7314_v9 = vpop.permute.xlu0 %1551 }
 0x33a   : > { %3369 = vmax.xlane.f32.xlu1 %v3368_v49  ;;  %v7318_v33 = vpop.permute.xlu1 %1559 }
 0x33d   : > { %v7262_v46 = vpop.f32.mrb[8].mxu0  ;;  %v7264_v14 = vpop.f32.mrb[6].mxu1 }
 0x33e   : > { %v5773_v23 = vpop.f32.mrb[9].mxu0  ;;  %v3371_v35 = vsel %vm2139_vm2, %v7262_v46, -inf  ;;  %v5778_v7 = vpop.f32.mrb[7].mxu1  ;;  %v3374_v55 = vsel %vm2139_vm2, %v7264_v14, -inf }
 0x33f   : > { %3375 = vmax.xlane.f32.xlu1 %v3374_v55  ;;  %3372 = vmax.xlane.f32.xlu0 %v3371_v35  ;;  %v7316_v41 = vpop.permute.xlu0 %1567 }
 0x341   : > { %v7270_v44 = vpop.f32.mrb[10].mxu0  ;;  %v7272_v62 = vpop.f32.mrb[8].mxu1 }
 0x342   : > { %v5783_v18 = vpop.f32.mrb[11].mxu0  ;;  %v3377_v24 = vsel %vm2139_vm2, %v7270_v44, -inf  ;;  %v5788_v3 = vpop.f32.mrb[9].mxu1  ;;  %v3380_v43 = vsel %vm2139_vm2, %v7272_v62, -inf }
 0x343   : > { %3381 = vmax.xlane.f32.xlu1 %v3380_v43  ;;  %3378 = vmax.xlane.f32.xlu0 %v3377_v24 }
 0x345   : > { %v7278_v63 = vpop.f32.mrb[12].mxu0 }
 0x346   : > { %v5793_v36 = vpop.f32.mrb[13].mxu0  ;;  %v3383_v27 = vsel %vm2139_vm2, %v7278_v63, -inf }
 0x347   : > { %v7280_v6 = vpop.f32.mrb[10].mxu1  ;;  %3384 = vmax.xlane.f32.xlu0 %v3383_v27 }
 0x348   : > { %v5798_v21 = vpop.f32.mrb[11].mxu1  ;;  %v3386_v13 = vsel %vm2139_vm2, %v7280_v6, -inf }
 0x349   : > { %3387 = vmax.xlane.f32.xlu1 %v3386_v13 }
 0x34a   : > { %v7286_v19 = vpop.f32.mrb[14].mxu0 }
 0x34b   : > { %v7288_v51 = vpop.f32.mrb[12].mxu1  ;;  %v5803_v28 = vpop.f32.mrb[15].mxu0  ;;  %v3389_v37 = vsel %vm2139_vm2, %v7286_v19, -inf }
 0x34c   : > { %v5808_v20 = vpop.f32.mrb[13].mxu1  ;;  %v3392_v39 = vsel %vm2139_vm2, %v7288_v51, -inf  ;;  %3390 = vmax.xlane.f32.xlu0 %v3389_v37 }
 0x34d   : > { %3393 = vmax.xlane.f32.xlu1 %v3392_v39 }
 0x34e   : > { %v7294_v58 = vpop.f32.mrb[16].mxu0 }
 0x34f   : > { %v7296_v16 = vpop.f32.mrb[14].mxu1  ;;  %v5813_v17 = vpop.f32.mrb[17].mxu0  ;;  %v3395_v10 = vsel %vm2139_vm2, %v7294_v58, -inf }
 0x350   : > { %v5818_v61 = vpop.f32.mrb[15].mxu1  ;;  %v3398_v52 = vsel %vm2139_vm2, %v7296_v16, -inf  ;;  %3396 = vmax.xlane.f32.xlu0 %v3395_v10 }
 0x351   : > { %3399 = vmax.xlane.f32.xlu1 %v3398_v52 }
 0x352   : > { %v7302_v56 = vpop.f32.mrb[18].mxu0 }
 0x353   : > { %v5823_v60 = vpop.f32.mrb[19].mxu0  ;;  %v3401_v48 = vsel %vm2139_vm2, %v7302_v56, -inf }
 0x354   : > { %3402 = vmax.xlane.f32.xlu0 %v3401_v48 }
 0x362   : > { %1553 = vrot.lane.b32.xlu1 %v6535_v12, %s6281_s22 }
 0x366   : > { %1561 = vrot.lane.b32.xlu1 %v6615_v54, %s6281_s22 }
 0x36a   : > { %1569 = vrot.lane.b32.xlu1 %v6663_v32, %s6281_s22  ;;  %1575 = vrot.lane.b32.xlu0 %v6633_v5, %s6281_s22 }
 0x3bd   : > { %v3361_v49 = vpop.xlane.xlu1 %3360  ;;  %v3358_v23 = vpop.xlane.xlu0 %3357 }
 0x3be   : > { %v3405_v35 = vsub.f32 %v7242_v30, %v3361_v49  ;;  %v3404_v12 = vsub.f32 %v7244_v34, %v3358_v23 }
 0x3c0   : > { %v3422_v7 = vmul.f32 1.442695, %v3405_v35  ;;  %v3420_v54 = vmul.f32 1.442695, %v3404_v12 }
 0x3c2   : > { %6032 = vpow2.f32 %v3422_v7  ;;  %v3364_v32 = vpop.xlane.xlu0 %3363 }
 0x3c3   : > { %6034 = vpow2.f32 %v3420_v54  ;;  %v3406_v55 = vsub.f32 %v7250_v11, %v3364_v32 }
 0x3c5   : > { %v3424_v5 = vmul.f32 1.442695, %v3406_v55 }
 0x3c6   : > { %v3367_v24 = vpop.xlane.xlu0 %3366 }
 0x3c7   : > { %v3370_v18 = vpop.xlane.xlu1 %3369  ;;  %6036 = vpow2.f32 %v3424_v5  ;;  %v3407_v43 = vsub.f32 %v7254_v8, %v3367_v24 }
 0x3c8   : > { %v3408_v3 = vsub.f32 %v7258_v42, %v3370_v18 }
 0x3c9   : > { %v3426_v36 = vmul.f32 1.442695, %v3407_v43 }
 0x3ca   : > { %v3428_v27 = vmul.f32 1.442695, %v3408_v3 }
 0x3cb   : > { %6038 = vpow2.f32 %v3426_v36  ;;  %v1732_v36 = vcombine.high %v7314_v9, %v7316_v41 }
 0x3cc   : > { %v3376_v30 = vpop.xlane.xlu1 %3375  ;;  %v7325_v21 = vpop.xlane.xlu0 %3372  ;;  %6040 = vpow2.f32 %v3428_v27 }
 0x3cd   : > { %v7327_v34 = vpop.eup %6032  ;;  %v3410_v13 = vsub.f32 %v7264_v14, %v3376_v30 }
 0x3ce   : > { %v7330_v28 = vpop.eup %6034  ;;  %v3455_v11 = vsel %vm2139_vm2, %v7327_v34, 0.0 }
 0x3cf   : > { %3456 = vadd.xlane.f32.xlu0 %v3455_v11  ;;  %v3452_v42 = vsel %vm2139_vm2, %v7330_v28, 0.0  ;;  %v3432_v8 = vmul.f32 1.442695, %v3410_v13 }
 0x3d0   : > { %3453 = vadd.xlane.f32.xlu1 %v3452_v42  ;;  %v3382_v37 = vpop.xlane.xlu1 %3381  ;;  %v7336_v20 = vpop.xlane.xlu0 %3378 }
 0x3d1   : > { %v3412_v39 = vsub.f32 %v7272_v62, %v3382_v37  ;;  %v7339_v17 = vpop.eup %6036  ;;  %6042 = vpow2.f32 %v3432_v8 }
 0x3d2   : > { %v3458_v52 = vsel %vm2139_vm2, %v7339_v17, 0.0 }
 0x3d3   : > { %v3436_v14 = vmul.f32 1.442695, %v3412_v39 }
 0x3d4   : > { %v3385_v61 = vpop.xlane.xlu0 %3384  ;;  %3459 = vadd.xlane.f32.xlu1 %v3458_v52 }
 0x3d5   : > { %v3413_v60 = vsub.f32 %v7278_v63, %v3385_v61  ;;  %v7345_v23 = vpop.eup %6038  ;;  %6044 = vpow2.f32 %v3436_v14 }
 0x3d6   : > { %v3388_v10 = vpop.xlane.xlu1 %3387  ;;  %v3461_v62 = vsel %vm2139_vm2, %v7345_v23, 0.0  ;;  %v7349_v12 = vpop.eup %6040 }
 0x3d7   : > { %v3414_v48 = vsub.f32 %v7280_v6, %v3388_v10  ;;  %v3438_v49 = vmul.f32 1.442695, %v3413_v60  ;;  %3462 = vadd.xlane.f32.xlu0 %v3461_v62  ;;  %v3464_v6 = vsel %vm2139_vm2, %v7349_v12, 0.0 }
 0x3d9   : > { %v3391_v35 = vpop.xlane.xlu0 %3390  ;;  %v3440_v7 = vmul.f32 1.442695, %v3414_v48  ;;  %6046 = vpow2.f32 %v3438_v49 }
 0x3da   : > { %v3415_v54 = vsub.f32 %v7286_v19, %v3391_v35  ;;  %v3394_v32 = vpop.xlane.xlu1 %3393  ;;  %v1731_v19 = vcombine.low %v7314_v9, %v7316_v41  ;;  %v1746_v9 = vrot.slane %v1732_v36, %v6567_v26 }
 0x3db   : > { %v7354_v55 = vpop.eup %6042  ;;  %3465 = vadd.xlane.f32.xlu0 %v3464_v6  ;;  %6048 = vpow2.f32 %v3440_v7  ;;  %v3416_v5 = vsub.f32 %v7288_v51, %v3394_v32 }
 0x3dc   : > { %v3442_v18 = vmul.f32 1.442695, %v3415_v54  ;;  %v3470_v3 = vsel %vm2139_vm2, %v7354_v55, 0.0  ;;  %v1739_v39 = vrot.slane %v1731_v19, %v6567_v26 }
 0x3dd   : > { %v3397_v63 = vpop.xlane.xlu0 %3396  ;;  %v3444_v27 = vmul.f32 1.442695, %v3416_v5 }
 0x3de   : > { %6050 = vpow2.f32 %v3442_v18  ;;  %v3417_v30 = vsub.f32 %v7294_v58, %v3397_v63  ;;  %v3400_v11 = vpop.xlane.xlu1 %3399 }
 0x3df   : > { %v7359_v43 = vpop.eup %6044  ;;  %3471 = vadd.xlane.f32.xlu0 %v3470_v3  ;;  %6052 = vpow2.f32 %v3444_v27  ;;  %v3418_v14 = vsub.f32 %v7296_v16, %v3400_v11 }
 0x3e0   : > { %v3476_v37 = vsel %vm2139_vm2, %v7359_v43, 0.0  ;;  %v3446_v10 = vmul.f32 1.442695, %v3417_v30 }
 0x3e1   : > { %v3403_v24 = vpop.xlane.xlu0 %3402  ;;  %v3448_v16 = vmul.f32 1.442695, %v3418_v14  ;;  %v3409_v14 = vsub.f32 %v7262_v46, %v7325_v21  ;;  %v3411_v21 = vsub.f32 %v7270_v44, %v7336_v20 }
 0x3e2   : > { %6054 = vpow2.f32 %v3446_v10  ;;  %v3419_v54 = vsub.f32 %v7302_v56, %v3403_v24 }
 0x3e3   : > { %v7366_v51 = vpop.eup %6046  ;;  %3477 = vadd.xlane.f32.xlu0 %v3476_v37  ;;  %6056 = vpow2.f32 %v3448_v16  ;;  %v3430_v46 = vmul.f32 1.442695, %v3409_v14 }
 0x3e4   : > { %v3450_v56 = vmul.f32 1.442695, %v3419_v54 }
 0x3e5   : > { %v1576_v13 = vpop.permute.xlu0 %1575  ;;  %1577 = vrot.lane.b32.xlu1 %v6679_v47, %s6281_s22  ;;  %v7381_v61 = vpop.eup %6048  ;;  %s6188_s22 = scalar_lea.vmem %s6187_s21, 1024 }
 0x3e6   : > { %v1747_v42 = vcombine.low %v7318_v33, %v1576_v13  ;;  %v1748_v8 = vcombine.high %v7318_v33, %v1576_v13  ;;  %v3479_v33 = vsel %vm2139_vm2, %v7366_v51, 0.0  ;;  %v3482_v32 = vsel %vm2139_vm2, %v7381_v61, 0.0  ;;  %p6190_p5 = scmp.lt.s32.totalorder %s6188_s22, %s6182_s18 }
 0x3e7   : > { %3480 = vadd.xlane.f32.xlu0 %v3479_v33  ;;  %6058 = vpow2.f32 %v3450_v56 }
 0x3e8   : > { %v1755_v58 = vrot.slane %v1747_v42, %v6567_v26  ;;  %v1762_v41 = vrot.slane %v1748_v8, %v6567_v26  ;;  %v7390_v63 = vpop.eup %6050  ;;  %6060 = vpow2.f32 %v3430_v46  ;;  %p6191_p9 = por %p6190_p5, %p6189_p3 }
 0x3e9   : > { %v3485_v24 = vsel %vm2139_vm2, %v7390_v63, 0.0  ;;  %v7398_v13 = vpop.eup %6052 }
 0x3ea   : > { %v1763_v52 = vcombine.low %v1739_v39, %v1755_v58  ;;  %v1764_v60 = vcombine.high %v1739_v39, %v1755_v58  ;;  %v1779_v48 = vcombine.low %v1746_v9, %v1762_v41  ;;  %v1780_v49 = vcombine.high %v1746_v9, %v1762_v41  ;;  %p6192_p11 = pnand %p6191_p9, %p6185_p10 }
 0x3eb   : > { %3483 = vadd.xlane.f32.xlu0 %v3482_v32  ;;  %v3488_v10 = vsel %vm2139_vm2, %v7398_v13, 0.0 }
 0x3ec   : > { %v1771_v47 = vrot.slane %v1763_v52, %v6581_v31  ;;  %v1778_v35 = vrot.slane %v1764_v60, %v6581_v31  ;;  %v1787_v62 = vrot.slane %v1779_v48, %v6581_v31  ;;  %v1794_v7 = vrot.slane %v1780_v49, %v6581_v31  ;;  %v7424_v49 = vpop.eup %6054 }
 0x3ee   : > { %v2003_v6 = vcombine.low %v1771_v47, %v1778_v35  ;;  %v5578_v5 = vcombine.high %v1771_v47, %v1778_v35  ;;  %v2019_v18 = vcombine.low %v1787_v62, %v1794_v7  ;;  %v5579_v3 = vcombine.high %v1787_v62, %v1794_v7  ;;  %v7430_v35 = vpop.eup %6056 }
 0x3ef   : > { %3486 = vadd.xlane.f32.xlu0 %v3485_v24  ;;  %v3491_v47 = vsel %vm2139_vm2, %v7424_v49, 0.0  ;;  %v3434_v62 = vmul.f32 1.442695, %v3411_v21  ;;  %v3494_v7 = vsel %vm2139_vm2, %v7430_v35, 0.0 }
 0x3f0   : > { %v2010_v19 = vrot.slane %v2003_v6, %v6567_v26  ;;  %v2018_v36 = vrot.slane %v5578_v5, %v6567_v26  ;;  %v2026_v27 = vrot.slane %v2019_v18, %v6567_v26  ;;  %v2034_v30 = vrot.slane %v5579_v3, %v6567_v26  ;;  %v1554_v5 = vpop.permute.xlu1 %1553 }
 0x3f1   : > { %v7434_v16 = vpop.eup %6058  ;;  %6062 = vpow2.f32 %v3434_v62 }
 0x3f2   : > { %v2035_v11 = vcombine.low %v2010_v19, %v2018_v36  ;;  %v2051_v42 = vcombine.low %v2026_v27, %v2034_v30  ;;  %v2036_v8 = vcombine.high %v2010_v19, %v2018_v36  ;;  %v2052_v37 = vcombine.high %v2026_v27, %v2034_v30  ;;  %v7438_v44 = vpop.eup %6060 }
 0x3f3   : > { %3489 = vadd.xlane.f32.xlu0 %v3488_v10  ;;  %v3497_v54 = vsel %vm2139_vm2, %v7434_v16, 0.0  ;;  %v3467_v20 = vsel %vm2139_vm2, %v7438_v44, 0.0 }
 0x3f4   : > { %v7401_v39 = vrot.slane %v2035_v11, %v6581_v31  ;;  %v7404_v9 = vrot.slane %v2051_v42, %v6581_v31  ;;  %v7407_v58 = vrot.slane %v2036_v8, %v6581_v31  ;;  %v7410_v41 = vrot.slane %v2052_v37, %v6581_v31  ;;  %v1562_v18 = vpop.permute.xlu1 %1561 }
 0x3f6   : > { %v2067_v33 = vcombine.low %v7401_v39, %v7404_v9  ;;  %v2068_v52 = vcombine.high %v7401_v39, %v7404_v9  ;;  %v2069_v60 = vcombine.low %v7407_v58, %v7410_v41  ;;  %v2070_v48 = vcombine.high %v7407_v58, %v7410_v41 }
 0x3f7   : > { %3492 = vadd.xlane.f32.xlu0 %v3491_v47 }
 0x3f8   : > { %v1570_v3 = vpop.permute.xlu1 %1569 }
 0x3f9   : > { %v1799_v30 = vcombine.low %v1554_v5, %v1570_v3  ;;  %v1800_v56 = vcombine.high %v1554_v5, %v1570_v3 }
 0x3fb   : > { %3495 = vadd.xlane.f32.xlu0 %v3494_v7  ;;  %v7442_v32 = vpop.eup %6062  ;;  %v1807_v10 = vrot.slane %v1799_v30, %v6567_v26  ;;  %v1814_v21 = vrot.slane %v1800_v56, %v6567_v26 }
 0x3fc   : > { %v3473_v6 = vsel %vm2139_vm2, %v7442_v32, 0.0 }
 0x3ff   : > { %3498 = vadd.xlane.f32.xlu0 %v3497_v54 }
 0x409   : > { %3468 = vadd.xlane.f32.xlu1 %v3467_v20 }
 0x40d   : > { %3474 = vadd.xlane.f32.xlu1 %v3473_v6 }
 0x45c   : > { %v3457_v19 = vpop.xlane.xlu0 %3456 }
 0x45d   : > { %6064 = vrcp.f32 %v3457_v19  ;;  %v3454_v36 = vpop.xlane.xlu1 %3453 }
 0x45e   : > { %6066 = vrcp.f32 %v3454_v36 }
 0x461   : > { %v3460_v27 = vpop.xlane.xlu1 %3459 }
 0x462   : > { %6068 = vrcp.f32 %v3460_v27 }
 0x464   : > { %v3463_v37 = vpop.xlane.xlu0 %3462 }
 0x465   : > { %v1578_v24 = vpop.permute.xlu1 %1577  ;;  %6070 = vrcp.f32 %v3463_v37 }
 0x466   : > { %v1815_v42 = vcombine.low %v1562_v18, %v1578_v24  ;;  %v1816_v8 = vcombine.high %v1562_v18, %v1578_v24 }
 0x467   : > { %v6065_v11 = vpop.eup %6064 }
 0x468   : > { %v6067_v14 = vpop.eup %6066  ;;  %v3517_v46 = vmul.f32 %v6065_v11, %v7327_v34  ;;  %v1823_v62 = vrot.slane %v1815_v42, %v6567_v26  ;;  %v1830_v7 = vrot.slane %v1816_v8, %v6567_v26  ;;  %v3466_v18 = vpop.xlane.xlu0 %3465 }
 0x469   : > { %v3516_v47 = vmul.f32 %v6067_v14, %v7330_v28  ;;  %6072 = vrcp.f32 %v3466_v18 }
 0x46a   : > { %5832 = vmatmul.mubr.msk.f32.vlgmr.msra.gmra.mrb[20].mxu0 %vm2139_vm2, %v3517_v46  ;;  %v1831_v54 = vcombine.low %v1807_v10, %v1823_v62  ;;  %v1832_v20 = vcombine.high %v1807_v10, %v1823_v62  ;;  %v1847_v6 = vcombine.low %v1814_v21, %v1830_v7  ;;  %v1848_v5 = vcombine.high %v1814_v21, %v1830_v7 }
 0x46b   : > { %5827 = vmatmul.mubr.msk.f32.vlgmr.msra.gmra.mrb[16].mxu1 %vm2139_vm2, %v3516_v47  ;;  %5841 = vmatprep.mubr.msk.f32.mxu0 %vm6283_vm1, %v6282_v53 }
 0x46c   : > { %5835 = vmatpush3.msra.mxu1 %v2067_v33  ;;  %5836 = vmatprep.mubr.msk.f32.mxu1 %vm6283_vm1, %v6282_v53  ;;  %v6069_v34 = vpop.eup %6068  ;;  %v1839_v28 = vrot.slane %v1831_v54, %v6581_v31  ;;  %v1846_v3 = vrot.slane %v1832_v20, %v6581_v31  ;;  %v1855_v19 = vrot.slane %v1847_v6, %v6581_v31  ;;  %v3472_v11 = vpop.xlane.xlu0 %3471 }
 0x46d   : > { %v1862_v36 = vrot.slane %v1848_v5, %v6581_v31  ;;  %5844 = vmatprep.subr.mxu1 %v6282_v53  ;;  %v3518_v27 = vmul.f32 %v6069_v34, %v7339_v17  ;;  %6074 = vrcp.f32 %v3472_v11 }
 0x46e   : > { %v2071_v33 = vcombine.low %v1839_v28, %v1846_v3  ;;  %v5580_v30 = vcombine.high %v1839_v28, %v1846_v3 }
 0x46f   : > { %v2087_v56 = vcombine.low %v1855_v19, %v1862_v36  ;;  %v5581_v24 = vcombine.high %v1855_v19, %v1862_v36  ;;  %5837 = vmatmul.mubr.msk.f32.vlgmr.msra.gmra.mrb[18].mxu1 %vm2139_vm2, %v3518_v27  ;;  %v6071_v21 = vpop.eup %6070 }
 0x470   : > { %v7466_v42 = vrot.slane %v2071_v33, %v6567_v26  ;;  %v7469_v8 = vrot.slane %v5580_v30, %v6567_v26  ;;  %5845 = vmatpush3.msra.mxu1 %v1932_v15  ;;  %5846 = vmatprep.mubr.msk.f32.mxu1 %vm6283_vm1, %v6282_v53  ;;  %v3478_v14 = vpop.xlane.xlu0 %3477  ;;  %v3519_v54 = vmul.f32 %v6071_v21, %v7345_v23 }
 0x471   : > { %v7472_v37 = vrot.slane %v2087_v56, %v6567_v26  ;;  %v7475_v17 = vrot.slane %v5581_v24, %v6567_v26  ;;  %5854 = vmatprep.subr.mxu1 %v6282_v53  ;;  %6076 = vrcp.f32 %v3478_v14 }
 0x472   : > { %v2103_v10 = vcombine.low %v7466_v42, %v7469_v8  ;;  %v2104_v41 = vcombine.high %v7466_v42, %v7469_v8 }
 0x473   : > { %v2119_v46 = vcombine.low %v7472_v37, %v7475_v17  ;;  %v6073_v38 = vpop.eup %6072 }
 0x474   : > { %v7488_v47 = vrot.slane %v2103_v10, %v6581_v31  ;;  %v3520_v15 = vmul.f32 %v6073_v38, %v7349_v12  ;;  %v3481_v62 = vpop.xlane.xlu0 %3480  ;;  %v2118_v34 = vrot.slane %v2104_v41, %v6581_v31  ;;  %v5306_v41 = vld [vmem:[#allocation7] sm:$0xff] }
 0x475   : > { %v7491_v50 = vrot.slane %v2119_v46, %v6581_v31 }
 0x476   : > { %5847 = vmatmul.mubr.msk.f32.vlgmr.msra.gmra.mrb[20].mxu1 %vm2139_vm2, %v3520_v15 }
 0x477   : > { %v2135_v7 = vcombine.low %v7488_v47, %v7491_v50  ;;  %v6075_v20 = vpop.eup %6074  ;;  %5855 = vmatpush3.msra.mxu1 %v2068_v52  ;;  %5856 = vmatprep.mubr.msk.f32.mxu1 %vm6283_vm1, %v6282_v53  ;;  %v2136_v58 = vcombine.high %v7488_v47, %v7491_v50 }
 0x478   : > { %v3522_v6 = vmul.f32 %v6075_v20, %v7354_v55  ;;  %v3484_v12 = vpop.xlane.xlu0 %3483  ;;  %5864 = vmatprep.subr.mxu1 %v6282_v53 }
 0x479   : > { %5840 = vmatpush3.msra.mxu0 %v2135_v7  ;;  %6078 = vrcp.f32 %v3484_v12 }
 0x47a   : > { %5842 = vmatmul.mubr.msk.f32.vlgmr.msra.gmra.mrb[22].mxu0 %vm2139_vm2, %v3519_v54  ;;  %5849 = vmatprep.subr.mxu0 %v6282_v53 }
 0x47b   : > { %5850 = vmatpush3.msra.mxu0 %v2000_v40  ;;  %5857 = vmatmul.mubr.msk.f32.vlgmr.msra.gmra.mrb[22].mxu1 %vm2139_vm2, %v3522_v6  ;;  %v6077_v23 = vpop.eup %6076 }
 0x47c   : > { %5851 = vmatprep.mubr.msk.f32.mxu0 %vm6283_vm1, %v6282_v53  ;;  %5865 = vmatpush3.msra.mxu1 %v1933_v45  ;;  %v3524_v55 = vmul.f32 %v6077_v23, %v7359_v43  ;;  %v3487_v39 = vpop.xlane.xlu0 %3486 }
 0x47d   : > { %5866 = vmatprep.mubr.msk.f32.mxu1 %vm6283_vm1, %v6282_v53  ;;  %5874 = vmatprep.subr.mxu1 %v6282_v53 }
 0x47e   : > { %5859 = vmatprep.subr.mxu0 %v6282_v53 }
 0x47f   : > { %5867 = vmatmul.mubr.msk.f32.vlgmr.msra.gmra.mrb[24].mxu1 %vm2139_vm2, %v3524_v55 }
 0x480   : > { %5875 = vmatpush3.msra.mxu1 %v2069_v60  ;;  %5876 = vmatprep.mubr.msk.f32.mxu1 %vm6283_vm1, %v6282_v53  ;;  %v3490_v57 = vpop.xlane.xlu0 %3489 }
 0x481   : > { %5884 = vmatprep.subr.mxu1 %v6282_v53  ;;  %6080 = vrcp.f32 %v3490_v57 }
 0x483   : > { %v6079_v29 = vpop.eup %6078 }
 0x484   : > { %v3526_v45 = vmul.f32 %v6079_v29, %v7381_v61  ;;  %v3493_v40 = vpop.xlane.xlu0 %3492 }
 0x486   : > { %5877 = vmatmul.mubr.msk.f32.vlgmr.msra.gmra.mrb[26].mxu1 %vm2139_vm2, %v3526_v45 }
 0x487   : > { %5885 = vmatpush3.msra.mxu1 %v1934_v4  ;;  %5886 = vmatprep.mubr.msk.f32.mxu1 %vm6283_vm1, %v6282_v53 }
 0x488   : > { %v3496_v43 = vpop.xlane.xlu0 %3495  ;;  %5894 = vmatprep.subr.mxu1 %v6282_v53 }
 0x489   : > { %6082 = vrcp.f32 %v3496_v43 }
 0x48b   : > { %v6081_v9 = vpop.eup %6080 }
 0x48c   : > { %v3528_v52 = vmul.f32 %v6081_v9, %v7398_v13  ;;  %v3499_v5 = vpop.xlane.xlu0 %3498 }
 0x48e   : > { %5887 = vmatmul.mubr.msk.f32.vlgmr.msra.gmra.mrb[28].mxu1 %vm2139_vm2, %v3528_v52 }
 0x48f   : > { %5895 = vmatpush3.msra.mxu1 %v2070_v48  ;;  %5896 = vmatprep.mubr.msk.f32.mxu1 %vm6283_vm1, %v6282_v53  ;;  %v2120_v48 = vcombine.high %v7472_v37, %v7475_v17 }
 0x491   : > { %v2134_v28 = vrot.slane %v2120_v48, %v6581_v31  ;;  %v5307_v48 = vld [vmem:[#allocation7 + $0x8] sm:$0xff] }
 0x493   : > { %v6083_v22 = vpop.eup %6082  ;;  %v2137_v19 = vcombine.low %v2118_v34, %v2134_v28  ;;  %v2138_v33 = vcombine.high %v2118_v34, %v2134_v28 }
 0x494   : > { %v3530_v1 = vmul.f32 %v6083_v22, %v7430_v35 }
 0x496   : > { %v3469_v4 = vpop.xlane.xlu1 %3468  ;;  %5897 = vmatmul.mubr.msk.f32.vlgmr.msra.gmra.mrb[30].mxu1 %vm2139_vm2, %v3530_v1 }
 0x497   : > { %6084 = vrcp.f32 %v3469_v4 }
 0x49a   : > { %v3475_v61 = vpop.xlane.xlu1 %3474 }
 0x49b   : > { %6086 = vrcp.f32 %v3475_v61 }
 0x49c   : > { %6088 = vrcp.f32 %v3481_v62 }
 0x49d   : > { %6090 = vrcp.f32 %v3487_v39 }
 0x49e   : > { %6092 = vrcp.f32 %v3493_v40 }
 0x49f   : > { %6094 = vrcp.f32 %v3499_v5 }
 0x4a1   : > { %v6085_v13 = vpop.eup %6084 }
 0x4a2   : > { %v3521_v60 = vmul.f32 %v6085_v13, %v7438_v44 }
 0x4a4   : > { %5852 = vmatmul.mubr.msk.f32.vlgmr.msra.gmra.mrb[24].mxu0 %vm2139_vm2, %v3521_v60 }
 0x4a5   : > { %v6087_v35 = vpop.eup %6086  ;;  %5860 = vmatpush3.msra.mxu0 %v2136_v58  ;;  %5861 = vmatprep.mubr.msk.f32.mxu0 %vm6283_vm1, %v6282_v53 }
 0x4a6   : > { %v3523_v44 = vmul.f32 %v6087_v35, %v7442_v32  ;;  %5869 = vmatprep.subr.mxu0 %v6282_v53  ;;  %v6089_v18 = vpop.eup %6088 }
 0x4a7   : > { %v3525_v3 = vmul.f32 %v6089_v18, %v7366_v51  ;;  %v6091_v32 = vpop.eup %6090 }
 0x4a8   : > { %5862 = vmatmul.mubr.msk.f32.vlgmr.msra.gmra.mrb[26].mxu0 %vm2139_vm2, %v3523_v44  ;;  %v3527_v36 = vmul.f32 %v6091_v32, %v7390_v63  ;;  %v5926_v32 = vpack.c.bf16 %v5307_v48, %v5306_v41 }
 0x4a9   : > { %5870 = vmatpush3.msra.mxu0 %v2001_v2  ;;  %5871 = vmatprep.mubr.msk.f32.mxu0 %vm6283_vm1, %v6282_v53  ;;  %v6093_v2 = vpop.eup %6092 }
 0x4aa   : > { %5879 = vmatprep.subr.mxu0 %v6282_v53  ;;  %v3529_v51 = vmul.f32 %v6093_v2, %v7424_v49  ;;  %v6095_v27 = vpop.eup %6094  ;;  %5927 = vmatprep.subr.bf16.mxu1 %v5926_v32 }
 0x4ab   : > { %v3531_v63 = vmul.f32 %v6095_v27, %v7434_v16  ;;  %5929 = vmatpush3.bf16.msra.mxu1 %v5926_v32 }
 0x4ac   : > { %5872 = vmatmul.mubr.msk.f32.vlgmr.msra.gmra.mrb[28].mxu0 %vm2139_vm2, %v3525_v3 }
 0x4ad   : > { %5880 = vmatpush3.msra.mxu0 %v2137_v19  ;;  %5881 = vmatprep.mubr.msk.f32.mxu0 %vm6283_vm1, %v6282_v53 }
 0x4ae   : > { %5889 = vmatprep.subr.mxu0 %v6282_v53 }
 0x4b0   : > { %5882 = vmatmul.mubr.msk.f32.vlgmr.msra.gmra.mrb[30].mxu0 %vm2139_vm2, %v3527_v36 }
 0x4b1   : > { %5890 = vmatpush3.msra.mxu0 %v2002_v59  ;;  %5891 = vmatprep.mubr.msk.f32.mxu0 %vm6283_vm1, %v6282_v53 }
 0x4b2   : > { %5899 = vmatprep.subr.mxu0 %v6282_v53 }
 0x4b4   : > { %5892 = vmatmul.mubr.msk.f32.vlgmr.msra.gmra.mrb[32].mxu0 %vm2139_vm2, %v3529_v51 }
 0x4b5   : > { %5900 = vmatpush3.msra.mxu0 %v2138_v33  ;;  %5901 = vmatprep.mubr.msk.f32.mxu0 %vm6283_vm1, %v6282_v53 }
 0x4b8   : > { %5902 = vmatmul.mubr.msk.f32.vlgmr.msra.gmra.mrb[34].mxu0 %vm2139_vm2, %v3531_v63 }
 0x53d   : > { %v7585_v0 = vpop.f32.mrb[20].mxu0 }
 0x53e   : > { %v5833_v25 = vpop.f32.mrb[21].mxu0  ;;  %v3601_v59 = vpop.f32.mrb[16].mxu1 }
 0x53f   : > { %v5828_v30 = vpop.f32.mrb[17].mxu1 }
 0x542   : > { %v3747_v49 = vpop.f32.mrb[18].mxu1 }
 0x543   : > { %v5838_v56 = vpop.f32.mrb[19].mxu1 }
 0x549   : > { %v3893_v24 = vpop.f32.mrb[20].mxu1 }
 0x54a   : > { %v5848_v11 = vpop.f32.mrb[21].mxu1 }
 0x54d   : > { %v7587_v42 = vpop.f32.mrb[22].mxu0 }
 0x54e   : > { %v5843_v8 = vpop.f32.mrb[23].mxu0  ;;  %v4039_v37 = vpop.f32.mrb[22].mxu1 }
 0x54f   : > { %v5858_v17 = vpop.f32.mrb[23].mxu1 }
 0x552   : > { %v4185_v14 = vpop.f32.mrb[24].mxu1 }
 0x553   : > { %v4700_v53 = vcombine.low %v3601_v59, %v4185_v14  ;;  %v4701_v10 = vcombine.high %v3601_v59, %v4185_v14  ;;  %v5868_v16 = vpop.f32.mrb[25].mxu1 }
 0x555   : > { %v4708_v54 = vrot.slane %v4700_v53, %v6567_v26  ;;  %v4715_v20 = vrot.slane %v4701_v10, %v6567_v26 }
 0x559   : > { %v4331_v46 = vpop.f32.mrb[26].mxu1 }
 0x55a   : > { %v4836_v21 = vcombine.low %v3747_v49, %v4331_v46  ;;  %v4837_v47 = vcombine.high %v3747_v49, %v4331_v46  ;;  %v5878_v50 = vpop.f32.mrb[27].mxu1 }
 0x55c   : > { %v4844_v13 = vrot.slane %v4836_v21, %v6567_v26  ;;  %v4851_v34 = vrot.slane %v4837_v47, %v6567_v26 }
 0x561   : > { %v4477_v38 = vpop.f32.mrb[28].mxu1 }
 0x562   : > { %v4716_v15 = vcombine.low %v3893_v24, %v4477_v38  ;;  %v4717_v62 = vcombine.high %v3893_v24, %v4477_v38  ;;  %v5888_v7 = vpop.f32.mrb[29].mxu1 }
 0x564   : > { %v4724_v6 = vrot.slane %v4716_v15, %v6567_v26  ;;  %v4731_v12 = vrot.slane %v4717_v62, %v6567_v26 }
 0x566   : > { %v4732_v23 = vcombine.low %v4708_v54, %v4724_v6  ;;  %v4733_v55 = vcombine.high %v4708_v54, %v4724_v6  ;;  %v4748_v39 = vcombine.low %v4715_v20, %v4731_v12  ;;  %v4749_v57 = vcombine.high %v4715_v20, %v4731_v12 }
 0x568   : > { %v4740_v29 = vrot.slane %v4732_v23, %v6581_v31  ;;  %v4747_v45 = vrot.slane %v4733_v55, %v6581_v31  ;;  %v4756_v40 = vrot.slane %v4748_v39, %v6581_v31  ;;  %v4763_v43 = vrot.slane %v4749_v57, %v6581_v31 }
 0x569   : > { %v4623_v9 = vpop.f32.mrb[30].mxu1 }
 0x56a   : > { %v4972_v52 = vcombine.low %v4740_v29, %v4747_v45  ;;  %v5630_v22 = vcombine.high %v4740_v29, %v4747_v45  ;;  %v4988_v1 = vcombine.low %v4756_v40, %v4763_v43  ;;  %v5631_v4 = vcombine.high %v4756_v40, %v4763_v43  ;;  %v5898_v61 = vpop.f32.mrb[31].mxu1 }
 0x56b   : > { %v4852_v60 = vcombine.low %v4039_v37, %v4623_v9  ;;  %v4853_v58 = vcombine.high %v4039_v37, %v4623_v9 }
 0x56c   : > { %v4979_v35 = vrot.slane %v4972_v52, %v6567_v26  ;;  %v4987_v5 = vrot.slane %v5630_v22, %v6567_v26  ;;  %v4995_v44 = vrot.slane %v4988_v1, %v6567_v26  ;;  %v5003_v18 = vrot.slane %v5631_v4, %v6567_v26 }
 0x56d   : > { %v4860_v28 = vrot.slane %v4852_v60, %v6567_v26  ;;  %v4867_v3 = vrot.slane %v4853_v58, %v6567_v26 }
 0x56e   : > { %v5004_v19 = vcombine.low %v4979_v35, %v4987_v5  ;;  %v5020_v36 = vcombine.low %v4995_v44, %v5003_v18  ;;  %v5005_v2 = vcombine.high %v4979_v35, %v4987_v5  ;;  %v5021_v51 = vcombine.high %v4995_v44, %v5003_v18 }
 0x56f   : > { %v4868_v27 = vcombine.low %v4844_v13, %v4860_v28  ;;  %v4869_v33 = vcombine.high %v4844_v13, %v4860_v28  ;;  %v4884_v63 = vcombine.low %v4851_v34, %v4867_v3  ;;  %v4885_v25 = vcombine.high %v4851_v34, %v4867_v3 }
 0x570   : > { %v7606_v59 = vrot.slane %v5004_v19, %v6581_v31  ;;  %v7609_v30 = vrot.slane %v5020_v36, %v6581_v31  ;;  %v7612_v49 = vrot.slane %v5005_v2, %v6581_v31  ;;  %v7615_v56 = vrot.slane %v5021_v51, %v6581_v31 }
 0x571   : > { %v4876_v24 = vrot.slane %v4868_v27, %v6581_v31  ;;  %v4883_v11 = vrot.slane %v4869_v33, %v6581_v31  ;;  %v4892_v8 = vrot.slane %v4884_v63, %v6581_v31  ;;  %v4899_v37 = vrot.slane %v4885_v25, %v6581_v31  ;;  %v5308_v25 = vld [vmem:[#allocation7 + $0x10] sm:$0xff] }
 0x572   : > { %v5037_v17 = vcombine.high %v7606_v59, %v7609_v30  ;;  %v5038_v14 = vcombine.low %v7612_v49, %v7615_v56  ;;  %v5039_v53 = vcombine.high %v7612_v49, %v7615_v56  ;;  %v5036_v10 = vcombine.low %v7606_v59, %v7609_v30 }
 0x573   : > { %v5108_v16 = vcombine.low %v4876_v24, %v4883_v11  ;;  %v5634_v46 = vcombine.high %v4876_v24, %v4883_v11  ;;  %v5124_v21 = vcombine.low %v4892_v8, %v4899_v37  ;;  %v5635_v47 = vcombine.high %v4892_v8, %v4899_v37  ;;  %v5309_v24 = vld [vmem:[#allocation7 + $0x18] sm:$0xff] }
 0x574   : > { %5248 = vrot.lane.b32.xlu1 %v5037_v17, %s6284_s29 }
 0x575   : > { %v5115_v38 = vrot.slane %v5108_v16, %v6567_v26  ;;  %v5123_v15 = vrot.slane %v5634_v46, %v6567_v26  ;;  %v5131_v62 = vrot.slane %v5124_v21, %v6567_v26  ;;  %v5139_v7 = vrot.slane %v5635_v47, %v6567_v26 }
 0x576   : > { %v5930_v21 = vpack.c.bf16 %v5309_v24, %v5308_v25 }
 0x577   : > { %v3966_v50 = vpop.f32.mrb[24].mxu0  ;;  %v5140_v20 = vcombine.low %v5115_v38, %v5123_v15  ;;  %v5156_v6 = vcombine.low %v5131_v62, %v5139_v7  ;;  %v5141_v12 = vcombine.high %v5115_v38, %v5123_v15  ;;  %v5157_v23 = vcombine.high %v5131_v62, %v5139_v7 }
 0x578   : > { %v5853_v54 = vpop.f32.mrb[25].mxu0  ;;  %5264 = vrot.lane.b32.xlu1 %v5038_v14, %s6285_s14  ;;  %5931 = vmatprep.subr.bf16.mxu1 %v5930_v21 }
 0x579   : > { %v7636_v39 = vrot.slane %v5140_v20, %v6581_v31  ;;  %v7639_v57 = vrot.slane %v5156_v6, %v6581_v31  ;;  %v7642_v29 = vrot.slane %v5141_v12, %v6581_v31  ;;  %v7645_v45 = vrot.slane %v5157_v23, %v6581_v31  ;;  %5933 = vmatpush3.bf16.msra.mxu1 %v5930_v21 }
 0x57b   : > { %v4112_v55 = vpop.f32.mrb[26].mxu0  ;;  %v5173_v43 = vcombine.high %v7636_v39, %v7639_v57  ;;  %v5174_v9 = vcombine.low %v7642_v29, %v7645_v45  ;;  %v5175_v52 = vcombine.high %v7642_v29, %v7645_v45  ;;  %v5172_v22 = vcombine.low %v7636_v39, %v7639_v57  ;;  %v5638_v39 = vld [vmem:[%s7799_s3] ss:$0 sm:$0xff] }
 0x57c   : > { %v5863_v40 = vpop.f32.mrb[27].mxu0 }
 0x57f   : > { %v4258_v1 = vpop.f32.mrb[28].mxu0 }
 0x580   : > { %v4768_v4 = vcombine.low %v7585_v0, %v4258_v1  ;;  %v4769_v61 = vcombine.high %v7585_v0, %v4258_v1  ;;  %v5873_v13 = vpop.f32.mrb[29].mxu0 }
 0x582   : > { %v4776_v34 = vrot.slane %v4768_v4, %v6567_v26  ;;  %v4783_v28 = vrot.slane %v4769_v61, %v6567_v26 }
 0x583   : > { %v4404_v60 = vpop.f32.mrb[30].mxu0 }
 0x584   : > { %v4904_v58 = vcombine.low %v7587_v42, %v4404_v60  ;;  %v4905_v41 = vcombine.high %v7587_v42, %v4404_v60  ;;  %v5883_v48 = vpop.f32.mrb[31].mxu0 }
 0x586   : > { %v4912_v42 = vrot.slane %v4904_v58, %v6567_v26  ;;  %v4919_v14 = vrot.slane %v4905_v41, %v6567_v26 }
 0x587   : > { %v4550_v35 = vpop.f32.mrb[32].mxu0 }
 0x588   : > { %v4784_v5 = vcombine.low %v3966_v50, %v4550_v35  ;;  %v4785_v44 = vcombine.high %v3966_v50, %v4550_v35  ;;  %v5893_v18 = vpop.f32.mrb[33].mxu0 }
 0x58a   : > { %v4792_v3 = vrot.slane %v4784_v5, %v6567_v26  ;;  %v4799_v32 = vrot.slane %v4785_v44, %v6567_v26 }
 0x58b   : > { %v4696_v0 = vpop.f32.mrb[34].mxu0 }
 0x58c   : > { %v4800_v19 = vcombine.low %v4776_v34, %v4792_v3  ;;  %v4801_v36 = vcombine.high %v4776_v34, %v4792_v3  ;;  %v4816_v2 = vcombine.low %v4783_v28, %v4799_v32  ;;  %v4817_v51 = vcombine.high %v4783_v28, %v4799_v32  ;;  %v5903_v27 = vpop.f32.mrb[35].mxu0 }
 0x58d   : > { %v4920_v33 = vcombine.low %v4112_v55, %v4696_v0  ;;  %v4921_v63 = vcombine.high %v4112_v55, %v4696_v0 }
 0x58e   : > { %v4808_v11 = vrot.slane %v4800_v19, %v6581_v31  ;;  %v4815_v8 = vrot.slane %v4801_v36, %v6581_v31  ;;  %v4824_v37 = vrot.slane %v4816_v2, %v6581_v31  ;;  %v4831_v17 = vrot.slane %v4817_v51, %v6581_v31 }
 0x58f   : > { %v4928_v16 = vrot.slane %v4920_v33, %v6567_v26  ;;  %v4935_v46 = vrot.slane %v4921_v63, %v6567_v26 }
 0x590   : > { %v5040_v47 = vcombine.low %v4808_v11, %v4815_v8  ;;  %v5632_v50 = vcombine.high %v4808_v11, %v4815_v8  ;;  %v5056_v38 = vcombine.low %v4824_v37, %v4831_v17  ;;  %v5633_v15 = vcombine.high %v4824_v37, %v4831_v17 }
 0x591   : > { %v4936_v62 = vcombine.low %v4912_v42, %v4928_v16  ;;  %v4937_v7 = vcombine.high %v4912_v42, %v4928_v16  ;;  %v4952_v54 = vcombine.low %v4919_v14, %v4935_v46  ;;  %v4953_v20 = vcombine.high %v4919_v14, %v4935_v46 }
 0x592   : > { %v5047_v6 = vrot.slane %v5040_v47, %v6567_v26  ;;  %v5055_v12 = vrot.slane %v5632_v50, %v6567_v26  ;;  %v5063_v23 = vrot.slane %v5056_v38, %v6567_v26  ;;  %v5071_v55 = vrot.slane %v5633_v15, %v6567_v26 }
 0x593   : > { %v4944_v40 = vrot.slane %v4936_v62, %v6581_v31  ;;  %v4951_v1 = vrot.slane %v4937_v7, %v6581_v31  ;;  %v4960_v4 = vrot.slane %v4952_v54, %v6581_v31  ;;  %v4967_v61 = vrot.slane %v4953_v20, %v6581_v31 }
 0x594   : > { %v5073_v13 = vcombine.high %v5047_v6, %v5055_v12  ;;  %v5089_v60 = vcombine.high %v5063_v23, %v5071_v55  ;;  %v5072_v58 = vcombine.low %v5047_v6, %v5055_v12  ;;  %v5088_v41 = vcombine.low %v5063_v23, %v5071_v55 }
 0x595   : > { %v5176_v48 = vcombine.low %v4944_v40, %v4951_v1  ;;  %v5636_v35 = vcombine.high %v4944_v40, %v4951_v1  ;;  %v5192_v5 = vcombine.low %v4960_v4, %v4967_v61  ;;  %v5637_v44 = vcombine.high %v4960_v4, %v4967_v61 }
 0x596   : > { %v5087_v18 = vrot.slane %v5073_v13, %v6581_v31  ;;  %v5103_v34 = vrot.slane %v5089_v60, %v6581_v31  ;;  %v5080_v28 = vrot.slane %v5072_v58, %v6581_v31  ;;  %v5096_v3 = vrot.slane %v5088_v41, %v6581_v31 }
 0x597   : > { %v5183_v32 = vrot.slane %v5176_v48, %v6567_v26  ;;  %v5191_v0 = vrot.slane %v5636_v35, %v6567_v26  ;;  %v5199_v19 = vrot.slane %v5192_v5, %v6567_v26  ;;  %v5207_v36 = vrot.slane %v5637_v44, %v6567_v26 }
 0x598   : > { %v5106_v2 = vcombine.low %v5087_v18, %v5103_v34  ;;  %v5105_v51 = vcombine.high %v5080_v28, %v5096_v3  ;;  %v5107_v27 = vcombine.high %v5087_v18, %v5103_v34  ;;  %v5104_v42 = vcombine.low %v5080_v28, %v5096_v3 }
 0x599   : > { %v5208_v33 = vcombine.low %v5183_v32, %v5191_v0  ;;  %v5224_v63 = vcombine.low %v5199_v19, %v5207_v36  ;;  %v5209_v25 = vcombine.high %v5183_v32, %v5191_v0  ;;  %v5225_v24 = vcombine.high %v5199_v19, %v5207_v36 }
 0x59a   : > { %5266 = vrot.lane.b32.xlu1 %v5106_v2, %s6285_s14  ;;  %5250 = vrot.lane.b32.xlu0 %v5105_v51, %s6284_s29 }
 0x59b   : > { %v5216_v11 = vrot.slane %v5208_v33, %v6581_v31  ;;  %v5232_v8 = vrot.slane %v5224_v63, %v6581_v31  ;;  %v5223_v37 = vrot.slane %v5209_v25, %v6581_v31  ;;  %v5239_v26 = vrot.slane %v5225_v24, %v6581_v31 }
 0x59d   : > { %v5241_v17 = vcombine.high %v5216_v11, %v5232_v8  ;;  %v5242_v14 = vcombine.low %v5223_v37, %v5239_v26  ;;  %v5243_v16 = vcombine.high %v5223_v37, %v5239_v26  ;;  %v5240_v46 = vcombine.low %v5216_v11, %v5232_v8 }
 0x59e   : > { %5282 = vrot.lane.b32.xlu1 %v5107_v27, %s6286_s5  ;;  %5280 = vrot.lane.b32.xlu0 %v5039_v53, %s6286_s5 }
 0x5a2   : > { %5252 = vrot.lane.b32.xlu0 %v5173_v43, %s6284_s29  ;;  %5254 = vrot.lane.b32.xlu1 %v5241_v17, %s6284_s29 }
 0x5a6   : > { %5268 = vrot.lane.b32.xlu0 %v5174_v9, %s6285_s14  ;;  %5270 = vrot.lane.b32.xlu1 %v5242_v14, %s6285_s14 }
 0x5aa   : > { %5284 = vrot.lane.b32.xlu0 %v5175_v52, %s6286_s5  ;;  %5286 = vrot.lane.b32.xlu1 %v5243_v16, %s6286_s5 }
 0x5e6   : > { %v5249_v31 = vpop.permute.xlu1 %5248 }
 0x5e7   : > { %v5292_v9 = vsel %vm2139_vm2, %v5036_v10, %v5249_v31 }
 0x5ea   : > { %v5265_v49 = vpop.permute.xlu1 %5264 }
 0x5eb   : > { %v5297_v21 = vsel %vm5296_vm3, %v5292_v9, %v5265_v49 }
 0x60c   : > { %v5267_v56 = vpop.permute.xlu1 %5266  ;;  %v5251_v53 = vpop.permute.xlu0 %5250 }
 0x60d   : > { %v5293_v43 = vsel %vm2139_vm2, %v5104_v42, %v5251_v53 }
 0x60e   : > { %v5298_v29 = vsel %vm5296_vm3, %v5293_v43, %v5267_v56 }
 0x610   : > { %v5283_v47 = vpop.permute.xlu1 %5282  ;;  %v5281_v45 = vpop.permute.xlu0 %5280 }
 0x611   : > { %v5303_v52 = vsel %vm5301_vm4, %v5298_v29, %v5283_v47  ;;  %v5302_v50 = vsel %vm5301_vm4, %v5297_v21, %v5281_v45 }
 0x612   : > { %5912 = vmatprep.mubr.msk.f32.mxu1 %vm273_vm0, %v5302_v50 }
 0x613   : > { %5913 = vmatmul.mubr.msk.f32.vlgmr.msra.gmra.mrb[32].mxu1 %vm273_vm0, %v5303_v52 }
 0x614   : > { %v5255_v38 = vpop.permute.xlu1 %5254  ;;  %v5253_v15 = vpop.permute.xlu0 %5252 }
 0x615   : > { %v5295_v30 = vsel %vm2139_vm2, %v5240_v46, %v5255_v38  ;;  %v5294_v10 = vsel %vm2139_vm2, %v5172_v22, %v5253_v15 }
 0x618   : > { %v5271_v62 = vpop.permute.xlu1 %5270  ;;  %v5269_v59 = vpop.permute.xlu0 %5268 }
 0x619   : > { %v5300_v7 = vsel %vm5296_vm3, %v5295_v30, %v5271_v62  ;;  %v5299_v54 = vsel %vm5296_vm3, %v5294_v10, %v5269_v59 }
 0x61c   : > { %v5287_v20 = vpop.permute.xlu1 %5286  ;;  %v5285_v6 = vpop.permute.xlu0 %5284 }
 0x61d   : > { %v5305_v12 = vsel %vm5301_vm4, %v5300_v7, %v5287_v20  ;;  %v5304_v23 = vsel %vm5301_vm4, %v5299_v54, %v5285_v6 }
 0x61e   : > { %5915 = vmatprep.mubr.msk.f32.mxu1 %vm273_vm0, %v5304_v23 }
 0x61f   : > { %5916 = vmatmul.mubr.msk.f32.gmra.mrb[34].mxu1 %vm273_vm0, %v5305_v12 }
 0x6e6   : > { %v5914_v57 = vpop.f32.mrb[32].mxu1 }
 0x6e7   : > { %v5401_v22 = vadd.f32 %v5914_v57, %v5638_v39  ;;  %v5395_v55 = vpop.f32.mrb[33].mxu1 }
 0x6e8   : > { %v5396_v40 = vadd.f32 %v5638_v39, %v5395_v55 }
 0x6e9   : > { %5415 = vst.msk [vmem:[%s262_s10 + $0x8] sm:$0xff] %vm273_vm0, %v5401_v22 }
 0x6ea   : > { %5414 = vst.msk [vmem:[%s262_s10] sm:$0xff] %vm273_vm0, %v5396_v40 }
 0x6f2   : > { %v5917_v1 = vpop.f32.mrb[34].mxu1 }
 0x6f3   : > { %v5411_v4 = vadd.f32 %v5917_v1, %v5638_v39  ;;  %v5405_v61 = vpop.f32.mrb[35].mxu1 }
 0x6f4   : > { %v5406_v13 = vadd.f32 %v5638_v39, %v5405_v61 }
 0x6f5   : > { %5417 = vst.msk [vmem:[%s262_s10 + $0x18] sm:$0xff] %vm273_vm0, %v5411_v4 }
 0x6f6   : > { %5416 = vst.msk [vmem:[%s262_s10 + $0x10] sm:$0xff] %vm273_vm0, %v5406_v13 }
 0x6f7   : > { %6195 = shalt.err (!%p6192_p11)
}
 0x6f8   : > { %s6196_s14 = scalar_lea.hbm %s7744_s12, 512  ;;  %s6200_s6 = scalar_lea.hbm %s7800_s4, 1024 }
 0x6f9   : > { %p6197_p0 = scmp.ne.s32.totalorder %s7744_s12, %s6196_s14  ;;  %p6201_p6 = scmp.lt.u32.totalorder %s7744_s12, %s7800_s4 }
 0x6fa   : > { %p6202_p7 = scmp.lt.u32.totalorder %s6200_s6, %s6196_s14  ;;  %p6204_p8 = scmp.lt.u32.totalorder %s6196_s14, %s7744_s12 }
 0x6fb   : > { %p6198_p4 = pnand %p6197_p0, %p7829_p12 }
 0x6fc   : > { %p6203_p2 = por %p6202_p7, %p6201_p6 }
 0x6fd   : > { %p6199_p13 = pneg %p6198_p4 }
 0x6fe   : > { %p6205_p1 = por %p6204_p8, %p6203_p2 }
 0x700   : > { %p6206_p10 = pnand %p6205_p1, %p6199_p13 }
 0x702   : > { %6209 = shalt.err (!%p6206_p10)
}
 0x703   : > { %s6288_s28 = smov 128  }
 0x704   : > { %5944 = dma.vmem_to_hbm [thread:$0]  (%p7829_p12), %s7739_s13, 512, %s7744_s12, %s5419_s25, %s6288_s28, %s6288_s28, %s6284_s29  }
 0x705 PF: > { %s5449_s23 = sand.u32 1, %s6248_s15   ;;  %p7830_p3 = scmp.ne.s32.totalorder %s7808_s26, 0 }
 0x706   : > { %p7831_p5 = scmp.ge.s32.totalorder %s6268_s20, 2  ;;  %s5450_s18 = scalar_lea.sflag [#allocation4], %s5449_s23 }
 0x708   : > { %p5958_p9 = pnand %p7831_p5, %p7830_p3 }
 0x70a   : > { %6243 = dma.done.wait (!%p5958_p9), %s5450_s18, 512  }
 0x70b   : > { %6245 = vsyncadd (!%p5958_p9), %s5450_s18, 4294966784  ;;  %s21_s20 = sadd.s32 1, %s6268_s20   ;;  %s7832_s15 = smov %s6252_s16 }
 0x70c   : > { %p18_p11 = scmp.ge.s32.totalorder %s21_s20, 4   ;;  %s7833_s16 = smov %s6256_s17 }
 0x70d   : > { %s7834_s17 = smov %s6462_s11  ;;  %s7835_s18 = smov %s6264_s19 }
 0x70e   : > { %s7836_s19 = smov %s7838_s30  ;;  %20 = sbr.rel (!%p18_p11) target bundleno = 7 (0x7), region = 89 }
 0x715   :  { %5455 = vsyncpa [#allocation3], 1 }
 0x716   :  { %5457 = vsyncpa [#allocation3 + $0x1], 1 }
 0x717   :  { %5458 = vsyncpa [#allocation6], 1 }
 0x718   :  { %5459 = vsyncpa [#allocation4], 1 }
 0x719   :  { %5461 = vsyncpa [#allocation4 + $0x1], 1 }

</bundles_post_ra>
